<compile_context>
chip_gen: v7x
topology: tpu7x:2x2x1
jax: 0.10.0
libtpu: 0.0.40
codegen_flags: <defaults>
</compile_context>

<pallas_src>
import functools

import jax
import jax.numpy as jnp
from jax.experimental import pallas as pl
from jax.experimental.pallas import tpu as pltpu

EPS = 1e-5


def _round_up(a, b):
    return (a + b - 1) // b * b


def _pick_c_tile(C, bytes_per_channel, budget_bytes):
    """Largest multiple-of-8 divisor of C whose block stays under budget."""
    cap = budget_bytes // max(bytes_per_channel, 1)
    cap = (min(cap, C) // 8) * 8
    for ct in range(int(cap), 7, -8):
        if C % ct == 0:
            return ct
    return None


# ---------------- fused path: stats + normalize in one kernel ----------------

def _bn_fused_kernel(x_ref, g_ref, b_ref, o_ref, *, inv_m):
    x = x_ref[...].astype(jnp.float32)                  # (N, CT, HW)
    s = jnp.sum(x, axis=(0, 2), keepdims=True)          # (1, CT, 1)
    sq = jnp.sum(x * x, axis=(0, 2), keepdims=True)     # (1, CT, 1)
    mean = s * inv_m
    var = jnp.maximum(sq * inv_m - mean * mean, 0.0)
    inv_std = jax.lax.rsqrt(var + EPS)
    scale = g_ref[...].astype(jnp.float32)[None] * inv_std      # (1, CT, 1)
    shift = b_ref[...].astype(jnp.float32)[None] - mean * scale
    o_ref[...] = (x * scale + shift).astype(o_ref.dtype)


# ---------------- general path: stats sweep + normalize sweep ----------------

def _bn_stats_kernel(x_ref, g_ref, b_ref, scale_ref, shift_ref,
                     sum_ref, sq_ref, *, inv_m):
    n = pl.program_id(1)
    x = x_ref[0].astype(jnp.float32)                    # (CT, HW)
    ps = jnp.sum(x, axis=1, keepdims=True)              # (CT, 1)
    psq = jnp.sum(x * x, axis=1, keepdims=True)         # (CT, 1)

    @pl.when(n == 0)
    def _():
        sum_ref[...] = jnp.zeros_like(sum_ref)
        sq_ref[...] = jnp.zeros_like(sq_ref)

    sum_ref[...] += ps
    sq_ref[...] += psq

    @pl.when(n == pl.num_programs(1) - 1)
    def _():
        mean = sum_ref[...] * inv_m
        var = jnp.maximum(sq_ref[...] * inv_m - mean * mean, 0.0)
        inv_std = jax.lax.rsqrt(var + EPS)
        scale = g_ref[...].astype(jnp.float32) * inv_std
        scale_ref[...] = scale
        shift_ref[...] = b_ref[...].astype(jnp.float32) - mean * scale


def _bn_apply_kernel(x_ref, scale_ref, shift_ref, o_ref):
    x = x_ref[0].astype(jnp.float32)                    # (CT, HW)
    y = x * scale_ref[...] + shift_ref[...]             # (CT,1) bcast over lanes
    o_ref[0] = y.astype(o_ref.dtype)


def batchnorm2d(x, gamma, beta, *, block_budget_bytes=512 * 1024):
    """Training-mode BatchNorm2d forward. x: (N, C, H, W); gamma/beta: (C,)."""
    N, C, H, W = x.shape
    HW = H * W
    orig_c = C

    # TODO(synk): PyTorch training-mode BN also updates running_mean /
    # running_var / num_batches_tracked in place; only the forward output is
    # reproduced here.

    if C % 8 != 0:  # sublane alignment; rare fallback, costs one pad copy.
        pad = _round_up(C, 8) - C
        x = jnp.pad(x, ((0, 0), (0, pad), (0, 0), (0, 0)))
        gamma = jnp.pad(gamma, (0, pad))
        beta = jnp.pad(beta, (0, pad))
        C += pad

    x3 = x.reshape(N, C, HW)                 # pure view of NCHW, no relayout
    g2 = gamma.reshape(C, 1).astype(jnp.float32)
    b2 = beta.reshape(C, 1).astype(jnp.float32)

    inv_m = 1.0 / float(N * HW)
    hw_vmem_bytes = _round_up(HW, 128) * 4   # lane-padded bytes per channel row
    cparams = dict(vmem_limit_bytes=32 * 1024 * 1024)

    ct_fused = _pick_c_tile(C, N * hw_vmem_bytes, block_budget_bytes)
    if ct_fused is not None:
        # Whole channel tile (all N, all HW) resident: 1 read + 1 write of x.
        y3 = pl.pallas_call(
            functools.partial(_bn_fused_kernel, inv_m=inv_m),
            out_shape=jax.ShapeDtypeStruct((N, C, HW), x3.dtype),
            grid_spec=pltpu.PrefetchScalarGridSpec(
                num_scalar_prefetch=0,
                grid=(C // ct_fused,),
                in_specs=[
                    pl.BlockSpec((N, ct_fused, HW), lambda c: (0, c, 0)),
                    pl.BlockSpec((ct_fused, 1), lambda c: (c, 0)),
                    pl.BlockSpec((ct_fused, 1), lambda c: (c, 0)),
                ],
                out_specs=pl.BlockSpec((N, ct_fused, HW), lambda c: (0, c, 0)),
            ),
            compiler_params=pltpu.CompilerParams(
                dimension_semantics=("parallel",), **cparams),
        )(x3, g2, b2)
    else:
        ct = _pick_c_tile(C, hw_vmem_bytes, block_budget_bytes) or 8
        # TODO(synk): for extremely large H*W (>~1e5) a lane-axis tile would
        # also be needed; typical conv activations never reach that.

        # Sweep 1: accumulate per-channel sum / sumsq over the batch axis,
        # finalize folded scale/shift.
        scale, shift = pl.pallas_call(
            functools.partial(_bn_stats_kernel, inv_m=inv_m),
            out_shape=(jax.ShapeDtypeStruct((C, 1), jnp.float32),
                       jax.ShapeDtypeStruct((C, 1), jnp.float32)),
            grid_spec=pltpu.PrefetchScalarGridSpec(
                num_scalar_prefetch=0,
                grid=(C // ct, N),
                in_specs=[
                    pl.BlockSpec((1, ct, HW), lambda c, n: (n, c, 0)),
                    pl.BlockSpec((ct, 1), lambda c, n: (c, 0)),
                    pl.BlockSpec((ct, 1), lambda c, n: (c, 0)),
                ],
                out_specs=[pl.BlockSpec((ct, 1), lambda c, n: (c, 0)),
                           pl.BlockSpec((ct, 1), lambda c, n: (c, 0))],
                scratch_shapes=[pltpu.VMEM((ct, 1), jnp.float32),
                                pltpu.VMEM((ct, 1), jnp.float32)],
            ),
            compiler_params=pltpu.CompilerParams(
                dimension_semantics=("parallel", "arbitrary"), **cparams),
        )(x3, g2, b2)

        # Sweep 2: stream x and apply y = x*scale + shift.
        y3 = pl.pallas_call(
            _bn_apply_kernel,
            out_shape=jax.ShapeDtypeStruct((N, C, HW), x3.dtype),
            grid_spec=pltpu.PrefetchScalarGridSpec(
                num_scalar_prefetch=0,
                grid=(C // ct, N),
                in_specs=[
                    pl.BlockSpec((1, ct, HW), lambda c, n: (n, c, 0)),
                    pl.BlockSpec((ct, 1), lambda c, n: (c, 0)),
                    pl.BlockSpec((ct, 1), lambda c, n: (c, 0)),
                ],
                out_specs=pl.BlockSpec((1, ct, HW), lambda c, n: (n, c, 0)),
            ),
            compiler_params=pltpu.CompilerParams(
                dimension_semantics=("parallel", "parallel"), **cparams),
        )(x3, scale, shift)

    y = y3.reshape(N, C, H, W)
    if C != orig_c:
        y = y[:, :orig_c]
    return y


def _bn_ref(x, gamma, beta):
    mean = jnp.mean(x, axis=(0, 2, 3), keepdims=True)
    var = jnp.mean((x - mean) ** 2, axis=(0, 2, 3), keepdims=True)
    g = gamma.reshape(1, -1, 1, 1)
    b = beta.reshape(1, -1, 1, 1)
    return (x - mean) * jax.lax.rsqrt(var + EPS) * g + b


if __name__ == "__main__":
    key = jax.random.PRNGKey(0)
    k1, k2, k3, k4 = jax.random.split(key, 4)

    bn = jax.jit(batchnorm2d)
    bn_tiny_budget = jax.jit(
        functools.partial(batchnorm2d, block_budget_bytes=4096))

    # 1) The module's own shape (1, 2688, 7, 7) with init params (w=1, b=0).
    #    Takes the fused single-pass path (3 grid steps, 896-channel tiles).
    x = jax.random.normal(k1, (1, 2688, 7, 7), dtype=jnp.float32)
    gamma = jnp.ones((2688,), jnp.float32)
    beta = jnp.zeros((2688,), jnp.float32)
    y = bn(x, gamma, beta)
    jax.block_until_ready(y)
    assert jnp.allclose(y, _bn_ref(x, gamma, beta), atol=1e-3, rtol=1e-3), \
        "fused path mismatch vs reference"

    # 2) Force the two-sweep (stats + normalize) path via a tiny block budget,
    #    with non-trivial affine params.
    x2 = jax.random.normal(k2, (2, 64, 16, 16), dtype=jnp.float32) * 3.0 + 0.5
    g2v = jax.random.normal(k3, (64,), dtype=jnp.float32)
    b2v = jax.random.normal(k4, (64,), dtype=jnp.float32)
    y2 = bn_tiny_budget(x2, g2v, b2v)
    jax.block_until_ready(y2)
    assert jnp.allclose(y2, _bn_ref(x2, g2v, b2v), atol=1e-3, rtol=1e-3), \
        "two-sweep path mismatch vs reference"

    # 3) Channel count not a multiple of 8 (padding fallback).
    x3 = jax.random.normal(k2, (2, 12, 5, 5), dtype=jnp.float32)
    g3 = jnp.linspace(0.5, 1.5, 12).astype(jnp.float32)
    b3 = jnp.linspace(-1.0, 1.0, 12).astype(jnp.float32)
    y3 = bn(x3, g3, b3)
    jax.block_until_ready(y3)
    assert jnp.allclose(y3, _bn_ref(x3, g3, b3), atol=1e-3, rtol=1e-3), \
        "channel-padding path mismatch vs reference"

    print("KERNEL_OK")
</pallas_src>

<mosaic_0001>
module attributes {stable_mosaic.version = 11 : i64} {
  func.func @_bn_fused_kernel(%arg0: i32, %arg1: memref<1x896x49xf32, #tpu.memory_space<vmem>>, %arg2: memref<896x1xf32, #tpu.memory_space<vmem>>, %arg3: memref<896x1xf32, #tpu.memory_space<vmem>>, %arg4: memref<1x896x49xf32, #tpu.memory_space<vmem>>) attributes {dimension_semantics = [#tpu.dimension_semantics<parallel>], iteration_bounds = array<i64: 3>, scalar_prefetch = 0 : i64, scratch_operands = 0 : i64, tpu.core_type = #tpu.core_type<tc>, window_params = [{transform_indices = @transform_0, window_bounds = array<i64: 1, 896, 49>}, {transform_indices = @transform_1, window_bounds = array<i64: 896, 1>}, {transform_indices = @transform_2, window_bounds = array<i64: 896, 1>}, {transform_indices = @transform_3, window_bounds = array<i64: 1, 896, 49>}]} {
    %c0 = arith.constant 0 : index
    %c0_0 = arith.constant 0 : index
    %c0_1 = arith.constant 0 : index
    %0 = vector.load %arg1[%c0, %c0_0, %c0_1] : memref<1x896x49xf32, #tpu.memory_space<vmem>>, vector<1x896x49xf32>
    %cst = arith.constant dense<0.000000e+00> : vector<896xf32>
    %1 = vector.multi_reduction <add>, %0, %cst [0, 2] : vector<1x896x49xf32> to vector<896xf32>
    %2 = vector.shape_cast %1 : vector<896xf32> to vector<1x896x1xf32>
    %3 = arith.mulf %0, %0 : vector<1x896x49xf32>
    %cst_2 = arith.constant dense<0.000000e+00> : vector<896xf32>
    %4 = vector.multi_reduction <add>, %3, %cst_2 [0, 2] : vector<1x896x49xf32> to vector<896xf32>
    %5 = vector.shape_cast %4 : vector<896xf32> to vector<1x896x1xf32>
    %cst_3 = arith.constant 0.0204081628 : f32
    %6 = vector.broadcast %cst_3 : f32 to vector<1x896x1xf32>
    %7 = arith.mulf %2, %6 : vector<1x896x1xf32>
    %cst_4 = arith.constant 0.0204081628 : f32
    %8 = vector.broadcast %cst_4 : f32 to vector<1x896x1xf32>
    %9 = arith.mulf %5, %8 : vector<1x896x1xf32>
    %10 = arith.mulf %7, %7 : vector<1x896x1xf32>
    %11 = arith.subf %9, %10 : vector<1x896x1xf32>
    %cst_5 = arith.constant 0.000000e+00 : f32
    %12 = vector.broadcast %cst_5 : f32 to vector<1x896x1xf32>
    %13 = arith.maximumf %11, %12 : vector<1x896x1xf32>
    %cst_6 = arith.constant 9.99999974E-6 : f32
    %14 = vector.broadcast %cst_6 : f32 to vector<1x896x1xf32>
    %15 = arith.addf %13, %14 : vector<1x896x1xf32>
    %16 = math.rsqrt %15 : vector<1x896x1xf32>
    %c0_7 = arith.constant 0 : index
    %c0_8 = arith.constant 0 : index
    %17 = vector.load %arg2[%c0_7, %c0_8] : memref<896x1xf32, #tpu.memory_space<vmem>>, vector<896x1xf32>
    %18 = vector.shape_cast %17 : vector<896x1xf32> to vector<1x896x1xf32>
    %19 = arith.mulf %18, %16 : vector<1x896x1xf32>
    %c0_9 = arith.constant 0 : index
    %c0_10 = arith.constant 0 : index
    %20 = vector.load %arg3[%c0_9, %c0_10] : memref<896x1xf32, #tpu.memory_space<vmem>>, vector<896x1xf32>
    %21 = vector.shape_cast %20 : vector<896x1xf32> to vector<1x896x1xf32>
    %22 = arith.mulf %7, %19 : vector<1x896x1xf32>
    %23 = arith.subf %21, %22 : vector<1x896x1xf32>
    %24 = vector.broadcast %19 : vector<1x896x1xf32> to vector<1x896x49xf32>
    %25 = arith.mulf %0, %24 : vector<1x896x49xf32>
    %26 = vector.broadcast %23 : vector<1x896x1xf32> to vector<1x896x49xf32>
    %27 = arith.addf %25, %26 : vector<1x896x49xf32>
    %c0_11 = arith.constant 0 : index
    %c0_12 = arith.constant 0 : index
    %c0_13 = arith.constant 0 : index
    %28 = vector.load %arg4[%c0_11, %c0_12, %c0_13] : memref<1x896x49xf32, #tpu.memory_space<vmem>>, vector<1x896x49xf32>
    tpu.vector_store %arg4[%c0_11, %c0_12, %c0_13], %27 {strides = array<i32>} : memref<1x896x49xf32, #tpu.memory_space<vmem>>, vector<1x896x49xf32>,
    return
  }
  func.func @transform_0(%arg0: i32) -> (i32, i32, i32) {
    %c0_i32 = arith.constant 0 : i32
    %c0_i32_0 = arith.constant 0 : i32
    %c0_i32_1 = arith.constant 0 : i32
    return %c0_i32, %arg0, %c0_i32_0 : i32, i32, i32
  }
  func.func @transform_1(%arg0: i32) -> (i32, i32) {
    %c0_i32 = arith.constant 0 : i32
    %c0_i32_0 = arith.constant 0 : i32
    return %arg0, %c0_i32 : i32, i32
  }
  func.func @transform_2(%arg0: i32) -> (i32, i32) {
    %c0_i32 = arith.constant 0 : i32
    %c0_i32_0 = arith.constant 0 : i32
    return %arg0, %c0_i32 : i32, i32
  }
  func.func @transform_3(%arg0: i32) -> (i32, i32, i32) {
    %c0_i32 = arith.constant 0 : i32
    %c0_i32_0 = arith.constant 0 : i32
    %c0_i32_1 = arith.constant 0 : i32
    return %c0_i32, %arg0, %c0_i32_0 : i32, i32, i32
  }
}

</mosaic_0001>

<bundles_post_ra>
// kernel: batchnorm2d.1
= control target key start
LH: loop header
LB: loop body
LE: loop exit
PB: predicated region body
PF: predicated region fallthrough
CT: control target
= control target key end

     0   :  { %s4382_s12 = smov 0   ;;  %s7891_s0 = inlined_call_operand.vmem [shape: f32[1,2688,49], index: 0, kind: input, shape index: {}]   ;;  %s7892_s1 = inlined_call_operand.vmem [shape: f32[2688,1], index: 1, kind: input, shape index: {}]   ;;  %s7893_s2 = inlined_call_operand.vmem [shape: f32[2688,1], index: 2, kind: input, shape index: {}]   ;;  %s7894_s3 = inlined_call_operand.vmem [shape: f32[1,2688,49], index: 3, kind: output, shape index: {}]  }
   0x1 LB: > { %s3995_s13 = sadd.s32 4294967295, %s4359_s12   ;;  %p3999_p0 = scmp.ge.s32.totalorder %s4359_s12, 1  ;;  %s4359_s12 = sphi %s4382_s12, %s13_s12  }
   0x2   : > { %p160_p1 = scmp.lt.s32.totalorder %s4359_s12, 4 }
   0x4   : > { %p161_p2 = pnand %p3999_p0, %p160_p1 }
   0x6   : > { %164 = sbr.rel (%p161_p2) target bundleno = 1071 (0x42f), region = 32 }
   0xd   : > { %s194_s14 = smul.u32 112, %s3995_s13  ;;  %vm330_vm0 = vcmask 400384  }
   0xf   : > { %p195_p3 = scmp.lt.s32.totalorder %s194_s14, 335 }
  0x11   : > { %s9047_s14 = smov (!%p195_p3, %s194_s14), 335 }
  0x12   : > { %s4390_s15 = sshll.u32 %s9047_s14, 3 }
  0x13   : > { %s4396_s18 = scalar_lea.vmem %s7891_s0, %s4390_s15  ;;  %s5683_s21 = scalar_lea.vmem %s7892_s1, %s4390_s15 }
  0x14   : > { %v4399_v0 = vld [vmem:[%s4396_s18 + $0x10] sm:$0xff]  ;;  %v4402_v1 = vld [vmem:[%s4396_s18] sm:$0xff]  ;;  %v4405_v2 = vld [vmem:[%s4396_s18 + $0x18] sm:$0xff]  ;;  %s6928_s24 = scalar_lea.vmem %s7893_s2, %s4390_s15  ;;  %s7284_s27 = scalar_lea.vmem %s7894_s3, %s4390_s15 }
  0x15   : > { %v337_v3 = vsel %vm330_vm0, %v4399_v0, 0.0  ;;  %v331_v4 = vsel %vm330_vm0, %v4402_v1, 0.0  ;;  %v4412_v5 = vld [vmem:[%s4396_s18 + $0x8] sm:$0xff]  ;;  %v340_v6 = vsel %vm330_vm0, %v4405_v2, 0.0  ;;  %v4422_v9 = vld [vmem:[%s4396_s18 + $0x20] sm:$0xff]  ;;  %v4429_v12 = vld [vmem:[%s4396_s18 + $0x38] sm:$0xff] }
  0x16   : > { %338 = vadd.xlane.f32.xlu1 %v337_v3  ;;  %332 = vadd.xlane.f32.xlu0 %v331_v4  ;;  %v334_v7 = vsel %vm330_vm0, %v4412_v5, 0.0  ;;  %v4419_v8 = vld [vmem:[%s4396_s18 + $0x28] sm:$0xff]  ;;  %v343_v11 = vsel %vm330_vm0, %v4422_v9, 0.0  ;;  %v4432_v13 = vld [vmem:[%s4396_s18 + $0x30] sm:$0xff]  ;;  %v352_v14 = vsel %vm330_vm0, %v4429_v12, 0.0  ;;  %v4442_v17 = vld [vmem:[%s4396_s18 + $0x40] sm:$0xff] }
  0x17   : > { %v346_v10 = vsel %vm330_vm0, %v4419_v8, 0.0  ;;  %v349_v15 = vsel %vm330_vm0, %v4432_v13, 0.0  ;;  %v4439_v16 = vld [vmem:[%s4396_s18 + $0x48] sm:$0xff]  ;;  %v355_v19 = vsel %vm330_vm0, %v4442_v17, 0.0  ;;  %v4449_v20 = vld [vmem:[%s4396_s18 + $0x58] sm:$0xff]  ;;  %v4452_v21 = vld [vmem:[%s4396_s18 + $0x50] sm:$0xff] }
  0x18   : > { %v358_v18 = vsel %vm330_vm0, %v4439_v16, 0.0  ;;  %v364_v22 = vsel %vm330_vm0, %v4449_v20, 0.0  ;;  %v361_v23 = vsel %vm330_vm0, %v4452_v21, 0.0  ;;  %v4459_v24 = vld [vmem:[%s4396_s18 + $0x68] sm:$0xff]  ;;  %v4462_v25 = vld [vmem:[%s4396_s18 + $0x60] sm:$0xff]  ;;  %v4469_v28 = vld [vmem:[%s4396_s18 + $0x78] sm:$0xff] }
  0x19   : > { %v370_v26 = vsel %vm330_vm0, %v4459_v24, 0.0  ;;  %v367_v27 = vsel %vm330_vm0, %v4462_v25, 0.0  ;;  %v4472_v29 = vld [vmem:[%s4396_s18 + $0x70] sm:$0xff]  ;;  %v376_v30 = vsel %vm330_vm0, %v4469_v28, 0.0  ;;  %v4479_v32 = vld [vmem:[%s4396_s18 + $0x88] sm:$0xff]  ;;  %v4482_v33 = vld [vmem:[%s4396_s18 + $0x80] sm:$0xff] }
  0x1a   : > { %341 = vadd.xlane.f32.xlu1 %v340_v6  ;;  %335 = vadd.xlane.f32.xlu0 %v334_v7  ;;  %v373_v31 = vsel %vm330_vm0, %v4472_v29, 0.0  ;;  %v382_v34 = vsel %vm330_vm0, %v4479_v32, 0.0  ;;  %v379_v35 = vsel %vm330_vm0, %v4482_v33, 0.0  ;;  %v4489_v36 = vld [vmem:[%s4396_s18 + $0x98] sm:$0xff]  ;;  %v4492_v37 = vld [vmem:[%s4396_s18 + $0x90] sm:$0xff]  ;;  %v4499_v40 = vld [vmem:[%s4396_s18 + $0xa8] sm:$0xff] }
  0x1b   : > { %v388_v38 = vsel %vm330_vm0, %v4489_v36, 0.0  ;;  %v385_v39 = vsel %vm330_vm0, %v4492_v37, 0.0  ;;  %v4502_v41 = vld [vmem:[%s4396_s18 + $0xa0] sm:$0xff]  ;;  %v394_v42 = vsel %vm330_vm0, %v4499_v40, 0.0  ;;  %v4509_v44 = vld [vmem:[%s4396_s18 + $0xb8] sm:$0xff]  ;;  %v4512_v45 = vld [vmem:[%s4396_s18 + $0xb0] sm:$0xff] }
  0x1c   : > { %v391_v43 = vsel %vm330_vm0, %v4502_v41, 0.0  ;;  %v400_v46 = vsel %vm330_vm0, %v4509_v44, 0.0  ;;  %v397_v47 = vsel %vm330_vm0, %v4512_v45, 0.0  ;;  %v4519_v48 = vld [vmem:[%s4396_s18 + $0xc8] sm:$0xff]  ;;  %v4522_v49 = vld [vmem:[%s4396_s18 + $0xc0] sm:$0xff]  ;;  %v4529_v52 = vld [vmem:[%s4396_s18 + $0xd8] sm:$0xff] }
  0x1d   : > { %v406_v50 = vsel %vm330_vm0, %v4519_v48, 0.0  ;;  %v403_v51 = vsel %vm330_vm0, %v4522_v49, 0.0  ;;  %v4532_v53 = vld [vmem:[%s4396_s18 + $0xd0] sm:$0xff]  ;;  %v412_v54 = vsel %vm330_vm0, %v4529_v52, 0.0  ;;  %v4539_v56 = vld [vmem:[%s4396_s18 + $0xe8] sm:$0xff]  ;;  %v4542_v57 = vld [vmem:[%s4396_s18 + $0xe0] sm:$0xff] }
  0x1e   : > { %347 = vadd.xlane.f32.xlu1 %v346_v10  ;;  %344 = vadd.xlane.f32.xlu0 %v343_v11  ;;  %v409_v55 = vsel %vm330_vm0, %v4532_v53, 0.0  ;;  %v418_v58 = vsel %vm330_vm0, %v4539_v56, 0.0  ;;  %v415_v59 = vsel %vm330_vm0, %v4542_v57, 0.0  ;;  %v4549_v60 = vld [vmem:[%s4396_s18 + $0xf8] sm:$0xff]  ;;  %v4552_v61 = vld [vmem:[%s4396_s18 + $0xf0] sm:$0xff]  ;;  %v4559_v3 = vld [vmem:[%s4396_s18 + $0x108] sm:$0xff] }
  0x1f   : > { %v424_v62 = vsel %vm330_vm0, %v4549_v60, 0.0  ;;  %v421_v63 = vsel %vm330_vm0, %v4552_v61, 0.0  ;;  %v4562_v4 = vld [vmem:[%s4396_s18 + $0x100] sm:$0xff]  ;;  %v430_v6 = vsel %vm330_vm0, %v4559_v3, 0.0  ;;  %v4569_v10 = vld [vmem:[%s4396_s18 + $0x118] sm:$0xff]  ;;  %v4572_v11 = vld [vmem:[%s4396_s18 + $0x110] sm:$0xff] }
  0x20   : > { %v427_v7 = vsel %vm330_vm0, %v4562_v4, 0.0 }
  0x22   : > { %353 = vadd.xlane.f32.xlu1 %v352_v14  ;;  %350 = vadd.xlane.f32.xlu0 %v349_v15  ;;  %v436_v14 = vsel %vm330_vm0, %v4569_v10, 0.0  ;;  %v433_v15 = vsel %vm330_vm0, %v4572_v11, 0.0 }
  0x26   : > { %359 = vadd.xlane.f32.xlu1 %v358_v18  ;;  %356 = vadd.xlane.f32.xlu0 %v355_v19  ;;  %v4579_v18 = vld [vmem:[%s4396_s18 + $0x128] sm:$0xff]  ;;  %v4582_v19 = vld [vmem:[%s4396_s18 + $0x120] sm:$0xff] }
  0x2a   : > { %365 = vadd.xlane.f32.xlu1 %v364_v22  ;;  %362 = vadd.xlane.f32.xlu0 %v361_v23  ;;  %v442_v22 = vsel %vm330_vm0, %v4579_v18, 0.0  ;;  %v439_v23 = vsel %vm330_vm0, %v4582_v19, 0.0 }
  0x2e   : > { %371 = vadd.xlane.f32.xlu1 %v370_v26  ;;  %368 = vadd.xlane.f32.xlu0 %v367_v27  ;;  %v4589_v26 = vld [vmem:[%s4396_s18 + $0x138] sm:$0xff]  ;;  %v4592_v27 = vld [vmem:[%s4396_s18 + $0x130] sm:$0xff] }
  0x32   : > { %377 = vadd.xlane.f32.xlu1 %v376_v30  ;;  %374 = vadd.xlane.f32.xlu0 %v373_v31  ;;  %v448_v30 = vsel %vm330_vm0, %v4589_v26, 0.0  ;;  %v445_v31 = vsel %vm330_vm0, %v4592_v27, 0.0 }
  0x36   : > { %383 = vadd.xlane.f32.xlu1 %v382_v34  ;;  %380 = vadd.xlane.f32.xlu0 %v379_v35  ;;  %v4599_v34 = vld [vmem:[%s4396_s18 + $0x148] sm:$0xff]  ;;  %v4602_v35 = vld [vmem:[%s4396_s18 + $0x140] sm:$0xff] }
  0x3a   : > { %389 = vadd.xlane.f32.xlu1 %v388_v38  ;;  %386 = vadd.xlane.f32.xlu0 %v385_v39  ;;  %v454_v38 = vsel %vm330_vm0, %v4599_v34, 0.0  ;;  %v451_v39 = vsel %vm330_vm0, %v4602_v35, 0.0 }
  0x3e   : > { %395 = vadd.xlane.f32.xlu1 %v394_v42  ;;  %392 = vadd.xlane.f32.xlu0 %v391_v43  ;;  %v4609_v42 = vld [vmem:[%s4396_s18 + $0x158] sm:$0xff]  ;;  %v4612_v43 = vld [vmem:[%s4396_s18 + $0x150] sm:$0xff] }
  0x42   : > { %401 = vadd.xlane.f32.xlu1 %v400_v46  ;;  %398 = vadd.xlane.f32.xlu0 %v397_v47  ;;  %v460_v46 = vsel %vm330_vm0, %v4609_v42, 0.0  ;;  %v457_v47 = vsel %vm330_vm0, %v4612_v43, 0.0 }
  0x46   : > { %407 = vadd.xlane.f32.xlu1 %v406_v50  ;;  %404 = vadd.xlane.f32.xlu0 %v403_v51  ;;  %v4619_v50 = vld [vmem:[%s4396_s18 + $0x168] sm:$0xff]  ;;  %v4622_v51 = vld [vmem:[%s4396_s18 + $0x160] sm:$0xff] }
  0x4a   : > { %413 = vadd.xlane.f32.xlu1 %v412_v54  ;;  %410 = vadd.xlane.f32.xlu0 %v409_v55  ;;  %v466_v54 = vsel %vm330_vm0, %v4619_v50, 0.0  ;;  %v463_v55 = vsel %vm330_vm0, %v4622_v51, 0.0 }
  0x4e   : > { %419 = vadd.xlane.f32.xlu1 %v418_v58  ;;  %416 = vadd.xlane.f32.xlu0 %v415_v59  ;;  %v4629_v58 = vld [vmem:[%s4396_s18 + $0x178] sm:$0xff]  ;;  %v4632_v59 = vld [vmem:[%s4396_s18 + $0x170] sm:$0xff] }
  0x52   : > { %425 = vadd.xlane.f32.xlu1 %v424_v62  ;;  %422 = vadd.xlane.f32.xlu0 %v421_v63  ;;  %v472_v62 = vsel %vm330_vm0, %v4629_v58, 0.0  ;;  %v469_v63 = vsel %vm330_vm0, %v4632_v59, 0.0 }
  0x56   : > { %431 = vadd.xlane.f32.xlu1 %v430_v6  ;;  %428 = vadd.xlane.f32.xlu0 %v427_v7  ;;  %v4639_v6 = vld [vmem:[%s4396_s18 + $0x188] sm:$0xff]  ;;  %v4642_v7 = vld [vmem:[%s4396_s18 + $0x180] sm:$0xff] }
  0x5a   : > { %437 = vadd.xlane.f32.xlu1 %v436_v14  ;;  %434 = vadd.xlane.f32.xlu0 %v433_v15  ;;  %v478_v14 = vsel %vm330_vm0, %v4639_v6, 0.0  ;;  %v475_v15 = vsel %vm330_vm0, %v4642_v7, 0.0 }
  0x5e   : > { %443 = vadd.xlane.f32.xlu1 %v442_v22  ;;  %440 = vadd.xlane.f32.xlu0 %v439_v23  ;;  %v4649_v22 = vld [vmem:[%s4396_s18 + $0x198] sm:$0xff]  ;;  %v4652_v23 = vld [vmem:[%s4396_s18 + $0x190] sm:$0xff] }
  0x62   : > { %449 = vadd.xlane.f32.xlu1 %v448_v30  ;;  %446 = vadd.xlane.f32.xlu0 %v445_v31  ;;  %v484_v30 = vsel %vm330_vm0, %v4649_v22, 0.0  ;;  %v481_v31 = vsel %vm330_vm0, %v4652_v23, 0.0 }
  0x66   : > { %455 = vadd.xlane.f32.xlu1 %v454_v38  ;;  %452 = vadd.xlane.f32.xlu0 %v451_v39  ;;  %v4659_v38 = vld [vmem:[%s4396_s18 + $0x1a8] sm:$0xff]  ;;  %v4662_v39 = vld [vmem:[%s4396_s18 + $0x1a0] sm:$0xff] }
  0x67   : > { %8140 = vst [vmem:[#allocation2_spill] sm:$0xff] %v4662_v39 }
  0x6a   : > { %461 = vadd.xlane.f32.xlu1 %v460_v46  ;;  %458 = vadd.xlane.f32.xlu0 %v457_v47  ;;  %v490_v46 = vsel %vm330_vm0, %v4659_v38, 0.0  ;;  %v487_v47 = vsel %vm330_vm0, %v4662_v39, 0.0 }
  0x6e   : > { %467 = vadd.xlane.f32.xlu1 %v466_v54  ;;  %464 = vadd.xlane.f32.xlu0 %v463_v55  ;;  %v4669_v54 = vld [vmem:[%s4396_s18 + $0x1b8] sm:$0xff]  ;;  %v4672_v55 = vld [vmem:[%s4396_s18 + $0x1b0] sm:$0xff] }
  0x6f   : > { %8141 = vst [vmem:[#allocation3_spill] sm:$0xff] %v4669_v54  ;;  %8142 = vst [vmem:[#allocation4_spill] sm:$0xff] %v4672_v55 }
  0x72   : > { %473 = vadd.xlane.f32.xlu1 %v472_v62  ;;  %470 = vadd.xlane.f32.xlu0 %v469_v63  ;;  %v496_v62 = vsel %vm330_vm0, %v4669_v54, 0.0  ;;  %v493_v63 = vsel %vm330_vm0, %v4672_v55, 0.0  ;;  %v4699_v55 = vld [vmem:[%s4396_s18 + $0x1e8] sm:$0xff] }
  0x73   : > { %8147 = vst [vmem:[#allocation9_spill] sm:$0xff] %v4699_v55 }
  0x76   : > { %479 = vadd.xlane.f32.xlu1 %v478_v14  ;;  %476 = vadd.xlane.f32.xlu0 %v475_v15  ;;  %v4679_v14 = vld [vmem:[%s4396_s18 + $0x1c8] sm:$0xff]  ;;  %v4682_v15 = vld [vmem:[%s4396_s18 + $0x1c0] sm:$0xff] }
  0x77   : > { %8143 = vst [vmem:[#allocation5_spill] sm:$0xff] %v4679_v14  ;;  %8144 = vst [vmem:[#allocation6_spill] sm:$0xff] %v4682_v15 }
  0x7a   : > { %485 = vadd.xlane.f32.xlu1 %v484_v30  ;;  %482 = vadd.xlane.f32.xlu0 %v481_v31  ;;  %v502_v30 = vsel %vm330_vm0, %v4679_v14, 0.0  ;;  %v499_v31 = vsel %vm330_vm0, %v4682_v15, 0.0  ;;  %v4702_v14 = vld [vmem:[%s4396_s18 + $0x1e0] sm:$0xff]  ;;  %v4709_v15 = vld [vmem:[%s4396_s18 + $0x1f8] sm:$0xff] }
  0x7b   : > { %8148 = vst [vmem:[#allocation10_spill] sm:$0xff] %v4702_v14  ;;  %8149 = vst [vmem:[#allocation11_spill] sm:$0xff] %v4709_v15 }
  0x7e   : > { %491 = vadd.xlane.f32.xlu1 %v490_v46  ;;  %488 = vadd.xlane.f32.xlu0 %v487_v47  ;;  %v4689_v46 = vld [vmem:[%s4396_s18 + $0x1d8] sm:$0xff]  ;;  %v4692_v47 = vld [vmem:[%s4396_s18 + $0x1d0] sm:$0xff] }
  0x7f   : > { %8145 = vst [vmem:[#allocation7_spill] sm:$0xff] %v4689_v46  ;;  %8146 = vst [vmem:[#allocation8_spill] sm:$0xff] %v4692_v47 }
  0x82   : > { %497 = vadd.xlane.f32.xlu1 %v496_v62  ;;  %494 = vadd.xlane.f32.xlu0 %v493_v63  ;;  %v508_v62 = vsel %vm330_vm0, %v4689_v46, 0.0  ;;  %v505_v63 = vsel %vm330_vm0, %v4692_v47, 0.0  ;;  %v4712_v46 = vld [vmem:[%s4396_s18 + $0x1f0] sm:$0xff]  ;;  %v4719_v47 = vld [vmem:[%s4396_s18 + $0x208] sm:$0xff] }
  0x83   : > { %8150 = vst [vmem:[#allocation12_spill] sm:$0xff] %v4712_v46  ;;  %8151 = vst [vmem:[#allocation13_spill] sm:$0xff] %v4719_v47 }
  0x86   : > { %503 = vadd.xlane.f32.xlu1 %v502_v30  ;;  %500 = vadd.xlane.f32.xlu0 %v499_v31  ;;  %v514_v30 = vsel %vm330_vm0, %v4699_v55, 0.0  ;;  %v511_v31 = vsel %vm330_vm0, %v4702_v14, 0.0  ;;  %v4722_v55 = vld [vmem:[%s4396_s18 + $0x200] sm:$0xff]  ;;  %v4729_v14 = vld [vmem:[%s4396_s18 + $0x218] sm:$0xff] }
  0x87   : > { %8152 = vst [vmem:[#allocation14_spill] sm:$0xff] %v4722_v55  ;;  %8153 = vst [vmem:[#allocation15_spill] sm:$0xff] %v4729_v14 }
  0x8a   : > { %509 = vadd.xlane.f32.xlu1 %v508_v62  ;;  %506 = vadd.xlane.f32.xlu0 %v505_v63  ;;  %v520_v62 = vsel %vm330_vm0, %v4709_v15, 0.0  ;;  %v517_v63 = vsel %vm330_vm0, %v4712_v46, 0.0  ;;  %v4732_v15 = vld [vmem:[%s4396_s18 + $0x210] sm:$0xff]  ;;  %v4739_v46 = vld [vmem:[%s4396_s18 + $0x228] sm:$0xff] }
  0x8b   : > { %8154 = vst [vmem:[#allocation16_spill] sm:$0xff] %v4732_v15  ;;  %8155 = vst [vmem:[#allocation17_spill] sm:$0xff] %v4739_v46 }
  0x8e   : > { %515 = vadd.xlane.f32.xlu1 %v514_v30  ;;  %512 = vadd.xlane.f32.xlu0 %v511_v31  ;;  %v526_v30 = vsel %vm330_vm0, %v4719_v47, 0.0  ;;  %v523_v31 = vsel %vm330_vm0, %v4722_v55, 0.0  ;;  %v4742_v47 = vld [vmem:[%s4396_s18 + $0x220] sm:$0xff]  ;;  %v538_v55 = vsel %vm330_vm0, %v4739_v46, 0.0 }
  0x8f   : > { %8156 = vst [vmem:[#allocation18_spill] sm:$0xff] %v4742_v47  ;;  %v4762_v46 = vld [vmem:[%s4396_s18 + $0x240] sm:$0xff] }
  0x90   : > { %8160 = vst [vmem:[#allocation22_spill] sm:$0xff] %v4762_v46 }
  0x92   : > { %521 = vadd.xlane.f32.xlu1 %v520_v62  ;;  %518 = vadd.xlane.f32.xlu0 %v517_v63  ;;  %v532_v62 = vsel %vm330_vm0, %v4729_v14, 0.0  ;;  %v529_v63 = vsel %vm330_vm0, %v4732_v15, 0.0  ;;  %v4752_v14 = vld [vmem:[%s4396_s18 + $0x230] sm:$0xff] }
  0x93   : > { %8158 = vst [vmem:[#allocation20_spill] sm:$0xff] %v4752_v14 }
  0x96   : > { %527 = vadd.xlane.f32.xlu1 %v526_v30  ;;  %524 = vadd.xlane.f32.xlu0 %v523_v31  ;;  %v535_v30 = vsel %vm330_vm0, %v4742_v47, 0.0  ;;  %v4749_v31 = vld [vmem:[%s4396_s18 + $0x238] sm:$0xff] }
  0x97   : > { %8157 = vst [vmem:[#allocation19_spill] sm:$0xff] %v4749_v31  ;;  %v544_v15 = vsel %vm330_vm0, %v4749_v31, 0.0  ;;  %v4773_v31 = vld [vmem:[%s4396_s18 + $0x258] sm:$0xff] }
  0x98   : > { %8163 = vst [vmem:[#allocation25_spill] sm:$0xff] %v4773_v31 }
  0x9a   : > { %533 = vadd.xlane.f32.xlu1 %v532_v62  ;;  %530 = vadd.xlane.f32.xlu0 %v529_v63  ;;  %v541_v62 = vsel %vm330_vm0, %v4752_v14, 0.0  ;;  %v4759_v63 = vld [vmem:[%s4396_s18 + $0x248] sm:$0xff]  ;;  %v4776_v14 = vld [vmem:[%s4396_s18 + $0x250] sm:$0xff] }
  0x9b   : > { %8159 = vst [vmem:[#allocation21_spill] sm:$0xff] %v4759_v63  ;;  %8164 = vst [vmem:[#allocation26_spill] sm:$0xff] %v4776_v14 }
  0x9e   : > { %539 = vadd.xlane.f32.xlu1 %v538_v55  ;;  %536 = vadd.xlane.f32.xlu0 %v535_v30  ;;  %v550_v55 = vsel %vm330_vm0, %v4759_v63, 0.0  ;;  %v547_v30 = vsel %vm330_vm0, %v4762_v46, 0.0  ;;  %v4787_v63 = vld [vmem:[%s4396_s18 + $0x268] sm:$0xff]  ;;  %v4790_v46 = vld [vmem:[%s4396_s18 + $0x260] sm:$0xff] }
  0x9f   : > { %8167 = vst [vmem:[#allocation29_spill] sm:$0xff] %v4787_v63  ;;  %8168 = vst [vmem:[#allocation30_spill] sm:$0xff] %v4790_v46 }
  0xa2   : > { %545 = vadd.xlane.f32.xlu1 %v544_v15  ;;  %542 = vadd.xlane.f32.xlu0 %v541_v62 }
  0xa3   : > { %v4764_v47 = vpop.xlane.xlu1 %338  ;;  %v4766_v54 = vpop.xlane.xlu0 %332 }
  0xa4   : > { %8161 = vst [vmem:[#allocation23_spill] sm:$0xff] %v4764_v47  ;;  %8162 = vst [vmem:[#allocation24_spill] sm:$0xff] %v4766_v54  ;;  %v556_v54 = vsel %vm330_vm0, %v4773_v31, 0.0  ;;  %v553_v47 = vsel %vm330_vm0, %v4776_v14, 0.0  ;;  %v4801_v31 = vld [vmem:[%s4396_s18 + $0x278] sm:$0xff]  ;;  %v4804_v14 = vld [vmem:[%s4396_s18 + $0x270] sm:$0xff] }
  0xa5   : > { %8171 = vst [vmem:[#allocation33_spill] sm:$0xff] %v4801_v31  ;;  %8172 = vst [vmem:[#allocation34_spill] sm:$0xff] %v4804_v14 }
  0xa6   : > { %551 = vadd.xlane.f32.xlu1 %v550_v55  ;;  %548 = vadd.xlane.f32.xlu0 %v547_v30 }
  0xa7   : > { %v4778_v15 = vpop.xlane.xlu1 %341  ;;  %v4780_v62 = vpop.xlane.xlu0 %335 }
  0xa8   : > { %8165 = vst [vmem:[#allocation27_spill] sm:$0xff] %v4778_v15  ;;  %8166 = vst [vmem:[#allocation28_spill] sm:$0xff] %v4780_v62  ;;  %v562_v15 = vsel %vm330_vm0, %v4787_v63, 0.0  ;;  %v559_v62 = vsel %vm330_vm0, %v4790_v46, 0.0  ;;  %v4815_v63 = vld [vmem:[%s4396_s18 + $0x288] sm:$0xff]  ;;  %v4818_v46 = vld [vmem:[%s4396_s18 + $0x280] sm:$0xff] }
  0xa9   : > { %8175 = vst [vmem:[#allocation37_spill] sm:$0xff] %v4815_v63  ;;  %8176 = vst [vmem:[#allocation38_spill] sm:$0xff] %v4818_v46 }
  0xaa   : > { %557 = vadd.xlane.f32.xlu1 %v556_v54  ;;  %554 = vadd.xlane.f32.xlu0 %v553_v47 }
  0xab   : > { %v4792_v55 = vpop.xlane.xlu1 %347  ;;  %v4794_v30 = vpop.xlane.xlu0 %344 }
  0xac   : > { %8169 = vst [vmem:[#allocation31_spill] sm:$0xff] %v4792_v55  ;;  %8170 = vst [vmem:[#allocation32_spill] sm:$0xff] %v4794_v30  ;;  %v568_v55 = vsel %vm330_vm0, %v4801_v31, 0.0  ;;  %v565_v30 = vsel %vm330_vm0, %v4804_v14, 0.0  ;;  %v4829_v31 = vld [vmem:[%s4396_s18 + $0x298] sm:$0xff]  ;;  %v4832_v14 = vld [vmem:[%s4396_s18 + $0x290] sm:$0xff] }
  0xad   : > { %8179 = vst [vmem:[#allocation41_spill] sm:$0xff] %v4829_v31  ;;  %8180 = vst [vmem:[#allocation42_spill] sm:$0xff] %v4832_v14 }
  0xae   : > { %563 = vadd.xlane.f32.xlu1 %v562_v15  ;;  %560 = vadd.xlane.f32.xlu0 %v559_v62 }
  0xaf   : > { %v4806_v54 = vpop.xlane.xlu1 %353  ;;  %v4808_v47 = vpop.xlane.xlu0 %350 }
  0xb0   : > { %8173 = vst [vmem:[#allocation35_spill] sm:$0xff] %v4806_v54  ;;  %8174 = vst [vmem:[#allocation36_spill] sm:$0xff] %v4808_v47  ;;  %v574_v54 = vsel %vm330_vm0, %v4815_v63, 0.0  ;;  %v571_v47 = vsel %vm330_vm0, %v4818_v46, 0.0  ;;  %v4843_v63 = vld [vmem:[%s4396_s18 + $0x2a8] sm:$0xff]  ;;  %v4846_v46 = vld [vmem:[%s4396_s18 + $0x2a0] sm:$0xff] }
  0xb1   : > { %8183 = vst [vmem:[#allocation45_spill] sm:$0xff] %v4843_v63  ;;  %8184 = vst [vmem:[#allocation46_spill] sm:$0xff] %v4846_v46 }
  0xb2   : > { %569 = vadd.xlane.f32.xlu1 %v568_v55  ;;  %566 = vadd.xlane.f32.xlu0 %v565_v30 }
  0xb3   : > { %v4820_v15 = vpop.xlane.xlu1 %359  ;;  %v4822_v62 = vpop.xlane.xlu0 %356 }
  0xb4   : > { %8177 = vst [vmem:[#allocation39_spill] sm:$0xff] %v4820_v15  ;;  %8178 = vst [vmem:[#allocation40_spill] sm:$0xff] %v4822_v62  ;;  %v580_v62 = vsel %vm330_vm0, %v4829_v31, 0.0  ;;  %v577_v15 = vsel %vm330_vm0, %v4832_v14, 0.0  ;;  %v4857_v31 = vld [vmem:[%s4396_s18 + $0x2b8] sm:$0xff]  ;;  %v4860_v14 = vld [vmem:[%s4396_s18 + $0x2b0] sm:$0xff] }
  0xb5   : > { %8187 = vst [vmem:[#allocation49_spill] sm:$0xff] %v4857_v31  ;;  %8188 = vst [vmem:[#allocation50_spill] sm:$0xff] %v4860_v14 }
  0xb6   : > { %575 = vadd.xlane.f32.xlu1 %v574_v54  ;;  %572 = vadd.xlane.f32.xlu0 %v571_v47 }
  0xb7   : > { %v4834_v55 = vpop.xlane.xlu1 %365  ;;  %v4836_v30 = vpop.xlane.xlu0 %362 }
  0xb8   : > { %8181 = vst [vmem:[#allocation43_spill] sm:$0xff] %v4834_v55  ;;  %8182 = vst [vmem:[#allocation44_spill] sm:$0xff] %v4836_v30  ;;  %v586_v30 = vsel %vm330_vm0, %v4843_v63, 0.0  ;;  %v583_v55 = vsel %vm330_vm0, %v4846_v46, 0.0  ;;  %v4871_v63 = vld [vmem:[%s4396_s18 + $0x2c8] sm:$0xff]  ;;  %v4874_v46 = vld [vmem:[%s4396_s18 + $0x2c0] sm:$0xff] }
  0xb9   : > { %8191 = vst [vmem:[#allocation53_spill] sm:$0xff] %v4871_v63  ;;  %8192 = vst [vmem:[#allocation54_spill] sm:$0xff] %v4874_v46 }
  0xba   : > { %581 = vadd.xlane.f32.xlu1 %v580_v62  ;;  %578 = vadd.xlane.f32.xlu0 %v577_v15 }
  0xbb   : > { %v4848_v54 = vpop.xlane.xlu1 %371  ;;  %v4850_v47 = vpop.xlane.xlu0 %368 }
  0xbc   : > { %8185 = vst [vmem:[#allocation47_spill] sm:$0xff] %v4848_v54  ;;  %8186 = vst [vmem:[#allocation48_spill] sm:$0xff] %v4850_v47  ;;  %v592_v47 = vsel %vm330_vm0, %v4857_v31, 0.0  ;;  %v589_v54 = vsel %vm330_vm0, %v4860_v14, 0.0  ;;  %v4885_v31 = vld [vmem:[%s4396_s18 + $0x2d8] sm:$0xff]  ;;  %v4888_v14 = vld [vmem:[%s4396_s18 + $0x2d0] sm:$0xff] }
  0xbd   : > { %8195 = vst [vmem:[#allocation57_spill] sm:$0xff] %v4885_v31  ;;  %8196 = vst [vmem:[#allocation58_spill] sm:$0xff] %v4888_v14 }
  0xbe   : > { %587 = vadd.xlane.f32.xlu1 %v586_v30  ;;  %584 = vadd.xlane.f32.xlu0 %v583_v55 }
  0xbf   : > { %v4862_v62 = vpop.xlane.xlu1 %377  ;;  %v4864_v15 = vpop.xlane.xlu0 %374 }
  0xc0   : > { %8189 = vst [vmem:[#allocation51_spill] sm:$0xff] %v4862_v62  ;;  %8190 = vst [vmem:[#allocation52_spill] sm:$0xff] %v4864_v15  ;;  %v598_v15 = vsel %vm330_vm0, %v4871_v63, 0.0  ;;  %v595_v62 = vsel %vm330_vm0, %v4874_v46, 0.0  ;;  %v4899_v63 = vld [vmem:[%s4396_s18 + $0x2e8] sm:$0xff]  ;;  %v4902_v46 = vld [vmem:[%s4396_s18 + $0x2e0] sm:$0xff] }
  0xc1   : > { %8199 = vst [vmem:[#allocation61_spill] sm:$0xff] %v4899_v63  ;;  %8200 = vst [vmem:[#allocation62_spill] sm:$0xff] %v4902_v46 }
  0xc2   : > { %593 = vadd.xlane.f32.xlu1 %v592_v47  ;;  %590 = vadd.xlane.f32.xlu0 %v589_v54 }
  0xc3   : > { %v4876_v30 = vpop.xlane.xlu1 %383  ;;  %v4878_v55 = vpop.xlane.xlu0 %380 }
  0xc4   : > { %8193 = vst [vmem:[#allocation55_spill] sm:$0xff] %v4876_v30  ;;  %8194 = vst [vmem:[#allocation56_spill] sm:$0xff] %v4878_v55  ;;  %v604_v55 = vsel %vm330_vm0, %v4885_v31, 0.0  ;;  %v601_v30 = vsel %vm330_vm0, %v4888_v14, 0.0  ;;  %v4913_v31 = vld [vmem:[%s4396_s18 + $0x2f8] sm:$0xff]  ;;  %v4916_v14 = vld [vmem:[%s4396_s18 + $0x2f0] sm:$0xff] }
  0xc5   : > { %8203 = vst [vmem:[#allocation65_spill] sm:$0xff] %v4913_v31  ;;  %8204 = vst [vmem:[#allocation66_spill] sm:$0xff] %v4916_v14 }
  0xc6   : > { %599 = vadd.xlane.f32.xlu1 %v598_v15  ;;  %596 = vadd.xlane.f32.xlu0 %v595_v62 }
  0xc7   : > { %v4890_v47 = vpop.xlane.xlu1 %389  ;;  %v4892_v54 = vpop.xlane.xlu0 %386 }
  0xc8   : > { %8197 = vst [vmem:[#allocation59_spill] sm:$0xff] %v4890_v47  ;;  %8198 = vst [vmem:[#allocation60_spill] sm:$0xff] %v4892_v54  ;;  %v610_v54 = vsel %vm330_vm0, %v4899_v63, 0.0  ;;  %v607_v47 = vsel %vm330_vm0, %v4902_v46, 0.0  ;;  %v4927_v63 = vld [vmem:[%s4396_s18 + $0x308] sm:$0xff]  ;;  %v4930_v46 = vld [vmem:[%s4396_s18 + $0x300] sm:$0xff] }
  0xc9   : > { %8207 = vst [vmem:[#allocation69_spill] sm:$0xff] %v4927_v63  ;;  %8208 = vst [vmem:[#allocation70_spill] sm:$0xff] %v4930_v46 }
  0xca   : > { %605 = vadd.xlane.f32.xlu1 %v604_v55  ;;  %602 = vadd.xlane.f32.xlu0 %v601_v30 }
  0xcb   : > { %v4904_v15 = vpop.xlane.xlu1 %395  ;;  %v4906_v62 = vpop.xlane.xlu0 %392 }
  0xcc   : > { %8201 = vst [vmem:[#allocation63_spill] sm:$0xff] %v4904_v15  ;;  %8202 = vst [vmem:[#allocation64_spill] sm:$0xff] %v4906_v62  ;;  %v616_v62 = vsel %vm330_vm0, %v4913_v31, 0.0  ;;  %v613_v15 = vsel %vm330_vm0, %v4916_v14, 0.0  ;;  %v4941_v31 = vld [vmem:[%s4396_s18 + $0x318] sm:$0xff]  ;;  %v4944_v14 = vld [vmem:[%s4396_s18 + $0x310] sm:$0xff] }
  0xcd   : > { %8211 = vst [vmem:[#allocation73_spill] sm:$0xff] %v4941_v31  ;;  %8212 = vst [vmem:[#allocation74_spill] sm:$0xff] %v4944_v14 }
  0xce   : > { %611 = vadd.xlane.f32.xlu1 %v610_v54  ;;  %608 = vadd.xlane.f32.xlu0 %v607_v47 }
  0xcf   : > { %v4918_v55 = vpop.xlane.xlu1 %401  ;;  %v4920_v30 = vpop.xlane.xlu0 %398 }
  0xd0   : > { %8205 = vst [vmem:[#allocation67_spill] sm:$0xff] %v4918_v55  ;;  %8206 = vst [vmem:[#allocation68_spill] sm:$0xff] %v4920_v30  ;;  %v622_v30 = vsel %vm330_vm0, %v4927_v63, 0.0  ;;  %v619_v55 = vsel %vm330_vm0, %v4930_v46, 0.0  ;;  %v4955_v63 = vld [vmem:[%s4396_s18 + $0x328] sm:$0xff]  ;;  %v4958_v46 = vld [vmem:[%s4396_s18 + $0x320] sm:$0xff] }
  0xd1   : > { %8215 = vst [vmem:[#allocation77_spill] sm:$0xff] %v4955_v63  ;;  %8216 = vst [vmem:[#allocation78_spill] sm:$0xff] %v4958_v46 }
  0xd2   : > { %617 = vadd.xlane.f32.xlu1 %v616_v62  ;;  %614 = vadd.xlane.f32.xlu0 %v613_v15 }
  0xd3   : > { %v4932_v54 = vpop.xlane.xlu1 %407  ;;  %v4934_v47 = vpop.xlane.xlu0 %404 }
  0xd4   : > { %8209 = vst [vmem:[#allocation71_spill] sm:$0xff] %v4932_v54  ;;  %8210 = vst [vmem:[#allocation72_spill] sm:$0xff] %v4934_v47  ;;  %v628_v47 = vsel %vm330_vm0, %v4941_v31, 0.0  ;;  %v625_v54 = vsel %vm330_vm0, %v4944_v14, 0.0  ;;  %v4969_v31 = vld [vmem:[%s4396_s18 + $0x338] sm:$0xff]  ;;  %v4972_v14 = vld [vmem:[%s4396_s18 + $0x330] sm:$0xff] }
  0xd5   : > { %8219 = vst [vmem:[#allocation81_spill] sm:$0xff] %v4969_v31  ;;  %8220 = vst [vmem:[#allocation82_spill] sm:$0xff] %v4972_v14 }
  0xd6   : > { %623 = vadd.xlane.f32.xlu1 %v622_v30  ;;  %620 = vadd.xlane.f32.xlu0 %v619_v55 }
  0xd7   : > { %v4946_v62 = vpop.xlane.xlu1 %413  ;;  %v4948_v15 = vpop.xlane.xlu0 %410 }
  0xd8   : > { %8213 = vst [vmem:[#allocation75_spill] sm:$0xff] %v4946_v62  ;;  %8214 = vst [vmem:[#allocation76_spill] sm:$0xff] %v4948_v15  ;;  %v634_v15 = vsel %vm330_vm0, %v4955_v63, 0.0  ;;  %v631_v62 = vsel %vm330_vm0, %v4958_v46, 0.0  ;;  %v4983_v63 = vld [vmem:[%s4396_s18 + $0x348] sm:$0xff]  ;;  %v4986_v46 = vld [vmem:[%s4396_s18 + $0x340] sm:$0xff] }
  0xd9   : > { %8223 = vst [vmem:[#allocation85_spill] sm:$0xff] %v4983_v63  ;;  %8224 = vst [vmem:[#allocation86_spill] sm:$0xff] %v4986_v46 }
  0xda   : > { %629 = vadd.xlane.f32.xlu1 %v628_v47  ;;  %626 = vadd.xlane.f32.xlu0 %v625_v54 }
  0xdb   : > { %v4960_v30 = vpop.xlane.xlu1 %419  ;;  %v4962_v55 = vpop.xlane.xlu0 %416 }
  0xdc   : > { %8217 = vst [vmem:[#allocation79_spill] sm:$0xff] %v4960_v30  ;;  %8218 = vst [vmem:[#allocation80_spill] sm:$0xff] %v4962_v55  ;;  %v640_v55 = vsel %vm330_vm0, %v4969_v31, 0.0  ;;  %v637_v30 = vsel %vm330_vm0, %v4972_v14, 0.0  ;;  %v4997_v31 = vld [vmem:[%s4396_s18 + $0x358] sm:$0xff]  ;;  %v5000_v14 = vld [vmem:[%s4396_s18 + $0x350] sm:$0xff] }
  0xdd   : > { %8227 = vst [vmem:[#allocation89_spill] sm:$0xff] %v4997_v31  ;;  %8228 = vst [vmem:[#allocation90_spill] sm:$0xff] %v5000_v14 }
  0xde   : > { %635 = vadd.xlane.f32.xlu1 %v634_v15  ;;  %632 = vadd.xlane.f32.xlu0 %v631_v62 }
  0xdf   : > { %v4974_v47 = vpop.xlane.xlu1 %425  ;;  %v4976_v54 = vpop.xlane.xlu0 %422 }
  0xe0   : > { %8221 = vst [vmem:[#allocation83_spill] sm:$0xff] %v4974_v47  ;;  %8222 = vst [vmem:[#allocation84_spill] sm:$0xff] %v4976_v54  ;;  %v646_v54 = vsel %vm330_vm0, %v4983_v63, 0.0  ;;  %v643_v47 = vsel %vm330_vm0, %v4986_v46, 0.0  ;;  %v5011_v63 = vld [vmem:[%s4396_s18 + $0x368] sm:$0xff]  ;;  %v5014_v46 = vld [vmem:[%s4396_s18 + $0x360] sm:$0xff] }
  0xe1   : > { %8231 = vst [vmem:[#allocation93_spill] sm:$0xff] %v5014_v46 }
  0xe2   : > { %641 = vadd.xlane.f32.xlu1 %v640_v55  ;;  %638 = vadd.xlane.f32.xlu0 %v637_v30 }
  0xe3   : > { %v4988_v15 = vpop.xlane.xlu1 %431  ;;  %v4990_v62 = vpop.xlane.xlu0 %428 }
  0xe4   : > { %8225 = vst [vmem:[#allocation87_spill] sm:$0xff] %v4988_v15  ;;  %8226 = vst [vmem:[#allocation88_spill] sm:$0xff] %v4990_v62  ;;  %v652_v62 = vsel %vm330_vm0, %v4997_v31, 0.0  ;;  %v649_v15 = vsel %vm330_vm0, %v5000_v14, 0.0  ;;  %v5028_v31 = vld [vmem:[%s4396_s18 + $0x370] sm:$0xff] }
  0xe5   : > { %8235 = vst [vmem:[#allocation97_spill] sm:$0xff] %v5028_v31 }
  0xe6   : > { %647 = vadd.xlane.f32.xlu1 %v646_v54  ;;  %644 = vadd.xlane.f32.xlu0 %v643_v47  ;;  %v658_v47 = vsel %vm330_vm0, %v5011_v63, 0.0 }
  0xe7   : > { %v5002_v55 = vpop.xlane.xlu1 %437  ;;  %v5004_v30 = vpop.xlane.xlu0 %434 }
  0xe8   : > { %8229 = vst [vmem:[#allocation91_spill] sm:$0xff] %v5002_v55  ;;  %8230 = vst [vmem:[#allocation92_spill] sm:$0xff] %v5004_v30  ;;  %v655_v30 = vsel %vm330_vm0, %v5014_v46, 0.0  ;;  %v5025_v55 = vld [vmem:[%s4396_s18 + $0x378] sm:$0xff]  ;;  %v667_v46 = vmul.f32 %v4402_v1, %v4402_v1 }
  0xe9   : > { %8234 = vst [vmem:[#allocation96_spill] sm:$0xff] %v5025_v55 }
  0xea   : > { %653 = vadd.xlane.f32.xlu1 %v652_v62  ;;  %650 = vadd.xlane.f32.xlu0 %v649_v15  ;;  %v664_v15 = vsel %vm330_vm0, %v5025_v55, 0.0  ;;  %v670_v55 = vmul.f32 %v4405_v2, %v4405_v2 }
  0xeb   : > { %v5016_v39 = vpop.xlane.xlu1 %443  ;;  %v5018_v54 = vpop.xlane.xlu0 %440 }
  0xec   : > { %8232 = vst [vmem:[#allocation94_spill] sm:$0xff] %v5016_v39  ;;  %8233 = vst [vmem:[#allocation95_spill] sm:$0xff] %v5018_v54  ;;  %v661_v54 = vsel %vm330_vm0, %v5028_v31, 0.0  ;;  %v668_v39 = vmul.f32 %v4412_v5, %v4412_v5  ;;  %v669_v31 = vmul.f32 %v4399_v0, %v4399_v0 }
  0xee   : > { %659 = vadd.xlane.f32.xlu1 %v658_v47  ;;  %656 = vadd.xlane.f32.xlu0 %v655_v30 }
  0xef   : > { %v5030_v14 = vpop.xlane.xlu1 %449  ;;  %v5032_v62 = vpop.xlane.xlu0 %446 }
  0xf0   : > { %8236 = vst [vmem:[#allocation98_spill] sm:$0xff] %v5030_v14  ;;  %8237 = vst [vmem:[#allocation99_spill] sm:$0xff] %v5032_v62  ;;  %v782_v62 = vsel %vm330_vm0, %v668_v39, 0.0  ;;  %v779_v14 = vsel %vm330_vm0, %v667_v46, 0.0  ;;  %v672_v39 = vmul.f32 %v4419_v8, %v4419_v8  ;;  %v671_v46 = vmul.f32 %v4422_v9, %v4422_v9 }
  0xf2   : > { %665 = vadd.xlane.f32.xlu1 %v664_v15  ;;  %662 = vadd.xlane.f32.xlu0 %v661_v54  ;;  %v788_v54 = vsel %vm330_vm0, %v670_v55, 0.0  ;;  %v785_v15 = vsel %vm330_vm0, %v669_v31, 0.0  ;;  %v674_v55 = vmul.f32 %v4429_v12, %v4429_v12  ;;  %v673_v31 = vmul.f32 %v4432_v13, %v4432_v13 }
  0xf3   : > { %v5042_v47 = vpop.xlane.xlu1 %455  ;;  %v5044_v30 = vpop.xlane.xlu0 %452 }
  0xf6   : > { %783 = vadd.xlane.f32.xlu1 %v782_v62  ;;  %780 = vadd.xlane.f32.xlu0 %v779_v14  ;;  %v794_v14 = vsel %vm330_vm0, %v672_v39, 0.0  ;;  %v791_v62 = vsel %vm330_vm0, %v671_v46, 0.0  ;;  %v676_v39 = vmul.f32 %v4439_v16, %v4439_v16  ;;  %v675_v46 = vmul.f32 %v4442_v17, %v4442_v17 }
  0xf7   : > { %v5052_v5 = vpop.xlane.xlu1 %461  ;;  %v5054_v1 = vpop.xlane.xlu0 %458 }
  0xf8   : > { %8238 = vst [vmem:[#allocation100_spill] sm:$0xff] %v5054_v1 }
  0xfa   : > { %789 = vadd.xlane.f32.xlu1 %v788_v54  ;;  %786 = vadd.xlane.f32.xlu0 %v785_v15  ;;  %v800_v54 = vsel %vm330_vm0, %v674_v55, 0.0  ;;  %v797_v15 = vsel %vm330_vm0, %v673_v31, 0.0  ;;  %v678_v55 = vmul.f32 %v4449_v20, %v4449_v20  ;;  %v677_v31 = vmul.f32 %v4452_v21, %v4452_v21 }
  0xfb   : > { %v5062_v2 = vpop.xlane.xlu1 %467  ;;  %v5064_v0 = vpop.xlane.xlu0 %464 }
  0xfc   : > { %8239 = vst [vmem:[#allocation101_spill] sm:$0xff] %v5064_v0 }
  0xfe   : > { %795 = vadd.xlane.f32.xlu1 %v794_v14  ;;  %792 = vadd.xlane.f32.xlu0 %v791_v62  ;;  %v806_v14 = vsel %vm330_vm0, %v676_v39, 0.0  ;;  %v803_v62 = vsel %vm330_vm0, %v675_v46, 0.0  ;;  %v680_v39 = vmul.f32 %v4459_v24, %v4459_v24  ;;  %v679_v46 = vmul.f32 %v4462_v25, %v4462_v25 }
  0xff   : > { %v5072_v8 = vpop.xlane.xlu1 %473  ;;  %v5074_v9 = vpop.xlane.xlu0 %470 }
 0x100   : > { %8240 = vst [vmem:[#allocation102_spill] sm:$0xff] %v5074_v9 }
 0x102   : > { %801 = vadd.xlane.f32.xlu1 %v800_v54  ;;  %798 = vadd.xlane.f32.xlu0 %v797_v15  ;;  %v812_v54 = vsel %vm330_vm0, %v678_v55, 0.0  ;;  %v809_v15 = vsel %vm330_vm0, %v677_v31, 0.0  ;;  %v682_v55 = vmul.f32 %v4469_v28, %v4469_v28  ;;  %v681_v31 = vmul.f32 %v4472_v29, %v4472_v29 }
 0x103   : > { %v5082_v12 = vpop.xlane.xlu1 %479  ;;  %v5084_v13 = vpop.xlane.xlu0 %476 }
 0x104   : > { %8241 = vst [vmem:[#allocation103_spill] sm:$0xff] %v5084_v13  ;;  %v8365_v13 = vld [vmem:[#allocation93_spill] sm:$0xff] }
 0x106   : > { %807 = vadd.xlane.f32.xlu1 %v806_v14  ;;  %804 = vadd.xlane.f32.xlu0 %v803_v62  ;;  %v818_v14 = vsel %vm330_vm0, %v680_v39, 0.0  ;;  %v815_v62 = vsel %vm330_vm0, %v679_v46, 0.0  ;;  %v684_v39 = vmul.f32 %v4479_v32, %v4479_v32  ;;  %v683_v46 = vmul.f32 %v4482_v33, %v4482_v33 }
 0x107   : > { %v5092_v16 = vpop.xlane.xlu1 %485  ;;  %v5094_v17 = vpop.xlane.xlu0 %482 }
 0x108   : > { %8242 = vst [vmem:[#allocation104_spill] sm:$0xff] %v5092_v16  ;;  %8243 = vst [vmem:[#allocation105_spill] sm:$0xff] %v5094_v17 }
 0x10a   : > { %813 = vadd.xlane.f32.xlu1 %v812_v54  ;;  %810 = vadd.xlane.f32.xlu0 %v809_v15  ;;  %v824_v54 = vsel %vm330_vm0, %v682_v55, 0.0  ;;  %v821_v15 = vsel %vm330_vm0, %v681_v31, 0.0  ;;  %v686_v55 = vmul.f32 %v4489_v36, %v4489_v36  ;;  %v685_v31 = vmul.f32 %v4492_v37, %v4492_v37 }
 0x10b   : > { %v5102_v20 = vpop.xlane.xlu1 %491  ;;  %v5104_v21 = vpop.xlane.xlu0 %488 }
 0x10c   : > { %8244 = vst [vmem:[#allocation106_spill] sm:$0xff] %v5102_v20  ;;  %8245 = vst [vmem:[#allocation107_spill] sm:$0xff] %v5104_v21 }
 0x10e   : > { %819 = vadd.xlane.f32.xlu1 %v818_v14  ;;  %816 = vadd.xlane.f32.xlu0 %v815_v62  ;;  %v830_v14 = vsel %vm330_vm0, %v684_v39, 0.0  ;;  %v827_v62 = vsel %vm330_vm0, %v683_v46, 0.0  ;;  %v688_v39 = vmul.f32 %v4499_v40, %v4499_v40  ;;  %v687_v46 = vmul.f32 %v4502_v41, %v4502_v41 }
 0x10f   : > { %v5112_v24 = vpop.xlane.xlu1 %497  ;;  %v5114_v25 = vpop.xlane.xlu0 %494 }
 0x110   : > { %8246 = vst [vmem:[#allocation108_spill] sm:$0xff] %v5112_v24  ;;  %8247 = vst [vmem:[#allocation109_spill] sm:$0xff] %v5114_v25 }
 0x112   : > { %825 = vadd.xlane.f32.xlu1 %v824_v54  ;;  %822 = vadd.xlane.f32.xlu0 %v821_v15  ;;  %v836_v54 = vsel %vm330_vm0, %v686_v55, 0.0  ;;  %v833_v15 = vsel %vm330_vm0, %v685_v31, 0.0  ;;  %v690_v55 = vmul.f32 %v4509_v44, %v4509_v44  ;;  %v689_v31 = vmul.f32 %v4512_v45, %v4512_v45 }
 0x113   : > { %v5122_v28 = vpop.xlane.xlu1 %503  ;;  %v5124_v29 = vpop.xlane.xlu0 %500 }
 0x114   : > { %8248 = vst [vmem:[#allocation110_spill] sm:$0xff] %v5122_v28  ;;  %8249 = vst [vmem:[#allocation111_spill] sm:$0xff] %v5124_v29  ;;  %v775_v28 = vmul.f32 %v8365_v13, %v8365_v13 }
 0x116   : > { %831 = vadd.xlane.f32.xlu1 %v830_v14  ;;  %828 = vadd.xlane.f32.xlu0 %v827_v62  ;;  %v842_v14 = vsel %vm330_vm0, %v688_v39, 0.0  ;;  %v839_v62 = vsel %vm330_vm0, %v687_v46, 0.0  ;;  %v692_v39 = vmul.f32 %v4519_v48, %v4519_v48  ;;  %v691_v46 = vmul.f32 %v4522_v49, %v4522_v49 }
 0x117   : > { %v5132_v32 = vpop.xlane.xlu1 %509  ;;  %v5134_v33 = vpop.xlane.xlu0 %506 }
 0x118   : > { %8250 = vst [vmem:[#allocation112_spill] sm:$0xff] %v5132_v32  ;;  %8251 = vst [vmem:[#allocation113_spill] sm:$0xff] %v5134_v33 }
 0x11a   : > { %837 = vadd.xlane.f32.xlu1 %v836_v54  ;;  %834 = vadd.xlane.f32.xlu0 %v833_v15  ;;  %v848_v54 = vsel %vm330_vm0, %v690_v55, 0.0  ;;  %v845_v15 = vsel %vm330_vm0, %v689_v31, 0.0  ;;  %v694_v55 = vmul.f32 %v4529_v52, %v4529_v52  ;;  %v693_v31 = vmul.f32 %v4532_v53, %v4532_v53 }
 0x11b   : > { %v5142_v36 = vpop.xlane.xlu1 %515  ;;  %v5144_v37 = vpop.xlane.xlu0 %512 }
 0x11c   : > { %8252 = vst [vmem:[#allocation114_spill] sm:$0xff] %v5142_v36  ;;  %8253 = vst [vmem:[#allocation115_spill] sm:$0xff] %v5144_v37  ;;  %v8360_v36 = vld [vmem:[#allocation90_spill] sm:$0xff] }
 0x11e   : > { %843 = vadd.xlane.f32.xlu1 %v842_v14  ;;  %840 = vadd.xlane.f32.xlu0 %v839_v62  ;;  %v854_v14 = vsel %vm330_vm0, %v692_v39, 0.0  ;;  %v851_v62 = vsel %vm330_vm0, %v691_v46, 0.0  ;;  %v696_v39 = vmul.f32 %v4539_v56, %v4539_v56  ;;  %v695_v46 = vmul.f32 %v4542_v57, %v4542_v57 }
 0x11f   : > { %v5152_v40 = vpop.xlane.xlu1 %521  ;;  %v5154_v41 = vpop.xlane.xlu0 %518 }
 0x120   : > { %8254 = vst [vmem:[#allocation116_spill] sm:$0xff] %v5152_v40  ;;  %8255 = vst [vmem:[#allocation117_spill] sm:$0xff] %v5154_v41 }
 0x122   : > { %849 = vadd.xlane.f32.xlu1 %v848_v54  ;;  %846 = vadd.xlane.f32.xlu0 %v845_v15  ;;  %v860_v54 = vsel %vm330_vm0, %v694_v55, 0.0  ;;  %v857_v15 = vsel %vm330_vm0, %v693_v31, 0.0  ;;  %v698_v55 = vmul.f32 %v4549_v60, %v4549_v60  ;;  %v697_v31 = vmul.f32 %v4552_v61, %v4552_v61 }
 0x123   : > { %v5162_v44 = vpop.xlane.xlu1 %527  ;;  %v5164_v45 = vpop.xlane.xlu0 %524 }
 0x124   : > { %8256 = vst [vmem:[#allocation118_spill] sm:$0xff] %v5162_v44  ;;  %8257 = vst [vmem:[#allocation119_spill] sm:$0xff] %v5164_v45  ;;  %v8355_v44 = vld [vmem:[#allocation85_spill] sm:$0xff] }
 0x126   : > { %855 = vadd.xlane.f32.xlu1 %v854_v14  ;;  %852 = vadd.xlane.f32.xlu0 %v851_v62  ;;  %v866_v14 = vsel %vm330_vm0, %v696_v39, 0.0  ;;  %v863_v62 = vsel %vm330_vm0, %v695_v46, 0.0  ;;  %v700_v39 = vmul.f32 %v4559_v3, %v4559_v3  ;;  %v699_v46 = vmul.f32 %v4562_v4, %v4562_v4 }
 0x127   : > { %v5172_v48 = vpop.xlane.xlu1 %533  ;;  %v5174_v49 = vpop.xlane.xlu0 %530 }
 0x128   : > { %8258 = vst [vmem:[#allocation120_spill] sm:$0xff] %v5172_v48  ;;  %8259 = vst [vmem:[#allocation121_spill] sm:$0xff] %v5174_v49  ;;  %v8353_v48 = vld [vmem:[#allocation81_spill] sm:$0xff] }
 0x12a   : > { %861 = vadd.xlane.f32.xlu1 %v860_v54  ;;  %858 = vadd.xlane.f32.xlu0 %v857_v15  ;;  %v872_v54 = vsel %vm330_vm0, %v698_v55, 0.0  ;;  %v869_v15 = vsel %vm330_vm0, %v697_v31, 0.0  ;;  %v702_v55 = vmul.f32 %v4569_v10, %v4569_v10  ;;  %v701_v31 = vmul.f32 %v4572_v11, %v4572_v11 }
 0x12b   : > { %v5182_v52 = vpop.xlane.xlu1 %539  ;;  %v5184_v53 = vpop.xlane.xlu0 %536 }
 0x12c   : > { %8260 = vst [vmem:[#allocation122_spill] sm:$0xff] %v5182_v52  ;;  %8261 = vst [vmem:[#allocation123_spill] sm:$0xff] %v5184_v53  ;;  %v8351_v52 = vld [vmem:[#allocation77_spill] sm:$0xff] }
 0x12e   : > { %867 = vadd.xlane.f32.xlu1 %v866_v14  ;;  %864 = vadd.xlane.f32.xlu0 %v863_v62  ;;  %v878_v14 = vsel %vm330_vm0, %v700_v39, 0.0  ;;  %v875_v62 = vsel %vm330_vm0, %v699_v46, 0.0  ;;  %v704_v39 = vmul.f32 %v4579_v18, %v4579_v18  ;;  %v703_v46 = vmul.f32 %v4582_v19, %v4582_v19 }
 0x12f   : > { %v5192_v56 = vpop.xlane.xlu1 %545  ;;  %v5194_v57 = vpop.xlane.xlu0 %542 }
 0x130   : > { %8262 = vst [vmem:[#allocation124_spill] sm:$0xff] %v5192_v56  ;;  %8263 = vst [vmem:[#allocation125_spill] sm:$0xff] %v5194_v57  ;;  %v8349_v56 = vld [vmem:[#allocation73_spill] sm:$0xff] }
 0x132   : > { %873 = vadd.xlane.f32.xlu1 %v872_v54  ;;  %870 = vadd.xlane.f32.xlu0 %v869_v15  ;;  %v884_v54 = vsel %vm330_vm0, %v702_v55, 0.0  ;;  %v881_v15 = vsel %vm330_vm0, %v701_v31, 0.0  ;;  %v706_v55 = vmul.f32 %v4589_v26, %v4589_v26  ;;  %v705_v31 = vmul.f32 %v4592_v27, %v4592_v27 }
 0x133   : > { %v5202_v60 = vpop.xlane.xlu1 %551  ;;  %v5204_v61 = vpop.xlane.xlu0 %548 }
 0x134   : > { %8264 = vst [vmem:[#allocation126_spill] sm:$0xff] %v5202_v60  ;;  %8265 = vst [vmem:[#allocation127_spill] sm:$0xff] %v5204_v61  ;;  %v8347_v60 = vld [vmem:[#allocation69_spill] sm:$0xff] }
 0x136   : > { %879 = vadd.xlane.f32.xlu1 %v878_v14  ;;  %876 = vadd.xlane.f32.xlu0 %v875_v62  ;;  %v890_v14 = vsel %vm330_vm0, %v704_v39, 0.0  ;;  %v887_v62 = vsel %vm330_vm0, %v703_v46, 0.0  ;;  %v708_v39 = vmul.f32 %v4599_v34, %v4599_v34  ;;  %v707_v46 = vmul.f32 %v4602_v35, %v4602_v35 }
 0x137   : > { %v5212_v3 = vpop.xlane.xlu1 %557  ;;  %v5214_v4 = vpop.xlane.xlu0 %554 }
 0x138   : > { %8266 = vst [vmem:[#allocation128_spill] sm:$0xff] %v5212_v3  ;;  %8267 = vst [vmem:[#allocation129_spill] sm:$0xff] %v5214_v4  ;;  %v8345_v3 = vld [vmem:[#allocation65_spill] sm:$0xff] }
 0x13a   : > { %885 = vadd.xlane.f32.xlu1 %v884_v54  ;;  %882 = vadd.xlane.f32.xlu0 %v881_v15  ;;  %v896_v54 = vsel %vm330_vm0, %v706_v55, 0.0  ;;  %v893_v15 = vsel %vm330_vm0, %v705_v31, 0.0  ;;  %v710_v55 = vmul.f32 %v4609_v42, %v4609_v42  ;;  %v709_v31 = vmul.f32 %v4612_v43, %v4612_v43 }
 0x13b   : > { %v5222_v10 = vpop.xlane.xlu1 %563  ;;  %v5224_v11 = vpop.xlane.xlu0 %560 }
 0x13c   : > { %8268 = vst [vmem:[#allocation130_spill] sm:$0xff] %v5222_v10  ;;  %8269 = vst [vmem:[#allocation131_spill] sm:$0xff] %v5224_v11  ;;  %v8343_v10 = vld [vmem:[#allocation61_spill] sm:$0xff] }
 0x13e   : > { %891 = vadd.xlane.f32.xlu1 %v890_v14  ;;  %888 = vadd.xlane.f32.xlu0 %v887_v62  ;;  %v902_v14 = vsel %vm330_vm0, %v708_v39, 0.0  ;;  %v899_v62 = vsel %vm330_vm0, %v707_v46, 0.0  ;;  %v712_v39 = vmul.f32 %v4619_v50, %v4619_v50  ;;  %v711_v46 = vmul.f32 %v4622_v51, %v4622_v51 }
 0x13f   : > { %v5232_v18 = vpop.xlane.xlu1 %569  ;;  %v5234_v19 = vpop.xlane.xlu0 %566 }
 0x140   : > { %8270 = vst [vmem:[#allocation132_spill] sm:$0xff] %v5232_v18  ;;  %8271 = vst [vmem:[#allocation133_spill] sm:$0xff] %v5234_v19  ;;  %v8341_v18 = vld [vmem:[#allocation57_spill] sm:$0xff] }
 0x142   : > { %897 = vadd.xlane.f32.xlu1 %v896_v54  ;;  %894 = vadd.xlane.f32.xlu0 %v893_v15  ;;  %v908_v54 = vsel %vm330_vm0, %v710_v55, 0.0  ;;  %v905_v15 = vsel %vm330_vm0, %v709_v31, 0.0  ;;  %v714_v55 = vmul.f32 %v4629_v58, %v4629_v58  ;;  %v713_v31 = vmul.f32 %v4632_v59, %v4632_v59 }
 0x143   : > { %v5242_v26 = vpop.xlane.xlu1 %575  ;;  %v5244_v27 = vpop.xlane.xlu0 %572 }
 0x144   : > { %8272 = vst [vmem:[#allocation134_spill] sm:$0xff] %v5242_v26  ;;  %8273 = vst [vmem:[#allocation135_spill] sm:$0xff] %v5244_v27  ;;  %v8339_v26 = vld [vmem:[#allocation53_spill] sm:$0xff] }
 0x146   : > { %903 = vadd.xlane.f32.xlu1 %v902_v14  ;;  %900 = vadd.xlane.f32.xlu0 %v899_v62  ;;  %v914_v14 = vsel %vm330_vm0, %v712_v39, 0.0  ;;  %v911_v62 = vsel %vm330_vm0, %v711_v46, 0.0  ;;  %v716_v39 = vmul.f32 %v4639_v6, %v4639_v6  ;;  %v715_v46 = vmul.f32 %v4642_v7, %v4642_v7 }
 0x147   : > { %v5252_v34 = vpop.xlane.xlu1 %581  ;;  %v5254_v35 = vpop.xlane.xlu0 %578 }
 0x148   : > { %8274 = vst [vmem:[#allocation136_spill] sm:$0xff] %v5252_v34  ;;  %8275 = vst [vmem:[#allocation137_spill] sm:$0xff] %v5254_v35  ;;  %v8337_v34 = vld [vmem:[#allocation49_spill] sm:$0xff] }
 0x14a   : > { %909 = vadd.xlane.f32.xlu1 %v908_v54  ;;  %906 = vadd.xlane.f32.xlu0 %v905_v15  ;;  %v920_v54 = vsel %vm330_vm0, %v714_v55, 0.0  ;;  %v917_v15 = vsel %vm330_vm0, %v713_v31, 0.0  ;;  %v718_v55 = vmul.f32 %v4649_v22, %v4649_v22  ;;  %v717_v31 = vmul.f32 %v4652_v23, %v4652_v23 }
 0x14b   : > { %v5262_v42 = vpop.xlane.xlu1 %587  ;;  %v5264_v43 = vpop.xlane.xlu0 %584 }
 0x14c   : > { %8276 = vst [vmem:[#allocation138_spill] sm:$0xff] %v5262_v42  ;;  %8277 = vst [vmem:[#allocation139_spill] sm:$0xff] %v5264_v43  ;;  %v8335_v42 = vld [vmem:[#allocation45_spill] sm:$0xff] }
 0x14e   : > { %915 = vadd.xlane.f32.xlu1 %v914_v14  ;;  %912 = vadd.xlane.f32.xlu0 %v911_v62  ;;  %v926_v14 = vsel %vm330_vm0, %v716_v39, 0.0  ;;  %v923_v62 = vsel %vm330_vm0, %v715_v46, 0.0  ;;  %v720_v39 = vmul.f32 %v4659_v38, %v4659_v38  ;;  %v8284_v46 = vld [vmem:[#allocation2_spill] sm:$0xff] }
 0x14f   : > { %v5272_v50 = vpop.xlane.xlu1 %593  ;;  %v5274_v51 = vpop.xlane.xlu0 %590 }
 0x150   : > { %8278 = vst [vmem:[#allocation140_spill] sm:$0xff] %v5272_v50  ;;  %8279 = vst [vmem:[#allocation141_spill] sm:$0xff] %v5274_v51  ;;  %v8333_v50 = vld [vmem:[#allocation41_spill] sm:$0xff] }
 0x152   : > { %921 = vadd.xlane.f32.xlu1 %v920_v54  ;;  %918 = vadd.xlane.f32.xlu0 %v917_v15  ;;  %v932_v54 = vsel %vm330_vm0, %v718_v55, 0.0  ;;  %v929_v15 = vsel %vm330_vm0, %v717_v31, 0.0  ;;  %v8288_v31 = vld [vmem:[#allocation4_spill] sm:$0xff] }
 0x153   : > { %v5282_v58 = vpop.xlane.xlu1 %599  ;;  %v5284_v59 = vpop.xlane.xlu0 %596  ;;  %v721_v51 = vmul.f32 %v8288_v31, %v8288_v31 }
 0x154   : > { %8280 = vst [vmem:[#allocation142_spill] sm:$0xff] %v5282_v58  ;;  %8281 = vst [vmem:[#allocation143_spill] sm:$0xff] %v5284_v59  ;;  %v719_v59 = vmul.f32 %v8284_v46, %v8284_v46  ;;  %v8331_v58 = vld [vmem:[#allocation37_spill] sm:$0xff] }
 0x155   : > { %v941_v46 = vsel %vm330_vm0, %v721_v51, 0.0  ;;  %v8296_v51 = vld [vmem:[#allocation8_spill] sm:$0xff] }
 0x156   : > { %927 = vadd.xlane.f32.xlu1 %v926_v14  ;;  %924 = vadd.xlane.f32.xlu0 %v923_v62  ;;  %v938_v14 = vsel %vm330_vm0, %v720_v39, 0.0  ;;  %v935_v62 = vsel %vm330_vm0, %v719_v59, 0.0  ;;  %v8292_v59 = vld [vmem:[#allocation6_spill] sm:$0xff] }
 0x157   : > { %v5292_v6 = vpop.xlane.xlu1 %605  ;;  %v5294_v7 = vpop.xlane.xlu0 %602  ;;  %v723_v43 = vmul.f32 %v8292_v59, %v8292_v59 }
 0x158   : > { %8282 = vst [vmem:[#allocation144_spill] sm:$0xff] %v5292_v6  ;;  %8283 = vst [vmem:[#allocation145_spill] sm:$0xff] %v5294_v7  ;;  %v8287_v7 = vld [vmem:[#allocation3_spill] sm:$0xff]  ;;  %v8329_v6 = vld [vmem:[#allocation33_spill] sm:$0xff] }
 0x159   : > { %v722_v55 = vmul.f32 %v8287_v7, %v8287_v7  ;;  %v947_v31 = vsel %vm330_vm0, %v723_v43, 0.0  ;;  %v8299_v43 = vld [vmem:[#allocation9_spill] sm:$0xff] }
 0x15a   : > { %933 = vadd.xlane.f32.xlu1 %v932_v54  ;;  %930 = vadd.xlane.f32.xlu0 %v929_v15 }
 0x15b   : > { %v5302_v22 = vpop.xlane.xlu1 %611  ;;  %v5304_v23 = vpop.xlane.xlu0 %608  ;;  %v944_v15 = vsel %vm330_vm0, %v722_v55, 0.0 }
 0x15c   : > { %8285 = vst [vmem:[#allocation2_spill] sm:$0xff] %v5302_v22  ;;  %8286 = vst [vmem:[#allocation146_spill] sm:$0xff] %v5304_v23  ;;  %v8291_v23 = vld [vmem:[#allocation5_spill] sm:$0xff] }
 0x15d   : > { %v724_v39 = vmul.f32 %v8291_v23, %v8291_v23  ;;  %v4361_v23 = vmov 0   ;;  %v8327_v22 = vld [vmem:[#allocation29_spill] sm:$0xff] }
 0x15e   : > { %939 = vadd.xlane.f32.xlu1 %v938_v14  ;;  %936 = vadd.xlane.f32.xlu0 %v935_v62 }
 0x15f   : > { %v5312_v38 = vpop.xlane.xlu1 %617  ;;  %v5314_v54 = vpop.xlane.xlu0 %614  ;;  %v950_v62 = vsel %vm330_vm0, %v724_v39, 0.0  ;;  %4016 = vset.pattern.permute.xlu1 %v4361_v23  ;;  %4015 = vset.pattern.permute.xlu0 %v4361_v23 }
 0x160   : > { %8289 = vst [vmem:[#allocation3_spill] sm:$0xff] %v5312_v38  ;;  %8290 = vst [vmem:[#allocation4_spill] sm:$0xff] %v5314_v54  ;;  %v8295_v54 = vld [vmem:[#allocation7_spill] sm:$0xff]  ;;  %v725_v38 = vmul.f32 %v8296_v51, %v8296_v51 }
 0x161   : > { %v726_v55 = vmul.f32 %v8295_v54, %v8295_v54  ;;  %v8300_v54 = vld [vmem:[#allocation10_spill] sm:$0xff] }
 0x162   : > { %945 = vadd.xlane.f32.xlu1 %v944_v15  ;;  %942 = vadd.xlane.f32.xlu0 %v941_v46  ;;  %v953_v39 = vsel %vm330_vm0, %v725_v38, 0.0  ;;  %v8304_v38 = vld [vmem:[#allocation12_spill] sm:$0xff] }
 0x163   : > { %v5322_v7 = vpop.xlane.xlu1 %623  ;;  %v5324_v14 = vpop.xlane.xlu0 %620  ;;  %v956_v59 = vsel %vm330_vm0, %v726_v55, 0.0 }
 0x164   : > { %8293 = vst [vmem:[#allocation5_spill] sm:$0xff] %v5322_v7  ;;  %8294 = vst [vmem:[#allocation6_spill] sm:$0xff] %v5324_v14  ;;  %v728_v14 = vmul.f32 %v8299_v43, %v8299_v43  ;;  %v727_v7 = vmul.f32 %v8300_v54, %v8300_v54 }
 0x166   : > { %951 = vadd.xlane.f32.xlu1 %v950_v62  ;;  %948 = vadd.xlane.f32.xlu0 %v947_v31  ;;  %v962_v31 = vsel %vm330_vm0, %v728_v14, 0.0  ;;  %v959_v23 = vsel %vm330_vm0, %v727_v7, 0.0  ;;  %v8308_v7 = vld [vmem:[#allocation14_spill] sm:$0xff] }
 0x167   : > { %v5332_v15 = vpop.xlane.xlu1 %629  ;;  %v5334_v46 = vpop.xlane.xlu0 %626 }
 0x168   : > { %8297 = vst [vmem:[#allocation7_spill] sm:$0xff] %v5332_v15  ;;  %8298 = vst [vmem:[#allocation8_spill] sm:$0xff] %v5334_v46  ;;  %v8303_v46 = vld [vmem:[#allocation11_spill] sm:$0xff]  ;;  %v729_v15 = vmul.f32 %v8304_v38, %v8304_v38 }
 0x169   : > { %v730_v55 = vmul.f32 %v8303_v46, %v8303_v46 }
 0x16a   : > { %957 = vadd.xlane.f32.xlu1 %v956_v59  ;;  %954 = vadd.xlane.f32.xlu0 %v953_v39  ;;  %v965_v54 = vsel %vm330_vm0, %v729_v15, 0.0  ;;  %v8312_v15 = vld [vmem:[#allocation16_spill] sm:$0xff] }
 0x16b   : > { %v5342_v51 = vpop.xlane.xlu1 %635  ;;  %v5344_v62 = vpop.xlane.xlu0 %632  ;;  %v968_v39 = vsel %vm330_vm0, %v730_v55, 0.0 }
 0x16c   : > { %8301 = vst [vmem:[#allocation9_spill] sm:$0xff] %v5342_v51  ;;  %8302 = vst [vmem:[#allocation10_spill] sm:$0xff] %v5344_v62  ;;  %v8307_v62 = vld [vmem:[#allocation13_spill] sm:$0xff]  ;;  %v731_v51 = vmul.f32 %v8308_v7, %v8308_v7 }
 0x16d   : > { %v732_v14 = vmul.f32 %v8307_v62, %v8307_v62 }
 0x16e   : > { %963 = vadd.xlane.f32.xlu1 %v962_v31  ;;  %960 = vadd.xlane.f32.xlu0 %v959_v23  ;;  %v971_v38 = vsel %vm330_vm0, %v731_v51, 0.0  ;;  %v8316_v51 = vld [vmem:[#allocation18_spill] sm:$0xff] }
 0x16f   : > { %v5352_v43 = vpop.xlane.xlu1 %641  ;;  %v5354_v59 = vpop.xlane.xlu0 %638  ;;  %v974_v23 = vsel %vm330_vm0, %v732_v14, 0.0 }
 0x170   : > { %8305 = vst [vmem:[#allocation11_spill] sm:$0xff] %v5352_v43  ;;  %8306 = vst [vmem:[#allocation12_spill] sm:$0xff] %v5354_v59  ;;  %v8311_v59 = vld [vmem:[#allocation15_spill] sm:$0xff]  ;;  %v733_v43 = vmul.f32 %v8312_v15, %v8312_v15 }
 0x171   : > { %v734_v55 = vmul.f32 %v8311_v59, %v8311_v59 }
 0x172   : > { %969 = vadd.xlane.f32.xlu1 %v968_v39  ;;  %966 = vadd.xlane.f32.xlu0 %v965_v54  ;;  %v977_v7 = vsel %vm330_vm0, %v733_v43, 0.0  ;;  %v8320_v43 = vld [vmem:[#allocation20_spill] sm:$0xff] }
 0x173   : > { %v5362_v46 = vpop.xlane.xlu1 %647  ;;  %v5364_v31 = vpop.xlane.xlu0 %644  ;;  %v980_v54 = vsel %vm330_vm0, %v734_v55, 0.0 }
 0x174   : > { %8309 = vst [vmem:[#allocation13_spill] sm:$0xff] %v5362_v46  ;;  %8310 = vst [vmem:[#allocation14_spill] sm:$0xff] %v5364_v31  ;;  %v8315_v31 = vld [vmem:[#allocation17_spill] sm:$0xff]  ;;  %v735_v46 = vmul.f32 %v8316_v51, %v8316_v51 }
 0x175   : > { %v736_v14 = vmul.f32 %v8315_v31, %v8315_v31 }
 0x176   : > { %975 = vadd.xlane.f32.xlu1 %v974_v23  ;;  %972 = vadd.xlane.f32.xlu0 %v971_v38  ;;  %v983_v15 = vsel %vm330_vm0, %v735_v46, 0.0  ;;  %v8324_v46 = vld [vmem:[#allocation22_spill] sm:$0xff] }
 0x177   : > { %v5372_v62 = vpop.xlane.xlu1 %653  ;;  %v5374_v39 = vpop.xlane.xlu0 %650  ;;  %v986_v38 = vsel %vm330_vm0, %v736_v14, 0.0 }
 0x178   : > { %8313 = vst [vmem:[#allocation15_spill] sm:$0xff] %v5372_v62  ;;  %8314 = vst [vmem:[#allocation16_spill] sm:$0xff] %v5374_v39  ;;  %v8319_v39 = vld [vmem:[#allocation19_spill] sm:$0xff]  ;;  %v737_v62 = vmul.f32 %v8320_v43, %v8320_v43 }
 0x179   : > { %v738_v55 = vmul.f32 %v8319_v39, %v8319_v39 }
 0x17a   : > { %981 = vadd.xlane.f32.xlu1 %v980_v54  ;;  %978 = vadd.xlane.f32.xlu0 %v977_v7  ;;  %v989_v51 = vsel %vm330_vm0, %v737_v62, 0.0  ;;  %v8326_v62 = vld [vmem:[#allocation26_spill] sm:$0xff] }
 0x17b   : > { %v5382_v59 = vpop.xlane.xlu1 %659  ;;  %v5384_v23 = vpop.xlane.xlu0 %656  ;;  %v992_v7 = vsel %vm330_vm0, %v738_v55, 0.0 }
 0x17c   : > { %8317 = vst [vmem:[#allocation17_spill] sm:$0xff] %v5382_v59  ;;  %8318 = vst [vmem:[#allocation18_spill] sm:$0xff] %v5384_v23  ;;  %v8323_v23 = vld [vmem:[#allocation21_spill] sm:$0xff]  ;;  %v739_v59 = vmul.f32 %v8324_v46, %v8324_v46 }
 0x17d   : > { %v740_v14 = vmul.f32 %v8323_v23, %v8323_v23 }
 0x17e   : > { %987 = vadd.xlane.f32.xlu1 %v986_v38  ;;  %984 = vadd.xlane.f32.xlu0 %v983_v15  ;;  %v995_v43 = vsel %vm330_vm0, %v739_v59, 0.0  ;;  %v8328_v59 = vld [vmem:[#allocation30_spill] sm:$0xff] }
 0x17f   : > { %v5392_v31 = vpop.xlane.xlu1 %665  ;;  %v5394_v54 = vpop.xlane.xlu0 %662  ;;  %v998_v15 = vsel %vm330_vm0, %v740_v14, 0.0  ;;  %v744_v14 = vmul.f32 %v8327_v22, %v8327_v22  ;;  %v743_v35 = vmul.f32 %v8328_v59, %v8328_v59 }
 0x180   : > { %8321 = vst [vmem:[#allocation19_spill] sm:$0xff] %v5392_v31  ;;  %8322 = vst [vmem:[#allocation20_spill] sm:$0xff] %v5394_v54  ;;  %v8325_v54 = vld [vmem:[#allocation25_spill] sm:$0xff]  ;;  %v741_v31 = vmul.f32 %v8326_v62, %v8326_v62 }
 0x181   : > { %v742_v55 = vmul.f32 %v8325_v54, %v8325_v54  ;;  %v1007_v62 = vsel %vm330_vm0, %v743_v35, 0.0  ;;  %v8332_v35 = vld [vmem:[#allocation38_spill] sm:$0xff] }
 0x182   : > { %993 = vadd.xlane.f32.xlu1 %v992_v7  ;;  %990 = vadd.xlane.f32.xlu0 %v989_v51  ;;  %v1001_v46 = vsel %vm330_vm0, %v741_v31, 0.0  ;;  %v8330_v31 = vld [vmem:[#allocation34_spill] sm:$0xff]  ;;  %v747_v19 = vmul.f32 %v8332_v35, %v8332_v35 }
 0x183   : > { %v5402_v39 = vpop.xlane.xlu1 %783  ;;  %v5404_v38 = vpop.xlane.xlu0 %780  ;;  %v1004_v51 = vsel %vm330_vm0, %v742_v55, 0.0  ;;  %v746_v55 = vmul.f32 %v8329_v6, %v8329_v6  ;;  %v745_v27 = vmul.f32 %v8330_v31, %v8330_v31 }
 0x184   : > { %v1019_v31 = vsel %vm330_vm0, %v747_v19, 0.0  ;;  %v8336_v19 = vld [vmem:[#allocation46_spill] sm:$0xff] }
 0x185   : > { %v1013_v59 = vsel %vm330_vm0, %v745_v27, 0.0  ;;  %v8334_v27 = vld [vmem:[#allocation42_spill] sm:$0xff]  ;;  %v751_v4 = vmul.f32 %v8336_v19, %v8336_v19 }
 0x186   : > { %999 = vadd.xlane.f32.xlu1 %v998_v15  ;;  %996 = vadd.xlane.f32.xlu0 %v995_v43  ;;  %v1010_v43 = vsel %vm330_vm0, %v744_v14, 0.0  ;;  %v748_v14 = vmul.f32 %v8331_v58, %v8331_v58  ;;  %v749_v11 = vmul.f32 %v8334_v27, %v8334_v27 }
 0x187   : > { %v5412_v23 = vpop.xlane.xlu1 %789  ;;  %v5414_v7 = vpop.xlane.xlu0 %786  ;;  %v1031_v27 = vsel %vm330_vm0, %v751_v4, 0.0  ;;  %v8340_v4 = vld [vmem:[#allocation54_spill] sm:$0xff] }
 0x188   : > { %v1025_v35 = vsel %vm330_vm0, %v749_v11, 0.0  ;;  %v8338_v11 = vld [vmem:[#allocation50_spill] sm:$0xff]  ;;  %v755_v57 = vmul.f32 %v8340_v4, %v8340_v4  ;;  %v1229_v32 = vmul.f32 0.020408163, %v5414_v7  ;;  %v1227_v7 = vmul.f32 0.020408163, %v5404_v38 }
 0x189   : > { %v753_v61 = vmul.f32 %v8338_v11, %v8338_v11  ;;  %v1103_v38 = vsel %vm330_vm0, %v775_v28, 0.0 }
 0x18a   : > { %1005 = vadd.xlane.f32.xlu1 %v1004_v51  ;;  %1002 = vadd.xlane.f32.xlu0 %v1001_v46  ;;  %v1016_v46 = vsel %vm330_vm0, %v746_v55, 0.0  ;;  %v750_v55 = vmul.f32 %v8333_v50, %v8333_v50  ;;  %v1043_v11 = vsel %vm330_vm0, %v755_v57, 0.0  ;;  %v8344_v57 = vld [vmem:[#allocation62_spill] sm:$0xff] }
 0x18b   : > { %v5422_v54 = vpop.xlane.xlu1 %795  ;;  %v5424_v15 = vpop.xlane.xlu0 %792  ;;  %v1037_v19 = vsel %vm330_vm0, %v753_v61, 0.0  ;;  %v8342_v61 = vld [vmem:[#allocation58_spill] sm:$0xff]  ;;  %v759_v49 = vmul.f32 %v8344_v57, %v8344_v57 }
 0x18c   : > { %v757_v53 = vmul.f32 %v8342_v61, %v8342_v61 }
 0x18d   : > { %v1055_v61 = vsel %vm330_vm0, %v759_v49, 0.0  ;;  %v8348_v49 = vld [vmem:[#allocation70_spill] sm:$0xff] }
 0x18e   : > { %1011 = vadd.xlane.f32.xlu1 %v1010_v43  ;;  %1008 = vadd.xlane.f32.xlu0 %v1007_v62  ;;  %v1022_v62 = vsel %vm330_vm0, %v748_v14, 0.0  ;;  %v752_v14 = vmul.f32 %v8335_v42, %v8335_v42  ;;  %v1049_v4 = vsel %vm330_vm0, %v757_v53, 0.0  ;;  %v8346_v53 = vld [vmem:[#allocation66_spill] sm:$0xff]  ;;  %v763_v41 = vmul.f32 %v8348_v49, %v8348_v49 }
 0x18f   : > { %v5432_v22 = vpop.xlane.xlu1 %801  ;;  %v5434_v51 = vpop.xlane.xlu0 %798  ;;  %v761_v45 = vmul.f32 %v8346_v53, %v8346_v53 }
 0x190   : > { %v1067_v53 = vsel %vm330_vm0, %v763_v41, 0.0  ;;  %v8352_v41 = vld [vmem:[#allocation78_spill] sm:$0xff] }
 0x191   : > { %v1061_v57 = vsel %vm330_vm0, %v761_v45, 0.0  ;;  %v8350_v45 = vld [vmem:[#allocation74_spill] sm:$0xff]  ;;  %v767_v33 = vmul.f32 %v8352_v41, %v8352_v41 }
 0x192   : > { %1017 = vadd.xlane.f32.xlu1 %v1016_v46  ;;  %1014 = vadd.xlane.f32.xlu0 %v1013_v59  ;;  %v1028_v59 = vsel %vm330_vm0, %v750_v55, 0.0  ;;  %v754_v55 = vmul.f32 %v8337_v34, %v8337_v34  ;;  %v765_v37 = vmul.f32 %v8350_v45, %v8350_v45 }
 0x193   : > { %v5442_v6 = vpop.xlane.xlu1 %807  ;;  %v5444_v43 = vpop.xlane.xlu0 %804  ;;  %v1079_v45 = vsel %vm330_vm0, %v767_v33, 0.0  ;;  %v8356_v33 = vld [vmem:[#allocation86_spill] sm:$0xff] }
 0x194   : > { %v1073_v49 = vsel %vm330_vm0, %v765_v37, 0.0  ;;  %v8354_v37 = vld [vmem:[#allocation82_spill] sm:$0xff]  ;;  %v771_v25 = vmul.f32 %v8356_v33, %v8356_v33  ;;  %v773_v33 = vmul.f32 %v8360_v36, %v8360_v36 }
 0x195   : > { %v769_v29 = vmul.f32 %v8354_v37, %v8354_v37  ;;  %v1228_v37 = vmul.f32 0.020408163, %v5402_v39 }
 0x196   : > { %1023 = vadd.xlane.f32.xlu1 %v1022_v62  ;;  %1020 = vadd.xlane.f32.xlu0 %v1019_v31  ;;  %v1034_v31 = vsel %vm330_vm0, %v752_v14, 0.0  ;;  %v756_v14 = vmul.f32 %v8339_v26, %v8339_v26 }
 0x197   : > { %v5452_v58 = vpop.xlane.xlu1 %813  ;;  %v5454_v46 = vpop.xlane.xlu0 %810  ;;  %v1085_v41 = vsel %vm330_vm0, %v769_v29, 0.0 }
 0x19a   : > { %1029 = vadd.xlane.f32.xlu1 %v1028_v59  ;;  %1026 = vadd.xlane.f32.xlu0 %v1025_v35  ;;  %v1040_v35 = vsel %vm330_vm0, %v754_v55, 0.0  ;;  %v758_v55 = vmul.f32 %v8341_v18, %v8341_v18 }
 0x19b   : > { %v5462_v50 = vpop.xlane.xlu1 %819  ;;  %v5464_v62 = vpop.xlane.xlu0 %816 }
 0x19e   : > { %1035 = vadd.xlane.f32.xlu1 %v1034_v31  ;;  %1032 = vadd.xlane.f32.xlu0 %v1031_v27  ;;  %v1046_v27 = vsel %vm330_vm0, %v756_v14, 0.0  ;;  %v760_v14 = vmul.f32 %v8343_v10, %v8343_v10 }
 0x19f   : > { %v5472_v42 = vpop.xlane.xlu1 %825  ;;  %v5474_v59 = vpop.xlane.xlu0 %822 }
 0x1a2   : > { %1041 = vadd.xlane.f32.xlu1 %v1040_v35  ;;  %1038 = vadd.xlane.f32.xlu0 %v1037_v19  ;;  %v1052_v19 = vsel %vm330_vm0, %v758_v55, 0.0  ;;  %v762_v55 = vmul.f32 %v8345_v3, %v8345_v3 }
 0x1a3   : > { %v5482_v34 = vpop.xlane.xlu1 %831  ;;  %v5484_v31 = vpop.xlane.xlu0 %828 }
 0x1a6   : > { %1047 = vadd.xlane.f32.xlu1 %v1046_v27  ;;  %1044 = vadd.xlane.f32.xlu0 %v1043_v11  ;;  %v1058_v11 = vsel %vm330_vm0, %v760_v14, 0.0  ;;  %v764_v14 = vmul.f32 %v8347_v60, %v8347_v60 }
 0x1a7   : > { %v5492_v26 = vpop.xlane.xlu1 %837  ;;  %v5494_v35 = vpop.xlane.xlu0 %834 }
 0x1aa   : > { %1053 = vadd.xlane.f32.xlu1 %v1052_v19  ;;  %1050 = vadd.xlane.f32.xlu0 %v1049_v4  ;;  %v1064_v4 = vsel %vm330_vm0, %v762_v55, 0.0  ;;  %v766_v55 = vmul.f32 %v8349_v56, %v8349_v56 }
 0x1ab   : > { %v5502_v18 = vpop.xlane.xlu1 %843  ;;  %v5504_v27 = vpop.xlane.xlu0 %840 }
 0x1ae   : > { %1059 = vadd.xlane.f32.xlu1 %v1058_v11  ;;  %1056 = vadd.xlane.f32.xlu0 %v1055_v61  ;;  %v1070_v61 = vsel %vm330_vm0, %v764_v14, 0.0  ;;  %v768_v14 = vmul.f32 %v8351_v52, %v8351_v52 }
 0x1af   : > { %v5512_v10 = vpop.xlane.xlu1 %849  ;;  %v5514_v19 = vpop.xlane.xlu0 %846 }
 0x1b2   : > { %1065 = vadd.xlane.f32.xlu1 %v1064_v4  ;;  %1062 = vadd.xlane.f32.xlu0 %v1061_v57  ;;  %v1076_v57 = vsel %vm330_vm0, %v766_v55, 0.0  ;;  %v770_v55 = vmul.f32 %v8353_v48, %v8353_v48  ;;  %v8357_v48 = vld [vmem:[#allocation28_spill] sm:$0xff] }
 0x1b3   : > { %v5522_v3 = vpop.xlane.xlu1 %855  ;;  %v5524_v11 = vpop.xlane.xlu0 %852  ;;  %v5563_v40 = vmul.f32 0.020408163, %v8357_v48  ;;  %v8361_v48 = vld [vmem:[#allocation23_spill] sm:$0xff] }
 0x1b4   : > { %v5577_v17 = vmul.f32 0.020408163, %v8361_v48 }
 0x1b5   : > { %8358 = vst [vmem:[#allocation21_spill] sm:$0xff] %v5563_v40  ;;  %v1340_v39 = vmul.f32 %v5563_v40, %v5563_v40  ;;  %v8366_v40 = vld [vmem:[#allocation27_spill] sm:$0xff] }
 0x1b6   : > { %1071 = vadd.xlane.f32.xlu1 %v1070_v61  ;;  %1068 = vadd.xlane.f32.xlu0 %v1067_v53  ;;  %v1082_v53 = vsel %vm330_vm0, %v768_v14, 0.0  ;;  %v772_v14 = vmul.f32 %v8355_v44, %v8355_v44  ;;  %v1091_v44 = vsel %vm330_vm0, %v771_v25, 0.0  ;;  %8362 = vst [vmem:[#allocation22_spill] sm:$0xff] %v5577_v17 }
 0x1b7   : > { %v5532_v60 = vpop.xlane.xlu1 %861  ;;  %v5534_v4 = vpop.xlane.xlu0 %858  ;;  %v1452_v25 = vsub.f32 %v1228_v37, %v1340_v39  ;;  %v8368_v37 = vld [vmem:[#allocation39_spill] sm:$0xff]  ;;  %v1230_v39 = vmul.f32 0.020408163, %v5412_v23 }
 0x1b8   : > { %v1094_v29 = vsel %vm330_vm0, %v772_v14, 0.0  ;;  %v776_v14 = vmul.f32 %v5011_v63, %v5011_v63 }
 0x1b9   : > { %v1564_v9 = vmax.f32 %v1452_v25, 0.0  ;;  %v8374_v25 = vld [vmem:[#allocation43_spill] sm:$0xff] }
 0x1ba   : > { %1077 = vadd.xlane.f32.xlu1 %v1076_v57  ;;  %1074 = vadd.xlane.f32.xlu0 %v1073_v49  ;;  %v1088_v49 = vsel %vm330_vm0, %v770_v55, 0.0  ;;  %v1106_v13 = vsel %vm330_vm0, %v776_v14, 0.0 }
 0x1bb   : > { %v5542_v56 = vpop.xlane.xlu1 %867  ;;  %v5544_v61 = vpop.xlane.xlu0 %864 }
 0x1be   : > { %1083 = vadd.xlane.f32.xlu1 %v1082_v53  ;;  %1080 = vadd.xlane.f32.xlu0 %v1079_v45  ;;  %v8359_v53 = vld [vmem:[#allocation89_spill] sm:$0xff] }
 0x1bf   : > { %v5552_v52 = vpop.xlane.xlu1 %873  ;;  %v5554_v57 = vpop.xlane.xlu0 %870  ;;  %v774_v45 = vmul.f32 %v8359_v53, %v8359_v53 }
 0x1c1   : > { %v1100_v53 = vsel %vm330_vm0, %v774_v45, 0.0  ;;  %v1341_v45 = vmul.f32 %v5577_v17, %v5577_v17 }
 0x1c2   : > { %1089 = vadd.xlane.f32.xlu1 %v1088_v49  ;;  %1086 = vadd.xlane.f32.xlu0 %v1085_v41  ;;  %v8363_v49 = vld [vmem:[#allocation24_spill] sm:$0xff] }
 0x1c3   : > { %v5568_v21 = vpop.xlane.xlu1 %879  ;;  %v5570_v55 = vpop.xlane.xlu0 %876  ;;  %v5580_v41 = vmul.f32 0.020408163, %v8363_v49  ;;  %v1097_v49 = vsel %vm330_vm0, %v773_v33, 0.0  ;;  %v8370_v33 = vld [vmem:[#allocation96_spill] sm:$0xff]  ;;  %v1453_v24 = vsub.f32 %v1229_v32, %v1341_v45  ;;  %v5626_v45 = vmul.f32 0.020408163, %v8374_v25 }
 0x1c4   : > { %v1232_v25 = vmul.f32 0.020408163, %v5422_v54  ;;  %v8382_v54 = vld [vmem:[#allocation51_spill] sm:$0xff] }
 0x1c5   : > { %8364 = vst [vmem:[#allocation25_spill] sm:$0xff] %v5580_v41  ;;  %v1339_v63 = vmul.f32 %v5580_v41, %v5580_v41  ;;  %v8371_v41 = vld [vmem:[#allocation97_spill] sm:$0xff]  ;;  %8375 = vst [vmem:[#allocation33_spill] sm:$0xff] %v5626_v45  ;;  %v1565_v1 = vmax.f32 %v1453_v24, 0.0  ;;  %v8378_v24 = vld [vmem:[#allocation47_spill] sm:$0xff] }
 0x1c6   : > { %1095 = vadd.xlane.f32.xlu1 %v1094_v29  ;;  %1092 = vadd.xlane.f32.xlu0 %v1091_v44  ;;  %v5596_v29 = vmul.f32 0.020408163, %v8366_v40  ;;  %v5604_v44 = vmul.f32 0.020408163, %v8368_v37  ;;  %v778_v40 = vmul.f32 %v8370_v33, %v8370_v33  ;;  %v777_v37 = vmul.f32 %v8371_v41, %v8371_v41 }
 0x1c7   : > { %v5588_v36 = vpop.xlane.xlu1 %885  ;;  %v5590_v48 = vpop.xlane.xlu0 %882  ;;  %v1451_v14 = vsub.f32 %v1227_v7, %v1339_v63  ;;  %v1236_v33 = vmul.f32 0.020408163, %v5442_v6  ;;  %v1676_v41 = vadd.f32 1e-05, %v1564_v9  ;;  %v8376_v7 = vld [vmem:[#allocation31_spill] sm:$0xff]  ;;  %v1350_v9 = vmul.f32 %v5626_v45, %v5626_v45 }
 0x1c8   : > { %8367 = vst [vmem:[#allocation26_spill] sm:$0xff] %v5596_v29  ;;  %8369 = vst [vmem:[#allocation29_spill] sm:$0xff] %v5604_v44  ;;  %v1342_v23 = vmul.f32 %v5596_v29, %v5596_v29  ;;  %v1348_v32 = vmul.f32 %v5604_v44, %v5604_v44  ;;  %v1112_v28 = vsel %vm330_vm0, %v778_v40, 0.0  ;;  %v1231_v29 = vmul.f32 0.020408163, %v5424_v15 }
 0x1c9   : > { %v1109_v6 = vsel %vm330_vm0, %v777_v37, 0.0  ;;  %v5636_v44 = vmul.f32 0.020408163, %v8376_v7  ;;  %v1238_v40 = vmul.f32 0.020408163, %v5452_v58  ;;  %4017 = vrsqrt.f32 %v1676_v41 }
 0x1ca   : > { %1101 = vadd.xlane.f32.xlu1 %v1100_v53  ;;  %1098 = vadd.xlane.f32.xlu0 %v1097_v49  ;;  %v8372_v53 = vld [vmem:[#allocation32_spill] sm:$0xff]  ;;  %v1454_v20 = vsub.f32 %v1230_v39, %v1342_v23  ;;  %v5644_v15 = vmul.f32 0.020408163, %v8378_v24  ;;  %v1677_v37 = vadd.f32 1e-05, %v1565_v1 }
 0x1cb   : > { %v5610_v17 = vpop.xlane.xlu1 %891  ;;  %v5612_v0 = vpop.xlane.xlu0 %888  ;;  %v5620_v49 = vmul.f32 0.020408163, %v8372_v53  ;;  %8377 = vst [vmem:[#allocation34_spill] sm:$0xff] %v5636_v44  ;;  %v1344_v24 = vmul.f32 %v5636_v44, %v5636_v44 }
 0x1cc   : > { %8379 = vst [vmem:[#allocation37_spill] sm:$0xff] %v5644_v15  ;;  %v1566_v23 = vmax.f32 %v1454_v20, 0.0  ;;  %v1352_v1 = vmul.f32 %v5644_v15, %v5644_v15  ;;  %4019 = vrsqrt.f32 %v1677_v37  ;;  %v1242_v37 = vmul.f32 0.020408163, %v5472_v42 }
 0x1cd   : > { %8373 = vst [vmem:[#allocation30_spill] sm:$0xff] %v5620_v49  ;;  %v1343_v39 = vmul.f32 %v5620_v49, %v5620_v49  ;;  %v1233_v49 = vmul.f32 0.020408163, %v5434_v51  ;;  %v8387_v51 = vld [vmem:[#allocation55_spill] sm:$0xff] }
 0x1ce   : > { %1107 = vadd.xlane.f32.xlu1 %v1106_v13  ;;  %1104 = vadd.xlane.f32.xlu0 %v1103_v38  ;;  %v1563_v13 = vmax.f32 %v1451_v14, 0.0  ;;  %v1460_v38 = vsub.f32 %v1236_v33, %v1348_v32  ;;  %v8380_v33 = vld [vmem:[#allocation36_spill] sm:$0xff]  ;;  %v1240_v32 = vmul.f32 0.020408163, %v5462_v50  ;;  %v1678_v41 = vadd.f32 1e-05, %v1566_v23 }
 0x1cf   : > { %v5630_v53 = vpop.xlane.xlu1 %897  ;;  %v5632_v63 = vpop.xlane.xlu0 %894  ;;  %v1455_v7 = vsub.f32 %v1231_v29, %v1343_v39  ;;  %v5652_v58 = vmul.f32 0.020408163, %v8380_v33  ;;  %v5660_v29 = vmul.f32 0.020408163, %v8382_v54  ;;  %v1456_v39 = vsub.f32 %v1232_v25, %v1344_v24 }
 0x1d0   : > { %v1675_v20 = vadd.f32 1e-05, %v1563_v13  ;;  %v8385_v13 = vld [vmem:[#allocation35_spill] sm:$0xff]  ;;  %v1234_v24 = vmul.f32 0.020408163, %v5432_v22 }
 0x1d1   : > { %8381 = vst [vmem:[#allocation38_spill] sm:$0xff] %v5652_v58  ;;  %8383 = vst [vmem:[#allocation41_spill] sm:$0xff] %v5660_v29  ;;  %v1567_v33 = vmax.f32 %v1455_v7, 0.0  ;;  %v1354_v25 = vmul.f32 %v5660_v29, %v5660_v29  ;;  %v5676_v7 = vmul.f32 0.020408163, %v8387_v51 }
 0x1d2   : > { %1113 = vadd.xlane.f32.xlu1 %v1112_v28  ;;  %1110 = vadd.xlane.f32.xlu0 %v1109_v6  ;;  %v1572_v28 = vmax.f32 %v1460_v38, 0.0  ;;  %v1462_v6 = vsub.f32 %v1238_v40, %v1350_v9  ;;  %v5668_v38 = vmul.f32 0.020408163, %v8385_v13  ;;  %v1345_v40 = vmul.f32 %v5652_v58, %v5652_v58  ;;  %v8390_v13 = vld [vmem:[#allocation40_spill] sm:$0xff] }
 0x1d3   : > { %v5647_v16 = vpop.xlane.xlu1 %903  ;;  %v5649_v14 = vpop.xlane.xlu0 %900  ;;  %v1464_v9 = vsub.f32 %v1240_v32, %v1352_v1  ;;  %4021 = vrsqrt.f32 %v1675_v20  ;;  %8388 = vst [vmem:[#allocation46_spill] sm:$0xff] %v5676_v7  ;;  %v1568_v32 = vmax.f32 %v1456_v39, 0.0  ;;  %v1679_v20 = vadd.f32 1e-05, %v1567_v33  ;;  %v1900_v39 = vld [vmem:[%s5683_s21 + $0x8] sm:$0xff] }
 0x1d4   : > { %8386 = vst [vmem:[#allocation45_spill] sm:$0xff] %v5668_v38  ;;  %v1684_v54 = vadd.f32 1e-05, %v1572_v28  ;;  %v1574_v23 = vmax.f32 %v1462_v6, 0.0  ;;  %4023 = vrsqrt.f32 %v1678_v41  ;;  %v1457_v28 = vsub.f32 %v1233_v49, %v1345_v40  ;;  %v4018_v58 = vpop.eup %4017  ;;  %v8392_v33 = vld [vmem:[#allocation59_spill] sm:$0xff] }
 0x1d5   : > { %v1346_v1 = vmul.f32 %v5668_v38, %v5668_v38  ;;  %v5692_v51 = vmul.f32 0.020408163, %v8390_v13  ;;  %v1576_v22 = vmax.f32 %v1464_v9, 0.0  ;;  %v1466_v15 = vsub.f32 %v1242_v37, %v1354_v25 }
 0x1d6   : > { %4025 = vrsqrt.f32 %v1684_v54  ;;  %v1686_v29 = vadd.f32 1e-05, %v1574_v23  ;;  %v1244_v41 = vmul.f32 0.020408163, %v5482_v34  ;;  %v1356_v49 = vmul.f32 %v5676_v7, %v5676_v7  ;;  %v8395_v23 = vld [vmem:[#allocation44_spill] sm:$0xff]  ;;  %v8398_v7 = vld [vmem:[#allocation63_spill] sm:$0xff] }
 0x1d7   : > { %v5663_v50 = vpop.xlane.xlu1 %909  ;;  %v5665_v45 = vpop.xlane.xlu0 %906  ;;  %8391 = vst [vmem:[#allocation50_spill] sm:$0xff] %v5692_v51  ;;  %v5699_v40 = vmul.f32 0.020408163, %v8392_v33  ;;  %v1458_v44 = vsub.f32 %v1234_v24, %v1346_v1  ;;  %v1680_v38 = vadd.f32 1e-05, %v1568_v32  ;;  %4027 = vrsqrt.f32 %v1679_v20 }
 0x1d8   : > { %8384 = vst [vmem:[#allocation42_spill] sm:$0xff] %v5665_v45  ;;  %v1569_v13 = vmax.f32 %v1457_v28, 0.0  ;;  %v1235_v9 = vmul.f32 0.020408163, %v5444_v43  ;;  %v1347_v34 = vmul.f32 %v5692_v51, %v5692_v51  ;;  %v5709_v37 = vmul.f32 0.020408163, %v8395_v23  ;;  %v4020_v24 = vpop.eup %4019 }
 0x1d9   : > { %8393 = vst [vmem:[#allocation53_spill] sm:$0xff] %v5699_v40  ;;  %v1688_v25 = vadd.f32 1e-05, %v1576_v22  ;;  %v5711_v33 = vmul.f32 %v4018_v58, %v1900_v39  ;;  %4029 = vrsqrt.f32 %v1686_v29  ;;  %v1578_v32 = vmax.f32 %v1466_v15, 0.0  ;;  %v1901_v28 = vld [vmem:[%s5683_s21 + $0x10] sm:$0xff]  ;;  %v1899_v15 = vld [vmem:[%s5683_s21] sm:$0xff] }
 0x1da   : > { %8396 = vst [vmem:[#allocation57_spill] sm:$0xff] %v5709_v37  ;;  %v1468_v20 = vsub.f32 %v1244_v41, %v1356_v49  ;;  %v1246_v43 = vmul.f32 0.020408163, %v5492_v26  ;;  %v1358_v1 = vmul.f32 %v5699_v40, %v5699_v40  ;;  %v1570_v51 = vmax.f32 %v1458_v44, 0.0  ;;  %v1902_v40 = vld [vmem:[%s5683_s21 + $0x18] sm:$0xff] }
 0x1db   : > { %v5685_v6 = vpop.xlane.xlu1 %915  ;;  %v5687_v42 = vpop.xlane.xlu0 %912  ;;  %8397 = vst [vmem:[#allocation58_spill] sm:$0xff] %v5711_v33  ;;  %4031 = vrsqrt.f32 %v1680_v38  ;;  %v1681_v22 = vadd.f32 1e-05, %v1569_v13  ;;  %v1459_v58 = vsub.f32 %v1235_v9, %v1347_v34  ;;  %v1237_v29 = vmul.f32 0.020408163, %v5454_v46 }
 0x1dc   : > { %8389 = vst [vmem:[#allocation49_spill] sm:$0xff] %v5687_v42  ;;  %v1349_v41 = vmul.f32 %v5709_v37, %v5709_v37  ;;  %4033 = vrsqrt.f32 %v1688_v25  ;;  %v5732_v44 = vmul.f32 %v4020_v24, %v1901_v28  ;;  %v1690_v13 = vadd.f32 1e-05, %v1578_v32 }
 0x1dd   : > { %v4022_v23 = vpop.eup %4021  ;;  %v1580_v9 = vmax.f32 %v1468_v20, 0.0  ;;  %v1470_v46 = vsub.f32 %v1246_v43, %v1358_v1  ;;  %v1248_v34 = vmul.f32 0.020408163, %v5502_v18  ;;  %v1682_v37 = vadd.f32 1e-05, %v1570_v51  ;;  %v1908_v43 = vld [vmem:[%s5683_s21 + $0x48] sm:$0xff] }
 0x1de   : > { %8403 = vst [vmem:[#allocation66_spill] sm:$0xff] %v5732_v44  ;;  %v4024_v38 = vpop.eup %4023  ;;  %4035 = vrsqrt.f32 %v1681_v22  ;;  %v1571_v24 = vmax.f32 %v1459_v58, 0.0  ;;  %v1461_v28 = vsub.f32 %v1237_v29, %v1349_v41  ;;  %v1239_v32 = vmul.f32 0.020408163, %v5464_v62  ;;  %v8407_v51 = vld [vmem:[#allocation52_spill] sm:$0xff]  ;;  %v1903_v41 = vld [vmem:[%s5683_s21 + $0x20] sm:$0xff] }
 0x1df   : > { %v5702_v42 = vpop.xlane.xlu1 %921  ;;  %v5704_v54 = vpop.xlane.xlu0 %918  ;;  %v1250_v22 = vmul.f32 0.020408163, %v5512_v10  ;;  %v5757_v58 = vmul.f32 %v4024_v38, %v1902_v40  ;;  %4037 = vrsqrt.f32 %v1690_v13  ;;  %v1692_v29 = vadd.f32 1e-05, %v1580_v9 }
 0x1e0   : > { %8394 = vst [vmem:[#allocation54_spill] sm:$0xff] %v5704_v54  ;;  %v5718_v54 = vmul.f32 0.020408163, %v8398_v7  ;;  %v8401_v7 = vld [vmem:[#allocation48_spill] sm:$0xff]  ;;  %v4026_v25 = vpop.eup %4025  ;;  %4039 = vrsqrt.f32 %v1682_v37  ;;  %v1573_v40 = vmax.f32 %v1461_v28, 0.0 }
 0x1e1   : > { %v5730_v49 = vmul.f32 0.020408163, %v8401_v7  ;;  %v5741_v7 = vmul.f32 %v4022_v23, %v1899_v15  ;;  %v5753_v23 = vmul.f32 0.020408163, %v8407_v51  ;;  %8409 = vst [vmem:[#allocation74_spill] sm:$0xff] %v5757_v58  ;;  %v4028_v62 = vpop.eup %4027  ;;  %v5765_v51 = vmul.f32 %v4026_v25, %v1908_v43  ;;  %v8413_v37 = vld [vmem:[#allocation56_spill] sm:$0xff] }
 0x1e2   : > { %8399 = vst [vmem:[#allocation61_spill] sm:$0xff] %v5718_v54  ;;  %v1241_v13 = vmul.f32 0.020408163, %v5474_v59  ;;  %4041 = vrsqrt.f32 %v1692_v29  ;;  %v1252_v43 = vmul.f32 0.020408163, %v5522_v3 }
 0x1e3   : > { %v5721_v39 = vpop.xlane.xlu1 %927  ;;  %2466 = vperm.xlu1 %4016, %v5711_v33   ;;  %v5724_v26 = vpop.xlane.xlu0 %924  ;;  %8402 = vst [vmem:[#allocation65_spill] sm:$0xff] %v5730_v49  ;;  %v1360_v33 = vmul.f32 %v5718_v54, %v5718_v54  ;;  %8406 = vst [vmem:[#allocation70_spill] sm:$0xff] %v5741_v7  ;;  %v1351_v1 = vmul.f32 %v5730_v49, %v5730_v49  ;;  %v8410_v49 = vld [vmem:[#allocation71_spill] sm:$0xff] }
 0x1e4   : > { %8400 = vst [vmem:[#allocation62_spill] sm:$0xff] %v5724_v26  ;;  %v8404_v26 = vld [vmem:[#allocation67_spill] sm:$0xff]  ;;  %8408 = vst [vmem:[#allocation73_spill] sm:$0xff] %v5753_v23  ;;  %v4030_v10 = vpop.eup %4029 }
 0x1e5   : > { %v5739_v45 = vmul.f32 0.020408163, %v8404_v26  ;;  %v1582_v26 = vmax.f32 %v1470_v46, 0.0  ;;  %v1472_v15 = vsub.f32 %v1248_v34, %v1360_v33  ;;  %8412 = vst [vmem:[#allocation78_spill] sm:$0xff] %v5765_v51  ;;  %v1463_v38 = vsub.f32 %v1239_v32, %v1351_v1  ;;  %v1910_v46 = vld [vmem:[%s5683_s21 + $0x58] sm:$0xff]  ;;  %v4032_v28 = vpop.eup %4031  ;;  %v1904_v1 = vld [vmem:[%s5683_s21 + $0x28] sm:$0xff] }
 0x1e6   : > { %v5777_v34 = vmul.f32 0.020408163, %v8413_v37 }
 0x1e7   : > { %8405 = vst [vmem:[#allocation69_spill] sm:$0xff] %v5739_v45  ;;  %v5744_v20 = vpop.xlane.xlu1 %933  ;;  %2471 = vperm.xlu1 %4016, %v5732_v44   ;;  %v5747_v18 = vpop.xlane.xlu0 %930  ;;  %v1362_v54 = vmul.f32 %v5739_v45, %v5739_v45  ;;  %v5763_v44 = vmul.f32 0.020408163, %v8410_v49  ;;  %v1353_v49 = vmul.f32 %v5753_v23, %v5753_v23  ;;  %v1694_v59 = vadd.f32 1e-05, %v1582_v26 }
 0x1e8   : > { %2461 = vperm.xlu0 %4015, %v5741_v7   ;;  %v1683_v7 = vadd.f32 1e-05, %v1571_v24  ;;  %8414 = vst [vmem:[#allocation81_spill] sm:$0xff] %v5777_v34  ;;  %v5780_v24 = vmul.f32 %v4028_v62, %v1903_v41  ;;  %v1584_v32 = vmax.f32 %v1472_v15, 0.0  ;;  %v4034_v45 = vpop.eup %4033  ;;  %v1685_v62 = vadd.f32 1e-05, %v1573_v40 }
 0x1e9   : > { %8411 = vst [vmem:[#allocation77_spill] sm:$0xff] %v5763_v44  ;;  %v1474_v25 = vsub.f32 %v1250_v22, %v1362_v54  ;;  %v1364_v23 = vmul.f32 %v5763_v44, %v5763_v44  ;;  %v1243_v54 = vmul.f32 0.020408163, %v5484_v31  ;;  %v5790_v22 = vmul.f32 %v4030_v10, %v1910_v46  ;;  %v1912_v41 = vld [vmem:[%s5683_s21 + $0x68] sm:$0xff]  ;;  %v8419_v44 = vld [vmem:[#allocation60_spill] sm:$0xff]  ;;  %v4036_v10 = vpop.eup %4035 }
 0x1ea   : > { %8415 = vst [vmem:[#allocation82_spill] sm:$0xff] %v5780_v24  ;;  %4043 = vrsqrt.f32 %v1683_v7  ;;  %v1575_v29 = vmax.f32 %v1463_v38, 0.0  ;;  %v1465_v26 = vsub.f32 %v1241_v13, %v1353_v49  ;;  %v5804_v7 = vmul.f32 %v4032_v28, %v1904_v1  ;;  %v1905_v46 = vld [vmem:[%s5683_s21 + $0x30] sm:$0xff] }
 0x1eb   : > { %v5768_v9 = vpop.xlane.xlu1 %939  ;;  %2476 = vperm.xlu1 %4016, %v5757_v58   ;;  %v5771_v33 = vpop.xlane.xlu0 %936  ;;  %v8416_v58 = vld [vmem:[#allocation75_spill] sm:$0xff]  ;;  %8418 = vst [vmem:[#allocation86_spill] sm:$0xff] %v5790_v22  ;;  %v1586_v31 = vmax.f32 %v1474_v25, 0.0  ;;  %4045 = vrsqrt.f32 %v1694_v59  ;;  %v1696_v40 = vadd.f32 1e-05, %v1584_v32  ;;  %v1476_v38 = vsub.f32 %v1252_v43, %v1364_v23  ;;  %v1914_v32 = vld [vmem:[%s5683_s21 + $0x78] sm:$0xff] }
 0x1ec   : > { %2506 = vperm.xlu0 %4015, %v5765_v51   ;;  %v5787_v37 = vmul.f32 0.020408163, %v8416_v58  ;;  %v1355_v58 = vmul.f32 %v5777_v34, %v5777_v34  ;;  %v5801_v51 = vmul.f32 0.020408163, %v8419_v44  ;;  %8421 = vst [vmem:[#allocation89_spill] sm:$0xff] %v5804_v7  ;;  %v8422_v34 = vld [vmem:[#allocation79_spill] sm:$0xff]  ;;  %v5813_v25 = vmul.f32 %v4034_v45, %v1912_v41 }
 0x1ed   : > { %v1254_v13 = vmul.f32 0.020408163, %v5532_v60  ;;  %4047 = vrsqrt.f32 %v1685_v62  ;;  %v1687_v28 = vadd.f32 1e-05, %v1575_v29  ;;  %v1577_v1 = vmax.f32 %v1465_v26, 0.0  ;;  %v8426_v45 = vld [vmem:[#allocation64_spill] sm:$0xff] }
 0x1ee   : > { %8417 = vst [vmem:[#allocation85_spill] sm:$0xff] %v5787_v37  ;;  %8420 = vst [vmem:[#allocation28_spill] sm:$0xff] %v5801_v51  ;;  %v1366_v49 = vmul.f32 %v5787_v37, %v5787_v37  ;;  %v1467_v44 = vsub.f32 %v1243_v54, %v1355_v58  ;;  %v1245_v59 = vmul.f32 0.020408163, %v5494_v35  ;;  %v5825_v54 = vmul.f32 0.020408163, %v8426_v45 }
 0x1ef   : > { %v5792_v15 = vpop.xlane.xlu1 %945  ;;  %2481 = vperm.xlu1 %4016, %v5780_v24   ;;  %v5795_v3 = vpop.xlane.xlu0 %942  ;;  %v5811_v24 = vmul.f32 0.020408163, %v8422_v34  ;;  %8424 = vst [vmem:[#allocation23_spill] sm:$0xff] %v5813_v25  ;;  %v1357_v34 = vmul.f32 %v5801_v51, %v5801_v51  ;;  %v1698_v62 = vadd.f32 1e-05, %v1586_v31  ;;  %v5828_v29 = vmul.f32 %v4036_v10, %v1905_v46  ;;  %v1906_v58 = vld [vmem:[%s5683_s21 + $0x38] sm:$0xff] }
 0x1f0   : > { %2516 = vperm.xlu0 %4015, %v5790_v22   ;;  %v4038_v22 = vpop.eup %4037  ;;  %8427 = vst [vmem:[#allocation93_spill] sm:$0xff] %v5825_v54  ;;  %4049 = vrsqrt.f32 %v1696_v40  ;;  %v1588_v35 = vmax.f32 %v1476_v38, 0.0  ;;  %v1478_v26 = vsub.f32 %v1254_v13, %v1366_v49  ;;  %v1256_v41 = vmul.f32 0.020408163, %v5542_v56  ;;  %v1916_v13 = vld [vmem:[%s5683_s21 + $0x88] sm:$0xff]  ;;  %v8432_v49 = vld [vmem:[#allocation68_spill] sm:$0xff] }
 0x1f1   : > { %8423 = vst [vmem:[#allocation90_spill] sm:$0xff] %v5811_v24  ;;  %v4040_v43 = vpop.eup %4039  ;;  %8428 = vst [vmem:[#allocation27_spill] sm:$0xff] %v5828_v29  ;;  %v1368_v37 = vmul.f32 %v5811_v24, %v5811_v24  ;;  %v1579_v45 = vmax.f32 %v1467_v44, 0.0  ;;  %4051 = vrsqrt.f32 %v1687_v28  ;;  %v1689_v10 = vadd.f32 1e-05, %v1577_v1 }
 0x1f2   : > { %v4042_v31 = vpop.eup %4041  ;;  %v1469_v46 = vsub.f32 %v1245_v59, %v1357_v34  ;;  %v1247_v40 = vmul.f32 0.020408163, %v5504_v27  ;;  %4053 = vrsqrt.f32 %v1698_v62  ;;  %v5852_v44 = vmul.f32 %v4040_v43, %v1906_v58  ;;  %v1907_v34 = vld [vmem:[%s5683_s21 + $0x40] sm:$0xff] }
 0x1f3   : > { %v5816_v23 = vpop.xlane.xlu1 %951  ;;  %2486 = vperm.xlu1 %4016, %v5804_v7   ;;  %v5819_v60 = vpop.xlane.xlu0 %948  ;;  %v8429_v7 = vld [vmem:[#allocation83_spill] sm:$0xff]  ;;  %v1700_v27 = vadd.f32 1e-05, %v1588_v35  ;;  %v1590_v1 = vmax.f32 %v1478_v26, 0.0  ;;  %v1480_v59 = vsub.f32 %v1256_v41, %v1368_v37  ;;  %v5861_v62 = vmul.f32 %v4042_v31, %v1916_v13  ;;  %v1918_v26 = vld [vmem:[%s5683_s21 + $0x98] sm:$0xff]  ;;  %v8437_v41 = vld [vmem:[#allocation72_spill] sm:$0xff] }
 0x1f4   : > { %8425 = vst [vmem:[#allocation24_spill] sm:$0xff] %v5819_v60  ;;  %2526 = vperm.xlu0 %4015, %v5813_v25   ;;  %v5835_v51 = vmul.f32 0.020408163, %v8429_v7  ;;  %v5837_v60 = vmul.f32 %v4038_v22, %v1914_v32  ;;  %v1359_v7 = vmul.f32 %v5825_v54, %v5825_v54  ;;  %v5849_v22 = vmul.f32 0.020408163, %v8432_v49  ;;  %v4044_v28 = vpop.eup %4043  ;;  %v8434_v54 = vld [vmem:[#allocation87_spill] sm:$0xff] }
 0x1f5   : > { %v1258_v32 = vmul.f32 0.020408163, %v5552_v52  ;;  %v1691_v49 = vadd.f32 1e-05, %v1579_v45  ;;  %8436 = vst [vmem:[#allocation43_spill] sm:$0xff] %v5861_v62  ;;  %4055 = vrsqrt.f32 %v1689_v10  ;;  %v1581_v43 = vmax.f32 %v1469_v46, 0.0 }
 0x1f6   : > { %8430 = vst [vmem:[#allocation39_spill] sm:$0xff] %v5835_v51  ;;  %8431 = vst [vmem:[#allocation96_spill] sm:$0xff] %v5837_v60  ;;  %v1370_v24 = vmul.f32 %v5835_v51, %v5835_v51  ;;  %v1471_v58 = vsub.f32 %v1247_v40, %v1359_v7  ;;  %v1249_v35 = vmul.f32 0.020408163, %v5514_v19  ;;  %v5873_v45 = vmul.f32 0.020408163, %v8437_v41 }
 0x1f7   : > { %v5840_v38 = vpop.xlane.xlu1 %957  ;;  %2491 = vperm.xlu1 %4016, %v5828_v29   ;;  %v5843_v56 = vpop.xlane.xlu0 %954  ;;  %8433 = vst [vmem:[#allocation97_spill] sm:$0xff] %v5849_v22  ;;  %v5859_v29 = vmul.f32 0.020408163, %v8434_v54  ;;  %v1361_v54 = vmul.f32 %v5849_v22, %v5849_v22  ;;  %v1260_v31 = vmul.f32 0.020408163, %v5568_v21  ;;  %v5877_v10 = vmul.f32 %v4044_v28, %v1907_v34  ;;  %v1909_v7 = vld [vmem:[%s5683_s21 + $0x50] sm:$0xff] }
 0x1f8   : > { %2536 = vperm.xlu0 %4015, %v5837_v60   ;;  %v4046_v60 = vpop.eup %4045  ;;  %8438 = vst [vmem:[#allocation31_spill] sm:$0xff] %v5873_v45  ;;  %4057 = vrsqrt.f32 %v1700_v27  ;;  %v1702_v46 = vadd.f32 1e-05, %v1590_v1  ;;  %v1592_v40 = vmax.f32 %v1480_v59, 0.0  ;;  %v1482_v13 = vsub.f32 %v1258_v32, %v1370_v24  ;;  %v8440_v22 = vld [vmem:[#allocation91_spill] sm:$0xff]  ;;  %v8443_v32 = vld [vmem:[#allocation76_spill] sm:$0xff] }
 0x1f9   : > { %8435 = vst [vmem:[#allocation32_spill] sm:$0xff] %v5859_v29  ;;  %8439 = vst [vmem:[#allocation47_spill] sm:$0xff] %v5877_v10  ;;  %v4048_v19 = vpop.eup %4047  ;;  %v1372_v51 = vmul.f32 %v5859_v29, %v5859_v29  ;;  %v5883_v25 = vmul.f32 0.020408163, %v8440_v22  ;;  %4059 = vrsqrt.f32 %v1691_v49  ;;  %v5885_v41 = vmul.f32 %v4046_v60, %v1918_v26  ;;  %v1920_v59 = vld [vmem:[%s5683_s21 + $0xa8] sm:$0xff] }
 0x1fa   : > { %v4050_v21 = vpop.eup %4049  ;;  %v1583_v28 = vmax.f32 %v1471_v58, 0.0  ;;  %v1473_v34 = vsub.f32 %v1249_v35, %v1361_v54  ;;  %v1251_v27 = vmul.f32 0.020408163, %v5524_v11  ;;  %v1363_v22 = vmul.f32 %v5873_v45, %v5873_v45  ;;  %v1911_v54 = vld [vmem:[%s5683_s21 + $0x60] sm:$0xff] }
 0x1fb   : > { %v5864_v37 = vpop.xlane.xlu1 %963  ;;  %2496 = vperm.xlu1 %4016, %v5852_v44   ;;  %v5867_v52 = vpop.xlane.xlu0 %960  ;;  %8441 = vst [vmem:[#allocation36_spill] sm:$0xff] %v5883_v25  ;;  %8442 = vst [vmem:[#allocation51_spill] sm:$0xff] %v5885_v41  ;;  %v5897_v60 = vmul.f32 0.020408163, %v8443_v32  ;;  %v1484_v49 = vsub.f32 %v1260_v31, %v1372_v51  ;;  %4061 = vrsqrt.f32 %v1702_v46  ;;  %v1704_v11 = vadd.f32 1e-05, %v1592_v40 }
 0x1fc   : > { %2546 = vperm.xlu0 %4015, %v5861_v62   ;;  %v1693_v62 = vadd.f32 1e-05, %v1581_v43  ;;  %v5900_v43 = vmul.f32 %v4048_v19, %v1909_v7  ;;  %v4052_v58 = vpop.eup %4051  ;;  %v1594_v35 = vmax.f32 %v1482_v13, 0.0  ;;  %v1262_v26 = vmul.f32 0.020408163, %v5588_v36  ;;  %v1922_v7 = vld [vmem:[%s5683_s21 + $0xb8] sm:$0xff] }
 0x1fd   : > { %8444 = vst [vmem:[#allocation35_spill] sm:$0xff] %v5897_v60  ;;  %v4054_v29 = vpop.eup %4053  ;;  %v1374_v45 = vmul.f32 %v5883_v25, %v5883_v25  ;;  %v1253_v51 = vmul.f32 0.020408163, %v5534_v4  ;;  %v5910_v31 = vmul.f32 %v4050_v21, %v1920_v59  ;;  %v1695_v19 = vadd.f32 1e-05, %v1583_v28  ;;  %v8449_v25 = vld [vmem:[#allocation80_spill] sm:$0xff] }
 0x1fe   : > { %8445 = vst [vmem:[#allocation55_spill] sm:$0xff] %v5900_v43  ;;  %4063 = vrsqrt.f32 %v1693_v62  ;;  %v1585_v46 = vmax.f32 %v1473_v34, 0.0  ;;  %v1475_v40 = vsub.f32 %v1251_v27, %v1363_v22  ;;  %v1596_v4 = vmax.f32 %v1484_v49, 0.0  ;;  %v1913_v59 = vld [vmem:[%s5683_s21 + $0x70] sm:$0xff] }
 0x1ff   : > { %v5888_v1 = vpop.xlane.xlu1 %969  ;;  %2501 = vperm.xlu1 %4016, %v5877_v10   ;;  %v5891_v24 = vpop.xlane.xlu0 %966  ;;  %v8446_v10 = vld [vmem:[#allocation94_spill] sm:$0xff]  ;;  %8448 = vst [vmem:[#allocation59_spill] sm:$0xff] %v5910_v31  ;;  %v5924_v62 = vmul.f32 %v4052_v58, %v1911_v54  ;;  %4065 = vrsqrt.f32 %v1704_v11  ;;  %v1706_v28 = vadd.f32 1e-05, %v1594_v35  ;;  %v1486_v34 = vsub.f32 %v1262_v26, %v1374_v45  ;;  %v1924_v35 = vld [vmem:[%s5683_s21 + $0xc8] sm:$0xff] }
 0x200   : > { %2556 = vperm.xlu0 %4015, %v5885_v41   ;;  %v5907_v32 = vmul.f32 0.020408163, %v8446_v10  ;;  %v1365_v10 = vmul.f32 %v5897_v60, %v5897_v60  ;;  %v5921_v41 = vmul.f32 0.020408163, %v8449_v25  ;;  %v4056_v21 = vpop.eup %4055  ;;  %v1264_v27 = vmul.f32 0.020408163, %v5610_v17 }
 0x201   : > { %8451 = vst [vmem:[#allocation63_spill] sm:$0xff] %v5924_v62  ;;  %v8452_v60 = vld [vmem:[#allocation98_spill] sm:$0xff]  ;;  %v5933_v49 = vmul.f32 %v4054_v29, %v1922_v7  ;;  %4067 = vrsqrt.f32 %v1695_v19  ;;  %v1697_v58 = vadd.f32 1e-05, %v1585_v46  ;;  %v1587_v54 = vmax.f32 %v1475_v40, 0.0  ;;  %v8455_v29 = vld [vmem:[#allocation84_spill] sm:$0xff] }
 0x202   : > { %8447 = vst [vmem:[#allocation40_spill] sm:$0xff] %v5907_v32  ;;  %8450 = vst [vmem:[#allocation44_spill] sm:$0xff] %v5921_v41  ;;  %v1376_v22 = vmul.f32 %v5907_v32, %v5907_v32  ;;  %v1477_v25 = vsub.f32 %v1253_v51, %v1365_v10  ;;  %v1255_v11 = vmul.f32 0.020408163, %v5544_v61  ;;  %v5945_v51 = vmul.f32 0.020408163, %v8455_v29 }
 0x203   : > { %v5912_v13 = vpop.xlane.xlu1 %975  ;;  %2511 = vperm.xlu1 %4016, %v5900_v43   ;;  %v5915_v36 = vpop.xlane.xlu0 %972  ;;  %v5931_v43 = vmul.f32 0.020408163, %v8452_v60  ;;  %8454 = vst [vmem:[#allocation67_spill] sm:$0xff] %v5933_v49  ;;  %v1367_v60 = vmul.f32 %v5921_v41, %v5921_v41  ;;  %v1708_v19 = vadd.f32 1e-05, %v1596_v4  ;;  %v5948_v46 = vmul.f32 %v4056_v21, %v1913_v59  ;;  %v1915_v10 = vld [vmem:[%s5683_s21 + $0x80] sm:$0xff] }
 0x204   : > { %2566 = vperm.xlu0 %4015, %v5910_v31   ;;  %v4058_v31 = vpop.eup %4057  ;;  %8456 = vst [vmem:[#allocation52_spill] sm:$0xff] %v5945_v51  ;;  %4069 = vrsqrt.f32 %v1706_v28  ;;  %v1598_v61 = vmax.f32 %v1486_v34, 0.0  ;;  %v1488_v40 = vsub.f32 %v1264_v27, %v1376_v22  ;;  %v1266_v7 = vmul.f32 0.020408163, %v5630_v53  ;;  %v1926_v27 = vld [vmem:[%s5683_s21 + $0xd8] sm:$0xff]  ;;  %v8460_v22 = vld [vmem:[#allocation88_spill] sm:$0xff] }
 0x205   : > { %8453 = vst [vmem:[#allocation48_spill] sm:$0xff] %v5931_v43  ;;  %v4060_v26 = vpop.eup %4059  ;;  %8457 = vst [vmem:[#allocation71_spill] sm:$0xff] %v5948_v46  ;;  %v1378_v32 = vmul.f32 %v5931_v43, %v5931_v43  ;;  %v5955_v41 = vmul.f32 0.020408163, %v5042_v47  ;;  %v1589_v29 = vmax.f32 %v1477_v25, 0.0  ;;  %4071 = vrsqrt.f32 %v1697_v58 }
 0x206   : > { %v4062_v4 = vpop.eup %4061  ;;  %v1699_v21 = vadd.f32 1e-05, %v1587_v54  ;;  %v1479_v59 = vsub.f32 %v1255_v11, %v1367_v60  ;;  %v1257_v28 = vmul.f32 0.020408163, %v5554_v57  ;;  %v1369_v47 = vmul.f32 %v5945_v51, %v5945_v51  ;;  %v1917_v60 = vld [vmem:[%s5683_s21 + $0x90] sm:$0xff] }
 0x207   : > { %v5936_v45 = vpop.xlane.xlu1 %981  ;;  %2521 = vperm.xlu1 %4016, %v5924_v62   ;;  %v5939_v17 = vpop.xlane.xlu0 %978  ;;  %8458 = vst [vmem:[#allocation56_spill] sm:$0xff] %v5955_v41  ;;  %v5957_v62 = vmul.f32 %v4058_v31, %v1924_v35  ;;  %v5969_v31 = vmul.f32 0.020408163, %v8460_v22  ;;  %4073 = vrsqrt.f32 %v1708_v19  ;;  %v5972_v25 = vmul.f32 %v4060_v26, %v1915_v10 }
 0x208   : > { %2576 = vperm.xlu0 %4015, %v5933_v49   ;;  %v4064_v58 = vpop.eup %4063  ;;  %v1710_v57 = vadd.f32 1e-05, %v1598_v61  ;;  %v1600_v54 = vmax.f32 %v1488_v40, 0.0  ;;  %v1490_v11 = vsub.f32 %v1266_v7, %v1378_v32  ;;  %v1268_v35 = vmul.f32 0.020408163, %v5647_v16  ;;  %v1928_v40 = vld [vmem:[%s5683_s21 + $0xe8] sm:$0xff] }
 0x209   : > { %8459 = vst [vmem:[#allocation75_spill] sm:$0xff] %v5957_v62  ;;  %8461 = vst [vmem:[#allocation60_spill] sm:$0xff] %v5969_v31  ;;  %v1380_v43 = vmul.f32 %v5955_v41, %v5955_v41  ;;  %v5979_v51 = vmul.f32 0.020408163, %v5052_v5  ;;  %v1701_v22 = vadd.f32 1e-05, %v1589_v29  ;;  %v5981_v19 = vmul.f32 %v4062_v4, %v1926_v27 }
 0x20a   : > { %8462 = vst [vmem:[#allocation79_spill] sm:$0xff] %v5972_v25  ;;  %4075 = vrsqrt.f32 %v1699_v21  ;;  %v1591_v26 = vmax.f32 %v1479_v59, 0.0  ;;  %v1481_v10 = vsub.f32 %v1257_v28, %v1369_v47  ;;  %v1259_v61 = vmul.f32 0.020408163, %v5570_v55  ;;  %v8465_v7 = vld [vmem:[#allocation92_spill] sm:$0xff]  ;;  %v1919_v47 = vld [vmem:[%s5683_s21 + $0xa0] sm:$0xff] }
 0x20b   : > { %v5960_v34 = vpop.xlane.xlu1 %987  ;;  %2531 = vperm.xlu1 %4016, %v5948_v46   ;;  %v5963_v53 = vpop.xlane.xlu0 %984  ;;  %8463 = vst [vmem:[#allocation64_spill] sm:$0xff] %v5979_v51  ;;  %8464 = vst [vmem:[#allocation83_spill] sm:$0xff] %v5981_v19  ;;  %v1371_v5 = vmul.f32 %v5969_v31, %v5969_v31  ;;  %v5993_v29 = vmul.f32 0.020408163, %v8465_v7  ;;  %v1270_v4 = vmul.f32 0.020408163, %v5663_v50  ;;  %v5997_v21 = vmul.f32 %v4064_v58, %v1917_v60 }
 0x20c   : > { %2586 = vperm.xlu0 %4015, %v5957_v62   ;;  %v4066_v62 = vpop.eup %4065  ;;  %4077 = vrsqrt.f32 %v1710_v57  ;;  %v1712_v59 = vadd.f32 1e-05, %v1600_v54  ;;  %v1602_v28 = vmax.f32 %v1490_v11, 0.0  ;;  %v1492_v27 = vsub.f32 %v1268_v35, %v1380_v43  ;;  %v1930_v11 = vld [vmem:[%s5683_s21 + $0xf8] sm:$0xff]  ;;  %v8470_v35 = vld [vmem:[#allocation95_spill] sm:$0xff] }
 0x20d   : > { %8466 = vst [vmem:[#allocation68_spill] sm:$0xff] %v5993_v29  ;;  %8467 = vst [vmem:[#allocation87_spill] sm:$0xff] %v5997_v21  ;;  %v4068_v55 = vpop.eup %4067  ;;  %v1382_v41 = vmul.f32 %v5979_v51, %v5979_v51  ;;  %v6003_v31 = vmul.f32 0.020408163, %v5062_v2  ;;  %4079 = vrsqrt.f32 %v1701_v22  ;;  %v6005_v7 = vmul.f32 %v4066_v62, %v1928_v40 }
 0x20e   : > { %v4070_v50 = vpop.eup %4069  ;;  %v1593_v58 = vmax.f32 %v1481_v10, 0.0  ;;  %v1483_v60 = vsub.f32 %v1259_v61, %v1371_v5  ;;  %v1261_v57 = vmul.f32 0.020408163, %v5590_v48  ;;  %v1373_v2 = vmul.f32 %v5993_v29, %v5993_v29  ;;  %v1921_v5 = vld [vmem:[%s5683_s21 + $0xb0] sm:$0xff] }
 0x20f   : > { %v5984_v32 = vpop.xlane.xlu1 %993  ;;  %2541 = vperm.xlu1 %4016, %v5972_v25   ;;  %v5987_v16 = vpop.xlane.xlu0 %990  ;;  %8468 = vst [vmem:[#allocation72_spill] sm:$0xff] %v6003_v31  ;;  %8469 = vst [vmem:[#allocation91_spill] sm:$0xff] %v6005_v7  ;;  %v6017_v62 = vmul.f32 0.020408163, %v8470_v35  ;;  %v1494_v22 = vsub.f32 %v1270_v4, %v1382_v41  ;;  %4081 = vrsqrt.f32 %v1712_v59  ;;  %v1714_v48 = vadd.f32 1e-05, %v1602_v28 }
 0x210   : > { %2596 = vperm.xlu0 %4015, %v5981_v19   ;;  %v1703_v19 = vadd.f32 1e-05, %v1591_v26  ;;  %v6020_v26 = vmul.f32 %v4068_v55, %v1919_v47  ;;  %v4072_v10 = vpop.eup %4071  ;;  %v1604_v61 = vmax.f32 %v1492_v27, 0.0  ;;  %v1272_v40 = vmul.f32 0.020408163, %v5685_v6  ;;  %v1932_v47 = vld [vmem:[%s5683_s21 + $0x108] sm:$0xff] }
 0x211   : > { %8471 = vst [vmem:[#allocation76_spill] sm:$0xff] %v6017_v62  ;;  %v4074_v51 = vpop.eup %4073  ;;  %v1384_v29 = vmul.f32 %v6003_v31, %v6003_v31  ;;  %v6027_v35 = vmul.f32 0.020408163, %v5072_v8  ;;  %v1263_v41 = vmul.f32 0.020408163, %v5612_v0  ;;  %v6030_v4 = vmul.f32 %v4070_v50, %v1930_v11  ;;  %v8475_v31 = vld [vmem:[#allocation99_spill] sm:$0xff] }
 0x212   : > { %8472 = vst [vmem:[#allocation94_spill] sm:$0xff] %v6020_v26  ;;  %4083 = vrsqrt.f32 %v1703_v19  ;;  %v1705_v55 = vadd.f32 1e-05, %v1593_v58  ;;  %v1595_v59 = vmax.f32 %v1483_v60, 0.0  ;;  %v1485_v28 = vsub.f32 %v1261_v57, %v1373_v2  ;;  %v1923_v11 = vld [vmem:[%s5683_s21 + $0xc0] sm:$0xff] }
 0x213   : > { %v6008_v54 = vpop.xlane.xlu1 %999  ;;  %2551 = vperm.xlu1 %4016, %v5997_v21   ;;  %v6011_v43 = vpop.xlane.xlu0 %996  ;;  %8473 = vst [vmem:[#allocation80_spill] sm:$0xff] %v6027_v35  ;;  %8474 = vst [vmem:[#allocation98_spill] sm:$0xff] %v6030_v4  ;;  %v1375_v8 = vmul.f32 %v6017_v62, %v6017_v62  ;;  %v1606_v0 = vmax.f32 %v1494_v22, 0.0  ;;  %v6044_v19 = vmul.f32 %v4072_v10, %v1921_v5  ;;  %4085 = vrsqrt.f32 %v1714_v48  ;;  %v8516_v25 = vld [vmem:[#allocation114_spill] sm:$0xff] }
 0x214   : > { %2606 = vperm.xlu0 %4015, %v6005_v7   ;;  %v6041_v7 = vmul.f32 0.020408163, %v8475_v31  ;;  %v4076_v50 = vpop.eup %4075  ;;  %v1716_v58 = vadd.f32 1e-05, %v1604_v61  ;;  %v1496_v60 = vsub.f32 %v1272_v40, %v1384_v29  ;;  %v1274_v57 = vmul.f32 0.020408163, %v5702_v42 }
 0x215   : > { %8477 = vst [vmem:[#allocation88_spill] sm:$0xff] %v6044_v19  ;;  %v1386_v2 = vmul.f32 %v6027_v35, %v6027_v35  ;;  %v6051_v62 = vmul.f32 0.020408163, %v5082_v12  ;;  %v1487_v31 = vsub.f32 %v1263_v41, %v1375_v8  ;;  %v6053_v22 = vmul.f32 %v4074_v51, %v1932_v47  ;;  %v1934_v61 = vld [vmem:[%s5683_s21 + $0x118] sm:$0xff]  ;;  %v1925_v47 = vld [vmem:[%s5683_s21 + $0xd0] sm:$0xff] }
 0x216   : > { %8476 = vst [vmem:[#allocation84_spill] sm:$0xff] %v6041_v7  ;;  %4087 = vrsqrt.f32 %v1705_v55  ;;  %v1707_v10 = vadd.f32 1e-05, %v1595_v59  ;;  %v1597_v5 = vmax.f32 %v1485_v28, 0.0  ;;  %v1265_v48 = vmul.f32 0.020408163, %v5632_v63 }
 0x217   : > { %v6032_v27 = vpop.xlane.xlu1 %1005  ;;  %2561 = vperm.xlu1 %4016, %v6020_v26   ;;  %v6035_v6 = vpop.xlane.xlu0 %1002  ;;  %8478 = vst [vmem:[#allocation92_spill] sm:$0xff] %v6051_v62  ;;  %8479 = vst [vmem:[#allocation95_spill] sm:$0xff] %v6053_v22  ;;  %v1377_v12 = vmul.f32 %v6041_v7, %v6041_v7  ;;  %v6065_v51 = vmul.f32 0.020408163, %v5044_v30  ;;  %v1718_v41 = vadd.f32 1e-05, %v1606_v0  ;;  %v6068_v55 = vmul.f32 %v4076_v50, %v1923_v11 }
 0x218   : > { %2616 = vperm.xlu0 %4015, %v6030_v4   ;;  %v4078_v4 = vpop.eup %4077  ;;  %4089 = vrsqrt.f32 %v1716_v58  ;;  %v1608_v63 = vmax.f32 %v1496_v60, 0.0  ;;  %v1498_v59 = vsub.f32 %v1274_v57, %v1386_v2  ;;  %v1276_v28 = vmul.f32 0.020408163, %v5721_v39  ;;  %v8482_v35 = vld [vmem:[#allocation104_spill] sm:$0xff]  ;;  %v1936_v57 = vld [vmem:[%s5683_s21 + $0x128] sm:$0xff]  ;;  %v8498_v26 = vld [vmem:[#allocation49_spill] sm:$0xff] }
 0x219   : > { %v4080_v40 = vpop.eup %4079  ;;  %8480 = vst [vmem:[#allocation99_spill] sm:$0xff] %v6065_v51  ;;  %8481 = vst [vmem:[#allocation147_spill] sm:$0xff] %v6068_v55  ;;  %v1388_v8 = vmul.f32 %v6051_v62, %v6051_v62  ;;  %v6075_v7 = vmul.f32 0.020408163, %v8482_v35  ;;  %v1599_v30 = vmax.f32 %v1487_v31, 0.0  ;;  %4091 = vrsqrt.f32 %v1707_v10  ;;  %v8485_v2 = vld [vmem:[#allocation100_spill] sm:$0xff] }
 0x21a   : > { %v4082_v0 = vpop.eup %4081  ;;  %v1709_v50 = vadd.f32 1e-05, %v1597_v5  ;;  %v1489_v11 = vsub.f32 %v1265_v48, %v1377_v12  ;;  %v1267_v58 = vmul.f32 0.020408163, %v5649_v14  ;;  %v1379_v35 = vmul.f32 %v6065_v51, %v6065_v51  ;;  %v1927_v12 = vld [vmem:[%s5683_s21 + $0xe0] sm:$0xff] }
 0x21b   : > { %v6056_v29 = vpop.xlane.xlu1 %1011  ;;  %2571 = vperm.xlu1 %4016, %v6044_v19   ;;  %v6059_v42 = vpop.xlane.xlu0 %1008  ;;  %8483 = vst [vmem:[#allocation104_spill] sm:$0xff] %v6075_v7  ;;  %v6077_v19 = vmul.f32 %v4078_v4, %v1934_v61  ;;  %v6089_v4 = vmul.f32 0.020408163, %v8485_v2  ;;  %4093 = vrsqrt.f32 %v1718_v41  ;;  %v6092_v31 = vmul.f32 %v4080_v40, %v1925_v47  ;;  %v8488_v51 = vld [vmem:[#allocation106_spill] sm:$0xff] }
 0x21c   : > { %2626 = vperm.xlu0 %4015, %v6053_v22   ;;  %v4084_v10 = vpop.eup %4083  ;;  %v1720_v14 = vadd.f32 1e-05, %v1608_v63  ;;  %v1610_v5 = vmax.f32 %v1498_v59, 0.0  ;;  %v1500_v48 = vsub.f32 %v1276_v28, %v1388_v8  ;;  %v1278_v61 = vmul.f32 0.020408163, %v5744_v20  ;;  %v8491_v63 = vld [vmem:[#allocation42_spill] sm:$0xff] }
 0x21d   : > { %8484 = vst [vmem:[#allocation148_spill] sm:$0xff] %v6077_v19  ;;  %8486 = vst [vmem:[#allocation100_spill] sm:$0xff] %v6089_v4  ;;  %v1390_v62 = vmul.f32 %v6075_v7, %v6075_v7  ;;  %v1711_v2 = vadd.f32 1e-05, %v1599_v30  ;;  %v6101_v41 = vmul.f32 %v4082_v0, %v1936_v57  ;;  %4095 = vrsqrt.f32 %v1709_v50  ;;  %v1938_v8 = vld [vmem:[%s5683_s21 + $0x138] sm:$0xff]  ;;  %v1929_v7 = vld [vmem:[%s5683_s21 + $0xf0] sm:$0xff] }
 0x21e   : > { %8487 = vst [vmem:[#allocation149_spill] sm:$0xff] %v6092_v31  ;;  %v1601_v40 = vmax.f32 %v1489_v11, 0.0  ;;  %v1491_v47 = vsub.f32 %v1267_v58, %v1379_v35  ;;  %v1269_v59 = vmul.f32 0.020408163, %v8491_v63  ;;  %v8492_v30 = vld [vmem:[#allocation101_spill] sm:$0xff]  ;;  %v6117_v11 = vmul.f32 %v4084_v10, %v1927_v12 }
 0x21f   : > { %v6080_v60 = vpop.xlane.xlu1 %1017  ;;  %2581 = vperm.xlu1 %4016, %v6068_v55   ;;  %v6083_v39 = vpop.xlane.xlu0 %1014  ;;  %v6099_v55 = vmul.f32 0.020408163, %v8488_v51  ;;  %8490 = vst [vmem:[#allocation150_spill] sm:$0xff] %v6101_v41  ;;  %v1381_v51 = vmul.f32 %v6089_v4, %v6089_v4  ;;  %v6113_v0 = vmul.f32 0.020408163, %v8492_v30  ;;  %4097 = vrsqrt.f32 %v1720_v14  ;;  %v8495_v4 = vld [vmem:[#allocation108_spill] sm:$0xff] }
 0x220   : > { %2636 = vperm.xlu0 %4015, %v6077_v19   ;;  %v4086_v19 = vpop.eup %4085  ;;  %v1280_v50 = vmul.f32 0.020408163, %v5768_v9  ;;  %8494 = vst [vmem:[#allocation101_spill] sm:$0xff] %v6117_v11  ;;  %v1722_v57 = vadd.f32 1e-05, %v1610_v5  ;;  %v1612_v35 = vmax.f32 %v1500_v48, 0.0  ;;  %v1502_v63 = vsub.f32 %v1278_v61, %v1390_v62 }
 0x221   : > { %8489 = vst [vmem:[#allocation106_spill] sm:$0xff] %v6099_v55  ;;  %8493 = vst [vmem:[#allocation42_spill] sm:$0xff] %v6113_v0  ;;  %v4088_v58 = vpop.eup %4087  ;;  %v6123_v22 = vmul.f32 0.020408163, %v8495_v4  ;;  %4099 = vrsqrt.f32 %v1711_v2  ;;  %v6125_v30 = vmul.f32 %v4086_v19, %v1938_v8  ;;  %v1603_v10 = vmax.f32 %v1491_v47, 0.0  ;;  %v1940_v48 = vld [vmem:[%s5683_s21 + $0x148] sm:$0xff] }
 0x222   : > { %v4090_v9 = vpop.eup %4089  ;;  %v1493_v12 = vsub.f32 %v1269_v59, %v1381_v51  ;;  %v1271_v14 = vmul.f32 0.020408163, %v8498_v26  ;;  %v1383_v4 = vmul.f32 %v6113_v0, %v6113_v0  ;;  %v8499_v61 = vld [vmem:[#allocation102_spill] sm:$0xff]  ;;  %4101 = vrsqrt.f32 %v1722_v57 }
 0x223   : > { %v6104_v28 = vpop.xlane.xlu1 %1023  ;;  %2591 = vperm.xlu1 %4016, %v6092_v31   ;;  %v6107_v20 = vpop.xlane.xlu0 %1020  ;;  %v1392_v31 = vmul.f32 %v6099_v55, %v6099_v55  ;;  %8496 = vst [vmem:[#allocation108_spill] sm:$0xff] %v6123_v22  ;;  %8497 = vst [vmem:[#allocation151_spill] sm:$0xff] %v6125_v30  ;;  %v6137_v19 = vmul.f32 0.020408163, %v8499_v61  ;;  %v1724_v26 = vadd.f32 1e-05, %v1612_v35  ;;  %v1394_v0 = vmul.f32 %v6123_v22, %v6123_v22 }
 0x224   : > { %2646 = vperm.xlu0 %4015, %v6101_v41   ;;  %v1713_v41 = vadd.f32 1e-05, %v1601_v40  ;;  %v6140_v40 = vmul.f32 %v4088_v58, %v1929_v7  ;;  %v4092_v47 = vpop.eup %4091  ;;  %v1614_v59 = vmax.f32 %v1502_v63, 0.0  ;;  %v1282_v8 = vmul.f32 0.020408163, %v5792_v15  ;;  %v1931_v51 = vld [vmem:[%s5683_s21 + $0x100] sm:$0xff] }
 0x225   : > { %8500 = vst [vmem:[#allocation49_spill] sm:$0xff] %v6137_v19  ;;  %v1504_v2 = vsub.f32 %v1280_v50, %v1392_v31  ;;  %v4094_v55 = vpop.eup %4093  ;;  %v8504_v31 = vld [vmem:[#allocation54_spill] sm:$0xff]  ;;  %v1715_v7 = vadd.f32 1e-05, %v1603_v10  ;;  %v1605_v58 = vmax.f32 %v1493_v12, 0.0  ;;  %v1495_v57 = vsub.f32 %v1271_v14, %v1383_v4  ;;  %v1942_v63 = vld [vmem:[%s5683_s21 + $0x158] sm:$0xff] }
 0x226   : > { %8501 = vst [vmem:[#allocation102_spill] sm:$0xff] %v6140_v40  ;;  %v1273_v50 = vmul.f32 0.020408163, %v8504_v31  ;;  %4103 = vrsqrt.f32 %v1713_v41  ;;  %v8506_v22 = vld [vmem:[#allocation103_spill] sm:$0xff]  ;;  %v6164_v41 = vmul.f32 %v4092_v47, %v1931_v51  ;;  %v1726_v12 = vadd.f32 1e-05, %v1614_v59 }
 0x227   : > { %v6128_v5 = vpop.xlane.xlu1 %1029  ;;  %2601 = vperm.xlu1 %4016, %v6117_v11   ;;  %v6131_v62 = vpop.xlane.xlu0 %1026  ;;  %v8502_v11 = vld [vmem:[#allocation110_spill] sm:$0xff]  ;;  %v6161_v21 = vmul.f32 0.020408163, %v8506_v22  ;;  %4105 = vrsqrt.f32 %v1724_v26  ;;  %v1506_v14 = vsub.f32 %v1282_v8, %v1394_v0  ;;  %v1933_v4 = vld [vmem:[%s5683_s21 + $0x110] sm:$0xff]  ;;  %v1717_v47 = vadd.f32 1e-05, %v1605_v58 }
 0x228   : > { %2656 = vperm.xlu0 %4015, %v6125_v30   ;;  %v6147_v61 = vmul.f32 0.020408163, %v8502_v11  ;;  %v6150_v30 = vmul.f32 %v4090_v9, %v1940_v48  ;;  %v1385_v11 = vmul.f32 %v6137_v19, %v6137_v19  ;;  %v1616_v9 = vmax.f32 %v1504_v2, 0.0  ;;  %8508 = vst [vmem:[#allocation152_spill] sm:$0xff] %v6164_v41  ;;  %v4096_v10 = vpop.eup %4095  ;;  %v8509_v19 = vld [vmem:[#allocation112_spill] sm:$0xff]  ;;  %v8512_v26 = vld [vmem:[#allocation62_spill] sm:$0xff] }
 0x229   : > { %8507 = vst [vmem:[#allocation103_spill] sm:$0xff] %v6161_v21  ;;  %v1284_v48 = vmul.f32 0.020408163, %v5816_v23  ;;  %v6173_v2 = vmul.f32 %v4094_v55, %v1942_v63  ;;  %4107 = vrsqrt.f32 %v1715_v7  ;;  %v1607_v51 = vmax.f32 %v1495_v57, 0.0  ;;  %v1944_v8 = vld [vmem:[%s5683_s21 + $0x168] sm:$0xff]  ;;  %v8513_v55 = vld [vmem:[#allocation105_spill] sm:$0xff] }
 0x22a   : > { %8503 = vst [vmem:[#allocation110_spill] sm:$0xff] %v6147_v61  ;;  %8505 = vst [vmem:[#allocation54_spill] sm:$0xff] %v6150_v30  ;;  %v1396_v31 = vmul.f32 %v6147_v61, %v6147_v61  ;;  %v1497_v22 = vsub.f32 %v1273_v50, %v1385_v11  ;;  %v1275_v59 = vmul.f32 0.020408163, %v8512_v26  ;;  %v6185_v50 = vmul.f32 0.020408163, %v8513_v55 }
 0x22b   : > { %v6152_v35 = vpop.xlane.xlu1 %1035  ;;  %2611 = vperm.xlu1 %4016, %v6140_v40   ;;  %v6155_v15 = vpop.xlane.xlu0 %1032  ;;  %v6171_v40 = vmul.f32 0.020408163, %v8509_v19  ;;  %8511 = vst [vmem:[#allocation153_spill] sm:$0xff] %v6173_v2  ;;  %v1387_v19 = vmul.f32 %v6161_v21, %v6161_v21  ;;  %v1728_v7 = vadd.f32 1e-05, %v1616_v9  ;;  %v6188_v58 = vmul.f32 %v4096_v10, %v1933_v4  ;;  %v1935_v26 = vld [vmem:[%s5683_s21 + $0x120] sm:$0xff] }
 0x22c   : > { %2666 = vperm.xlu0 %4015, %v6150_v30   ;;  %v4098_v30 = vpop.eup %4097  ;;  %8514 = vst [vmem:[#allocation62_spill] sm:$0xff] %v6185_v50  ;;  %4109 = vrsqrt.f32 %v1726_v12  ;;  %v1618_v57 = vmax.f32 %v1506_v14, 0.0  ;;  %v1508_v63 = vsub.f32 %v1284_v48, %v1396_v31  ;;  %v1286_v11 = vmul.f32 0.020408163, %v5840_v38  ;;  %v1946_v48 = vld [vmem:[%s5683_s21 + $0x178] sm:$0xff]  ;;  %v8519_v31 = vld [vmem:[#allocation107_spill] sm:$0xff] }
 0x22d   : > { %8510 = vst [vmem:[#allocation112_spill] sm:$0xff] %v6171_v40  ;;  %v4100_v61 = vpop.eup %4099  ;;  %8515 = vst [vmem:[#allocation105_spill] sm:$0xff] %v6188_v58  ;;  %v6195_v21 = vmul.f32 0.020408163, %v8516_v25  ;;  %v1609_v55 = vmax.f32 %v1497_v22, 0.0  ;;  %v6197_v46 = vmul.f32 %v4098_v30, %v1944_v8  ;;  %4111 = vrsqrt.f32 %v1717_v47 }
 0x22e   : > { %v4102_v9 = vpop.eup %4101  ;;  %v1719_v10 = vadd.f32 1e-05, %v1607_v51  ;;  %v1499_v4 = vsub.f32 %v1275_v59, %v1387_v19  ;;  %v1277_v12 = vmul.f32 0.020408163, %v5747_v18  ;;  %v1389_v25 = vmul.f32 %v6185_v50, %v6185_v50  ;;  %v1937_v19 = vld [vmem:[%s5683_s21 + $0x130] sm:$0xff] }
 0x22f   : > { %v6176_v0 = vpop.xlane.xlu1 %1041  ;;  %2621 = vperm.xlu1 %4016, %v6164_v41   ;;  %v6179_v23 = vpop.xlane.xlu0 %1038  ;;  %v1398_v41 = vmul.f32 %v6171_v40, %v6171_v40  ;;  %8517 = vst [vmem:[#allocation114_spill] sm:$0xff] %v6195_v21  ;;  %8518 = vst [vmem:[#allocation154_spill] sm:$0xff] %v6197_v46  ;;  %v6209_v30 = vmul.f32 0.020408163, %v8519_v31  ;;  %4113 = vrsqrt.f32 %v1728_v7  ;;  %v6212_v22 = vmul.f32 %v4100_v61, %v1935_v26  ;;  %v8522_v50 = vld [vmem:[#allocation116_spill] sm:$0xff] }
 0x230   : > { %2676 = vperm.xlu0 %4015, %v6173_v2   ;;  %v4104_v47 = vpop.eup %4103  ;;  %v1730_v18 = vadd.f32 1e-05, %v1618_v57  ;;  %v1620_v51 = vmax.f32 %v1508_v63, 0.0  ;;  %v1288_v8 = vmul.f32 0.020408163, %v5864_v37  ;;  %v1400_v40 = vmul.f32 %v6195_v21, %v6195_v21  ;;  %v1948_v63 = vld [vmem:[%s5683_s21 + $0x188] sm:$0xff] }
 0x231   : > { %8520 = vst [vmem:[#allocation107_spill] sm:$0xff] %v6209_v30  ;;  %8521 = vst [vmem:[#allocation155_spill] sm:$0xff] %v6212_v22  ;;  %v1510_v59 = vsub.f32 %v1286_v11, %v1398_v41  ;;  %v1721_v31 = vadd.f32 1e-05, %v1609_v55  ;;  %v6221_v7 = vmul.f32 %v4102_v9, %v1946_v48  ;;  %4115 = vrsqrt.f32 %v1719_v10  ;;  %v8525_v11 = vld [vmem:[#allocation109_spill] sm:$0xff] }
 0x232   : > { %v1611_v61 = vmax.f32 %v1499_v4, 0.0  ;;  %v1501_v26 = vsub.f32 %v1277_v12, %v1389_v25  ;;  %v1279_v57 = vmul.f32 0.020408163, %v5771_v33  ;;  %v6233_v55 = vmul.f32 0.020408163, %v8525_v11  ;;  %v1939_v25 = vld [vmem:[%s5683_s21 + $0x140] sm:$0xff] }
 0x233   : > { %v6200_v14 = vpop.xlane.xlu1 %1047  ;;  %2631 = vperm.xlu1 %4016, %v6188_v58   ;;  %v6203_v38 = vpop.xlane.xlu0 %1044  ;;  %v6219_v58 = vmul.f32 0.020408163, %v8522_v50  ;;  %8524 = vst [vmem:[#allocation156_spill] sm:$0xff] %v6221_v7  ;;  %v1391_v50 = vmul.f32 %v6209_v30, %v6209_v30  ;;  %v1290_v9 = vmul.f32 0.020408163, %v5888_v1  ;;  %v6237_v10 = vmul.f32 %v4104_v47, %v1937_v19  ;;  %v8528_v30 = vld [vmem:[#allocation118_spill] sm:$0xff] }
 0x234   : > { %2686 = vperm.xlu0 %4015, %v6197_v46   ;;  %v4106_v46 = vpop.eup %4105  ;;  %8526 = vst [vmem:[#allocation109_spill] sm:$0xff] %v6233_v55  ;;  %4117 = vrsqrt.f32 %v1730_v18  ;;  %v1732_v4 = vadd.f32 1e-05, %v1620_v51  ;;  %v1622_v12 = vmax.f32 %v1510_v59, 0.0  ;;  %v1512_v48 = vsub.f32 %v1288_v8, %v1400_v40  ;;  %v1950_v59 = vld [vmem:[%s5683_s21 + $0x198] sm:$0xff]  ;;  %v8531_v8 = vld [vmem:[#allocation111_spill] sm:$0xff] }
 0x235   : > { %8523 = vst [vmem:[#allocation116_spill] sm:$0xff] %v6219_v58  ;;  %8527 = vst [vmem:[#allocation157_spill] sm:$0xff] %v6237_v10  ;;  %v4108_v33 = vpop.eup %4107  ;;  %v1402_v21 = vmul.f32 %v6219_v58, %v6219_v58  ;;  %4119 = vrsqrt.f32 %v1721_v31  ;;  %v6245_v11 = vmul.f32 %v4106_v46, %v1948_v63  ;;  %v1613_v47 = vmax.f32 %v1501_v26, 0.0 }
 0x236   : > { %v4110_v1 = vpop.eup %4109  ;;  %v1503_v19 = vsub.f32 %v1279_v57, %v1391_v50  ;;  %v1281_v18 = vmul.f32 0.020408163, %v5795_v3  ;;  %v6257_v46 = vmul.f32 0.020408163, %v8531_v8  ;;  %4121 = vrsqrt.f32 %v1732_v4  ;;  %v1941_v50 = vld [vmem:[%s5683_s21 + $0x150] sm:$0xff] }
 0x237   : > { %v6224_v41 = vpop.xlane.xlu1 %1053  ;;  %2641 = vperm.xlu1 %4016, %v6212_v22   ;;  %v6227_v37 = vpop.xlane.xlu0 %1050  ;;  %v6243_v22 = vmul.f32 0.020408163, %v8528_v30  ;;  %8530 = vst [vmem:[#allocation158_spill] sm:$0xff] %v6245_v11  ;;  %v1393_v30 = vmul.f32 %v6233_v55, %v6233_v55  ;;  %v1514_v31 = vsub.f32 %v1290_v9, %v1402_v21  ;;  %v1734_v3 = vadd.f32 1e-05, %v1622_v12  ;;  %v8536_v21 = vld [vmem:[#allocation24_spill] sm:$0xff] }
 0x238   : > { %2696 = vperm.xlu0 %4015, %v6221_v7   ;;  %v1723_v7 = vadd.f32 1e-05, %v1611_v61  ;;  %8532 = vst [vmem:[#allocation111_spill] sm:$0xff] %v6257_v46  ;;  %v6260_v61 = vmul.f32 %v4108_v33, %v1939_v25  ;;  %v4112_v26 = vpop.eup %4111  ;;  %v1624_v57 = vmax.f32 %v1512_v48, 0.0  ;;  %v1292_v63 = vmul.f32 0.020408163, %v5912_v13 }
 0x239   : > { %8529 = vst [vmem:[#allocation118_spill] sm:$0xff] %v6243_v22  ;;  %v4114_v58 = vpop.eup %4113  ;;  %v1404_v55 = vmul.f32 %v6243_v22, %v6243_v22  ;;  %v1283_v9 = vmul.f32 0.020408163, %v8536_v21  ;;  %v1725_v33 = vadd.f32 1e-05, %v1613_v47  ;;  %v1615_v4 = vmax.f32 %v1503_v19, 0.0 }
 0x23a   : > { %8533 = vst [vmem:[#allocation159_spill] sm:$0xff] %v6260_v61  ;;  %4123 = vrsqrt.f32 %v1723_v7  ;;  %v1505_v12 = vsub.f32 %v1281_v18, %v1393_v30  ;;  %v1952_v25 = vld [vmem:[%s5683_s21 + $0x1a8] sm:$0xff]  ;;  %v8538_v22 = vld [vmem:[#allocation113_spill] sm:$0xff]  ;;  %v6284_v7 = vmul.f32 %v4112_v26, %v1941_v50  ;;  %v1736_v19 = vadd.f32 1e-05, %v1624_v57  ;;  %v1943_v30 = vld [vmem:[%s5683_s21 + $0x160] sm:$0xff] }
 0x23b   : > { %v6248_v51 = vpop.xlane.xlu1 %1059  ;;  %2651 = vperm.xlu1 %4016, %v6237_v10   ;;  %v6251_v40 = vpop.xlane.xlu0 %1056  ;;  %v8534_v10 = vld [vmem:[#allocation120_spill] sm:$0xff]  ;;  %v6281_v2 = vmul.f32 0.020408163, %v8538_v22  ;;  %4125 = vrsqrt.f32 %v1734_v3  ;;  %v1516_v18 = vsub.f32 %v1292_v63, %v1404_v55  ;;  %v1727_v26 = vadd.f32 1e-05, %v1615_v4  ;;  %v1954_v57 = vld [vmem:[%s5683_s21 + $0x1b8] sm:$0xff] }
 0x23c   : > { %2706 = vperm.xlu0 %4015, %v6245_v11   ;;  %v6267_v8 = vmul.f32 0.020408163, %v8534_v10  ;;  %v6270_v11 = vmul.f32 %v4110_v1, %v1950_v59  ;;  %v1395_v10 = vmul.f32 %v6257_v46, %v6257_v46  ;;  %v1626_v1 = vmax.f32 %v1514_v31, 0.0  ;;  %8540 = vst [vmem:[#allocation160_spill] sm:$0xff] %v6284_v7  ;;  %v4116_v47 = vpop.eup %4115  ;;  %v8541_v46 = vld [vmem:[#allocation122_spill] sm:$0xff] }
 0x23d   : > { %8539 = vst [vmem:[#allocation113_spill] sm:$0xff] %v6281_v2  ;;  %v1294_v59 = vmul.f32 0.020408163, %v5936_v45  ;;  %v6293_v31 = vmul.f32 %v4114_v58, %v1952_v25  ;;  %4127 = vrsqrt.f32 %v1725_v33  ;;  %v1617_v50 = vmax.f32 %v1505_v12, 0.0  ;;  %v8544_v58 = vld [vmem:[#allocation115_spill] sm:$0xff] }
 0x23e   : > { %8535 = vst [vmem:[#allocation120_spill] sm:$0xff] %v6267_v8  ;;  %8537 = vst [vmem:[#allocation24_spill] sm:$0xff] %v6270_v11  ;;  %v1406_v21 = vmul.f32 %v6267_v8, %v6267_v8  ;;  %v1507_v22 = vsub.f32 %v1283_v9, %v1395_v10  ;;  %v1285_v3 = vmul.f32 0.020408163, %v5843_v56  ;;  %v6305_v9 = vmul.f32 0.020408163, %v8544_v58 }
 0x23f   : > { %v6272_v48 = vpop.xlane.xlu1 %1065  ;;  %2661 = vperm.xlu1 %4016, %v6260_v61   ;;  %v6275_v13 = vpop.xlane.xlu0 %1062  ;;  %v6291_v61 = vmul.f32 0.020408163, %v8541_v46  ;;  %8543 = vst [vmem:[#allocation161_spill] sm:$0xff] %v6293_v31  ;;  %v1397_v46 = vmul.f32 %v6281_v2, %v6281_v2  ;;  %v1738_v33 = vadd.f32 1e-05, %v1626_v1  ;;  %v6308_v4 = vmul.f32 %v4116_v47, %v1943_v30  ;;  %v1945_v10 = vld [vmem:[%s5683_s21 + $0x170] sm:$0xff] }
 0x240   : > { %2716 = vperm.xlu0 %4015, %v6270_v11   ;;  %v4118_v11 = vpop.eup %4117  ;;  %8545 = vst [vmem:[#allocation115_spill] sm:$0xff] %v6305_v9  ;;  %4129 = vrsqrt.f32 %v1736_v19  ;;  %v1628_v56 = vmax.f32 %v1516_v18, 0.0  ;;  %v1518_v12 = vsub.f32 %v1294_v59, %v1406_v21  ;;  %v1296_v25 = vmul.f32 0.020408163, %v5960_v34  ;;  %v1956_v59 = vld [vmem:[%s5683_s21 + $0x1c8] sm:$0xff]  ;;  %v8550_v21 = vld [vmem:[#allocation117_spill] sm:$0xff] }
 0x241   : > { %8542 = vst [vmem:[#allocation122_spill] sm:$0xff] %v6291_v61  ;;  %v4120_v63 = vpop.eup %4119  ;;  %8546 = vst [vmem:[#allocation162_spill] sm:$0xff] %v6308_v4  ;;  %v1408_v8 = vmul.f32 %v6291_v61, %v6291_v61  ;;  %v1619_v58 = vmax.f32 %v1507_v22, 0.0  ;;  %v6317_v49 = vmul.f32 %v4118_v11, %v1954_v57  ;;  %4131 = vrsqrt.f32 %v1727_v26 }
 0x242   : > { %v4122_v1 = vpop.eup %4121  ;;  %v1729_v47 = vadd.f32 1e-05, %v1617_v50  ;;  %v1509_v30 = vsub.f32 %v1285_v3, %v1397_v46  ;;  %v1287_v19 = vmul.f32 0.020408163, %v5867_v52  ;;  %v6329_v11 = vmul.f32 0.020408163, %v8550_v21 }
 0x243   : > { %v6296_v55 = vpop.xlane.xlu1 %1071  ;;  %2671 = vperm.xlu1 %4016, %v6284_v7   ;;  %v6299_v45 = vpop.xlane.xlu0 %1068  ;;  %v8547_v7 = vld [vmem:[#allocation124_spill] sm:$0xff]  ;;  %8549 = vst [vmem:[#allocation163_spill] sm:$0xff] %v6317_v49  ;;  %4133 = vrsqrt.f32 %v1738_v33  ;;  %v6332_v22 = vmul.f32 %v4120_v63, %v1945_v10  ;;  %v1740_v52 = vadd.f32 1e-05, %v1628_v56  ;;  %v1630_v50 = vmax.f32 %v1518_v12, 0.0  ;;  %v1947_v46 = vld [vmem:[%s5683_s21 + $0x180] sm:$0xff] }
 0x244   : > { %2726 = vperm.xlu0 %4015, %v6293_v31   ;;  %v6315_v2 = vmul.f32 0.020408163, %v8547_v7  ;;  %v1399_v7 = vmul.f32 %v6305_v9, %v6305_v9  ;;  %8551 = vst [vmem:[#allocation117_spill] sm:$0xff] %v6329_v11  ;;  %v4124_v26 = vpop.eup %4123  ;;  %v1520_v3 = vsub.f32 %v1296_v25, %v1408_v8  ;;  %v1298_v57 = vmul.f32 0.020408163, %v5984_v32  ;;  %v8553_v9 = vld [vmem:[#allocation126_spill] sm:$0xff] }
 0x245   : > { %8552 = vst [vmem:[#allocation164_spill] sm:$0xff] %v6332_v22  ;;  %v1731_v21 = vadd.f32 1e-05, %v1619_v58  ;;  %v6341_v33 = vmul.f32 %v4122_v1, %v1956_v59  ;;  %4135 = vrsqrt.f32 %v1729_v47  ;;  %v1621_v63 = vmax.f32 %v1509_v30, 0.0  ;;  %v1958_v12 = vld [vmem:[%s5683_s21 + $0x1d8] sm:$0xff]  ;;  %v8556_v25 = vld [vmem:[#allocation119_spill] sm:$0xff] }
 0x246   : > { %8548 = vst [vmem:[#allocation124_spill] sm:$0xff] %v6315_v2  ;;  %v1410_v61 = vmul.f32 %v6315_v2, %v6315_v2  ;;  %v1511_v10 = vsub.f32 %v1287_v19, %v1399_v7  ;;  %v1289_v56 = vmul.f32 0.020408163, %v5891_v24  ;;  %v6353_v58 = vmul.f32 0.020408163, %v8556_v25  ;;  %v1949_v7 = vld [vmem:[%s5683_s21 + $0x190] sm:$0xff] }
 0x247   : > { %v6320_v18 = vpop.xlane.xlu1 %1077  ;;  %2681 = vperm.xlu1 %4016, %v6308_v4   ;;  %v6323_v34 = vpop.xlane.xlu0 %1074  ;;  %v6339_v4 = vmul.f32 0.020408163, %v8553_v9  ;;  %8555 = vst [vmem:[#allocation165_spill] sm:$0xff] %v6341_v33  ;;  %v1401_v9 = vmul.f32 %v6329_v11, %v6329_v11  ;;  %v1300_v1 = vmul.f32 0.020408163, %v6008_v54  ;;  %v6357_v47 = vmul.f32 %v4124_v26, %v1947_v46  ;;  %v8559_v11 = vld [vmem:[#allocation128_spill] sm:$0xff] }
 0x248   : > { %2736 = vperm.xlu0 %4015, %v6317_v49   ;;  %v4126_v49 = vpop.eup %4125  ;;  %8557 = vst [vmem:[#allocation119_spill] sm:$0xff] %v6353_v58  ;;  %4137 = vrsqrt.f32 %v1740_v52  ;;  %v1742_v30 = vadd.f32 1e-05, %v1630_v50  ;;  %v1632_v19 = vmax.f32 %v1520_v3, 0.0  ;;  %v1522_v59 = vsub.f32 %v1298_v57, %v1410_v61  ;;  %v1960_v3 = vld [vmem:[%s5683_s21 + $0x1e8] sm:$0xff]  ;;  %v8562_v57 = vld [vmem:[#allocation121_spill] sm:$0xff] }
 0x249   : > { %8554 = vst [vmem:[#allocation126_spill] sm:$0xff] %v6339_v4  ;;  %8558 = vst [vmem:[#allocation166_spill] sm:$0xff] %v6357_v47  ;;  %v4128_v24 = vpop.eup %4127  ;;  %v1412_v2 = vmul.f32 %v6339_v4, %v6339_v4  ;;  %4139 = vrsqrt.f32 %v1731_v21  ;;  %v6365_v25 = vmul.f32 %v4126_v49, %v1958_v12  ;;  %v1623_v26 = vmax.f32 %v1511_v10, 0.0 }
 0x24a   : > { %v4130_v54 = vpop.eup %4129  ;;  %v1513_v46 = vsub.f32 %v1289_v56, %v1401_v9  ;;  %v1291_v52 = vmul.f32 0.020408163, %v5915_v36  ;;  %v6377_v49 = vmul.f32 0.020408163, %v8562_v57  ;;  %4141 = vrsqrt.f32 %v1742_v30  ;;  %v1951_v9 = vld [vmem:[%s5683_s21 + $0x1a0] sm:$0xff] }
 0x24b   : > { %v6344_v8 = vpop.xlane.xlu1 %1083  ;;  %2691 = vperm.xlu1 %4016, %v6332_v22   ;;  %v6347_v32 = vpop.xlane.xlu0 %1080  ;;  %v6363_v22 = vmul.f32 0.020408163, %v8559_v11  ;;  %8561 = vst [vmem:[#allocation167_spill] sm:$0xff] %v6365_v25  ;;  %v1403_v11 = vmul.f32 %v6353_v58, %v6353_v58  ;;  %v1524_v21 = vsub.f32 %v1300_v1, %v1412_v2  ;;  %v1744_v36 = vadd.f32 1e-05, %v1632_v19 }
 0x24c   : > { %2746 = vperm.xlu0 %4015, %v6341_v33   ;;  %v1733_v33 = vadd.f32 1e-05, %v1621_v63  ;;  %8563 = vst [vmem:[#allocation121_spill] sm:$0xff] %v6377_v49  ;;  %v6380_v63 = vmul.f32 %v4128_v24, %v1949_v7  ;;  %v4132_v10 = vpop.eup %4131  ;;  %v1634_v56 = vmax.f32 %v1522_v59, 0.0  ;;  %v1302_v12 = vmul.f32 0.020408163, %v6032_v27 }
 0x24d   : > { %8560 = vst [vmem:[#allocation128_spill] sm:$0xff] %v6363_v22  ;;  %v4134_v4 = vpop.eup %4133  ;;  %v1414_v58 = vmul.f32 %v6363_v22, %v6363_v22  ;;  %v1293_v2 = vmul.f32 0.020408163, %v5939_v17  ;;  %v6390_v1 = vmul.f32 %v4130_v54, %v1960_v3  ;;  %v1735_v24 = vadd.f32 1e-05, %v1623_v26  ;;  %v1962_v7 = vld [vmem:[%s5683_s21 + $0x1f8] sm:$0xff] }
 0x24e   : > { %8564 = vst [vmem:[#allocation168_spill] sm:$0xff] %v6380_v63  ;;  %4143 = vrsqrt.f32 %v1733_v33  ;;  %v1625_v30 = vmax.f32 %v1513_v46, 0.0  ;;  %v1515_v19 = vsub.f32 %v1291_v52, %v1403_v11  ;;  %v8568_v22 = vld [vmem:[#allocation123_spill] sm:$0xff]  ;;  %v1636_v17 = vmax.f32 %v1524_v21, 0.0  ;;  %v1953_v3 = vld [vmem:[%s5683_s21 + $0x1b0] sm:$0xff] }
 0x24f   : > { %v6368_v50 = vpop.xlane.xlu1 %1089  ;;  %2701 = vperm.xlu1 %4016, %v6357_v47   ;;  %v6371_v61 = vpop.xlane.xlu0 %1086  ;;  %v8565_v47 = vld [vmem:[#allocation130_spill] sm:$0xff]  ;;  %8567 = vst [vmem:[#allocation169_spill] sm:$0xff] %v6390_v1  ;;  %v6404_v33 = vmul.f32 %v4132_v10, %v1951_v9  ;;  %4145 = vrsqrt.f32 %v1744_v36  ;;  %v1746_v26 = vadd.f32 1e-05, %v1634_v56  ;;  %v1526_v46 = vsub.f32 %v1302_v12, %v1414_v58  ;;  %v1964_v56 = vld [vmem:[%s5683_s21 + $0x208] sm:$0xff] }
 0x250   : > { %2756 = vperm.xlu0 %4015, %v6365_v25   ;;  %v6387_v57 = vmul.f32 0.020408163, %v8565_v47  ;;  %v1405_v47 = vmul.f32 %v6377_v49, %v6377_v49  ;;  %v6401_v25 = vmul.f32 0.020408163, %v8568_v22  ;;  %v4136_v54 = vpop.eup %4135  ;;  %v1304_v52 = vmul.f32 0.020408163, %v6056_v29 }
 0x251   : > { %8570 = vst [vmem:[#allocation170_spill] sm:$0xff] %v6404_v33  ;;  %v8571_v49 = vld [vmem:[#allocation132_spill] sm:$0xff]  ;;  %v6413_v21 = vmul.f32 %v4134_v4, %v1962_v7  ;;  %4147 = vrsqrt.f32 %v1735_v24  ;;  %v1737_v10 = vadd.f32 1e-05, %v1625_v30  ;;  %v1627_v9 = vmax.f32 %v1515_v19, 0.0  ;;  %v8573_v4 = vld [vmem:[#allocation125_spill] sm:$0xff] }
 0x252   : > { %8566 = vst [vmem:[#allocation130_spill] sm:$0xff] %v6387_v57  ;;  %8569 = vst [vmem:[#allocation123_spill] sm:$0xff] %v6401_v25  ;;  %v1416_v11 = vmul.f32 %v6387_v57, %v6387_v57  ;;  %v1517_v22 = vsub.f32 %v1293_v2, %v1405_v47  ;;  %v1295_v36 = vmul.f32 0.020408163, %v5963_v53  ;;  %v6425_v2 = vmul.f32 0.020408163, %v8573_v4 }
 0x253   : > { %v6392_v59 = vpop.xlane.xlu1 %1095  ;;  %2711 = vperm.xlu1 %4016, %v6380_v63   ;;  %v6395_v27 = vpop.xlane.xlu0 %1092  ;;  %v6411_v63 = vmul.f32 0.020408163, %v8571_v49  ;;  %v1407_v49 = vmul.f32 %v6401_v25, %v6401_v25  ;;  %v1748_v24 = vadd.f32 1e-05, %v1636_v17  ;;  %v6428_v30 = vmul.f32 %v4136_v54, %v1953_v3  ;;  %v1955_v47 = vld [vmem:[%s5683_s21 + $0x1c0] sm:$0xff] }
 0x254   : > { %2766 = vperm.xlu0 %4015, %v6390_v1   ;;  %v4138_v1 = vpop.eup %4137  ;;  %8574 = vst [vmem:[#allocation125_spill] sm:$0xff] %v6425_v2  ;;  %4149 = vrsqrt.f32 %v1746_v26  ;;  %v1638_v53 = vmax.f32 %v1526_v46, 0.0  ;;  %v1528_v19 = vsub.f32 %v1304_v52, %v1416_v11  ;;  %v1306_v7 = vmul.f32 0.020408163, %v6080_v60  ;;  %v1966_v60 = vld [vmem:[%s5683_s21 + $0x218] sm:$0xff] }
 0x255   : > { %8572 = vst [vmem:[#allocation132_spill] sm:$0xff] %v6411_v63  ;;  %v4140_v12 = vpop.eup %4139  ;;  %v1418_v57 = vmul.f32 %v6411_v63, %v6411_v63  ;;  %v1629_v4 = vmax.f32 %v1517_v22, 0.0  ;;  %v6437_v31 = vmul.f32 %v4138_v1, %v1964_v56  ;;  %4151 = vrsqrt.f32 %v1737_v10 }
 0x256   : > { %v4142_v17 = vpop.eup %4141  ;;  %v1739_v54 = vadd.f32 1e-05, %v1627_v9  ;;  %v1519_v3 = vsub.f32 %v1295_v36, %v1407_v49  ;;  %v1297_v26 = vmul.f32 0.020408163, %v5987_v16  ;;  %v1409_v52 = vmul.f32 %v6425_v2, %v6425_v2  ;;  %v1957_v49 = vld [vmem:[%s5683_s21 + $0x1d0] sm:$0xff] }
 0x257   : > { %v6416_v58 = vpop.xlane.xlu1 %1101  ;;  %2721 = vperm.xlu1 %4016, %v6404_v33   ;;  %v6419_v29 = vpop.xlane.xlu0 %1098  ;;  %v8575_v33 = vld [vmem:[#allocation134_spill] sm:$0xff]  ;;  %8577 = vst [vmem:[#allocation171_spill] sm:$0xff] %v6437_v31  ;;  %4153 = vrsqrt.f32 %v1748_v24  ;;  %v6450_v1 = vmul.f32 %v4140_v12, %v1955_v47  ;;  %v1750_v10 = vadd.f32 1e-05, %v1638_v53  ;;  %v1640_v9 = vmax.f32 %v1528_v19, 0.0 }
 0x258   : > { %2776 = vperm.xlu0 %4015, %v6413_v21   ;;  %v6435_v25 = vmul.f32 0.020408163, %v8575_v33  ;;  %v8578_v33 = vld [vmem:[#allocation127_spill] sm:$0xff]  ;;  %v4144_v22 = vpop.eup %4143  ;;  %v1530_v16 = vsub.f32 %v1306_v7, %v1418_v57  ;;  %v1308_v36 = vmul.f32 0.020408163, %v6104_v28  ;;  %4155 = vrsqrt.f32 %v1739_v54 }
 0x259   : > { %v6447_v11 = vmul.f32 0.020408163, %v8578_v33  ;;  %8580 = vst [vmem:[#allocation172_spill] sm:$0xff] %v6450_v1  ;;  %v8581_v33 = vld [vmem:[#allocation136_spill] sm:$0xff]  ;;  %v1741_v24 = vadd.f32 1e-05, %v1629_v4  ;;  %v4146_v12 = vpop.eup %4145  ;;  %v1521_v19 = vsub.f32 %v1297_v26, %v1409_v52  ;;  %4157 = vrsqrt.f32 %v1750_v10 }
 0x25a   : > { %8576 = vst [vmem:[#allocation134_spill] sm:$0xff] %v6435_v25  ;;  %v1420_v2 = vmul.f32 %v6435_v25, %v6435_v25  ;;  %v6459_v63 = vmul.f32 0.020408163, %v8581_v33  ;;  %v1631_v53 = vmax.f32 %v1519_v3, 0.0  ;;  %v1299_v57 = vmul.f32 0.020408163, %v6011_v43 }
 0x25b   : > { %v6440_v46 = vpop.xlane.xlu1 %1107  ;;  %2731 = vperm.xlu1 %4016, %v6428_v30   ;;  %8579 = vst [vmem:[#allocation127_spill] sm:$0xff] %v6447_v11  ;;  %v6453_v56 = vpop.xlane.xlu0 %1104  ;;  %v1968_v7 = vld [vmem:[%s5683_s21 + $0x228] sm:$0xff]  ;;  %v1411_v47 = vmul.f32 %v6447_v11, %v6447_v11  ;;  %v8584_v33 = vld [vmem:[#allocation129_spill] sm:$0xff]  ;;  %v1310_v4 = vmul.f32 0.020408163, %v6128_v5  ;;  %v1642_v3 = vmax.f32 %v1530_v16, 0.0  ;;  %4159 = vrsqrt.f32 %v1741_v24 }
 0x25c   : > { %2786 = vperm.xlu0 %4015, %v6437_v31   ;;  %8582 = vst [vmem:[#allocation136_spill] sm:$0xff] %v6459_v63  ;;  %v6461_v31 = vmul.f32 %v4142_v17, %v1966_v60  ;;  %v6471_v25 = vmul.f32 0.020408163, %v8584_v33  ;;  %v6475_v17 = vmul.f32 %v4144_v22, %v1957_v49  ;;  %v4148_v54 = vpop.eup %4147  ;;  %v1752_v43 = vadd.f32 1e-05, %v1640_v9  ;;  %v1959_v60 = vld [vmem:[%s5683_s21 + $0x1e0] sm:$0xff] }
 0x25d   : > { %v1532_v26 = vsub.f32 %v1308_v36, %v1420_v2  ;;  %v1422_v52 = vmul.f32 %v6459_v63, %v6459_v63  ;;  %v8587_v11 = vld [vmem:[#allocation138_spill] sm:$0xff]  ;;  %v6483_v33 = vmul.f32 %v4146_v12, %v1968_v7  ;;  %v1633_v22 = vmax.f32 %v1521_v19, 0.0  ;;  %v1970_v16 = vld [vmem:[%s5683_s21 + $0x238] sm:$0xff]  ;;  %v8590_v36 = vld [vmem:[#allocation131_spill] sm:$0xff] }
 0x25e   : > { %8583 = vst [vmem:[#allocation173_spill] sm:$0xff] %v6461_v31  ;;  %8585 = vst [vmem:[#allocation129_spill] sm:$0xff] %v6471_v25  ;;  %v4150_v5 = vpop.eup %4149  ;;  %v1523_v49 = vsub.f32 %v1299_v57, %v1411_v47  ;;  %v1301_v10 = vmul.f32 0.020408163, %v6035_v6  ;;  %v6495_v24 = vmul.f32 0.020408163, %v8590_v36  ;;  %4161 = vrsqrt.f32 %v1752_v43 }
 0x25f   : > { %v6464_v28 = vpop.xlane.xlu1 %1113  ;;  %2741 = vperm.xlu1 %4016, %v6450_v1   ;;  %8586 = vst [vmem:[#allocation174_spill] sm:$0xff] %v6475_v17  ;;  %v6481_v1 = vmul.f32 0.020408163, %v8587_v11  ;;  %8589 = vst [vmem:[#allocation175_spill] sm:$0xff] %v6483_v33  ;;  %v6486_v9 = vpop.xlane.xlu0 %1110  ;;  %v1413_v11 = vmul.f32 %v6471_v25, %v6471_v25  ;;  %v1534_v12 = vsub.f32 %v1310_v4, %v1422_v52  ;;  %v1754_v6 = vadd.f32 1e-05, %v1642_v3 }
 0x260   : > { %2796 = vperm.xlu0 %4015, %v6461_v31   ;;  %v1743_v31 = vadd.f32 1e-05, %v1631_v53  ;;  %8591 = vst [vmem:[#allocation131_spill] sm:$0xff] %v6495_v24  ;;  %v6498_v53 = vmul.f32 %v4148_v54, %v1959_v60  ;;  %v4152_v19 = vpop.eup %4151  ;;  %v1644_v57 = vmax.f32 %v1532_v26, 0.0  ;;  %v1312_v7 = vmul.f32 0.020408163, %v6152_v35 }
 0x261   : > { %8588 = vst [vmem:[#allocation138_spill] sm:$0xff] %v6481_v1  ;;  %v1961_v47 = vld [vmem:[%s5683_s21 + $0x1f0] sm:$0xff]  ;;  %v4154_v63 = vpop.eup %4153  ;;  %v1424_v25 = vmul.f32 %v6481_v1, %v6481_v1  ;;  %v1303_v4 = vmul.f32 0.020408163, %v6059_v42  ;;  %v6508_v52 = vmul.f32 %v4150_v5, %v1970_v16  ;;  %v1745_v54 = vadd.f32 1e-05, %v1633_v22 }
 0x262   : > { %4163 = vrsqrt.f32 %v1743_v31  ;;  %v1635_v43 = vmax.f32 %v1523_v49, 0.0  ;;  %v1525_v3 = vsub.f32 %v1301_v10, %v1413_v11  ;;  %v1972_v60 = vld [vmem:[%s5683_s21 + $0x248] sm:$0xff]  ;;  %v8596_v1 = vld [vmem:[#allocation133_spill] sm:$0xff]  ;;  %v1646_v42 = vmax.f32 %v1534_v12, 0.0  ;;  %v4156_v5 = vpop.eup %4155  ;;  %v1963_v16 = vld [vmem:[%s5683_s21 + $0x200] sm:$0xff] }
 0x263   : > { %v6488_v2 = vpop.permute.xlu1 %2466  ;;  %2751 = vperm.xlu1 %4016, %v6475_v17   ;;  %v8592_v17 = vld [vmem:[#allocation140_spill] sm:$0xff]  ;;  %v6522_v31 = vmul.f32 %v4152_v19, %v1961_v47  ;;  %4165 = vrsqrt.f32 %v1754_v6  ;;  %v1756_v22 = vadd.f32 1e-05, %v1644_v57  ;;  %v1536_v49 = vsub.f32 %v1312_v7, %v1424_v25  ;;  %v1974_v57 = vld [vmem:[%s5683_s21 + $0x258] sm:$0xff] }
 0x264   : > { %2806 = vperm.xlu0 %4015, %v6483_v33   ;;  %v6505_v36 = vmul.f32 0.020408163, %v8592_v17  ;;  %v1415_v17 = vmul.f32 %v6495_v24, %v6495_v24  ;;  %v6519_v33 = vmul.f32 0.020408163, %v8596_v1  ;;  %v1314_v10 = vmul.f32 0.020408163, %v6176_v0 }
 0x265   : > { %8598 = vst [vmem:[#allocation178_spill] sm:$0xff] %v6522_v31  ;;  %v8599_v24 = vld [vmem:[#allocation142_spill] sm:$0xff]  ;;  %v6531_v12 = vmul.f32 %v4154_v63, %v1972_v60  ;;  %4167 = vrsqrt.f32 %v1745_v54  ;;  %v1747_v19 = vadd.f32 1e-05, %v1635_v43  ;;  %v1637_v47 = vmax.f32 %v1525_v3, 0.0  ;;  %v8602_v63 = vld [vmem:[#allocation135_spill] sm:$0xff] }
 0x266   : > { %8593 = vst [vmem:[#allocation140_spill] sm:$0xff] %v6505_v36  ;;  %8597 = vst [vmem:[#allocation133_spill] sm:$0xff] %v6519_v33  ;;  %v1426_v11 = vmul.f32 %v6505_v36, %v6505_v36  ;;  %v1527_v1 = vsub.f32 %v1303_v4, %v1415_v17  ;;  %v1305_v6 = vmul.f32 0.020408163, %v6083_v39  ;;  %v6543_v4 = vmul.f32 0.020408163, %v8602_v63 }
 0x267   : > { %v6510_v26 = vpop.permute.xlu1 %2471  ;;  %2761 = vperm.xlu1 %4016, %v6498_v53   ;;  %v6513_v35 = vpop.permute.xlu0 %2461  ;;  %v1758_v54 = vadd.f32 1e-05, %v1646_v42  ;;  %v6546_v43 = vmul.f32 %v4156_v5, %v1963_v16  ;;  %4169 = vrsqrt.f32 %v1756_v22  ;;  %v1648_v39 = vmax.f32 %v1536_v49, 0.0  ;;  %v1965_v17 = vld [vmem:[%s5683_s21 + $0x210] sm:$0xff] }
 0x268   : > { %8594 = vst [vmem:[#allocation176_spill] sm:$0xff] %v6510_v26  ;;  %8595 = vst [vmem:[#allocation177_spill] sm:$0xff] %v6513_v35  ;;  %2816 = vperm.xlu0 %4015, %v6508_v52   ;;  %v6529_v26 = vmul.f32 0.020408163, %v8599_v24  ;;  %v4158_v35 = vpop.eup %4157  ;;  %v1417_v24 = vmul.f32 %v6519_v33, %v6519_v33  ;;  %v1538_v3 = vsub.f32 %v1314_v10, %v1426_v11  ;;  %v1316_v60 = vmul.f32 0.020408163, %v6200_v14 }
 0x269   : > { %v4160_v7 = vpop.eup %4159  ;;  %8603 = vst [vmem:[#allocation135_spill] sm:$0xff] %v6543_v4  ;;  %v1639_v63 = vmax.f32 %v1527_v1, 0.0  ;;  %4171 = vrsqrt.f32 %v1747_v19  ;;  %v1749_v5 = vadd.f32 1e-05, %v1637_v47  ;;  %v1307_v22 = vmul.f32 0.020408163, %v6107_v20 }
 0x26a   : > { %8600 = vst [vmem:[#allocation142_spill] sm:$0xff] %v6529_v26  ;;  %v1428_v36 = vmul.f32 %v6529_v26, %v6529_v26  ;;  %v4162_v42 = vpop.eup %4161  ;;  %v1529_v16 = vsub.f32 %v1305_v6, %v1417_v24  ;;  %v1976_v10 = vld [vmem:[%s5683_s21 + $0x268] sm:$0xff]  ;;  %v1419_v11 = vmul.f32 %v6543_v4, %v6543_v4  ;;  %v8608_v1 = vld [vmem:[#allocation137_spill] sm:$0xff]  ;;  %4173 = vrsqrt.f32 %v1758_v54  ;;  %v1967_v24 = vld [vmem:[%s5683_s21 + $0x220] sm:$0xff] }
 0x26b   : > { %v6534_v25 = vpop.permute.xlu1 %2476  ;;  %2771 = vperm.xlu1 %4016, %v6522_v31   ;;  %v6537_v0 = vpop.permute.xlu0 %2506  ;;  %v6555_v31 = vmul.f32 %v4158_v35, %v1974_v57  ;;  %v6567_v35 = vmul.f32 0.020408163, %v8608_v1  ;;  %v6570_v19 = vmul.f32 %v4160_v7, %v1965_v17  ;;  %v1760_v20 = vadd.f32 1e-05, %v1648_v39  ;;  %v8610_v4 = vld [vmem:[#allocation2_spill] sm:$0xff] }
 0x26c   : > { %8601 = vst [vmem:[#allocation179_spill] sm:$0xff] %v6537_v0  ;;  %2826 = vperm.xlu0 %4015, %v6531_v12   ;;  %v8604_v0 = vld [vmem:[#allocation144_spill] sm:$0xff]  ;;  %v4164_v47 = vpop.eup %4163  ;;  %v1650_v6 = vmax.f32 %v1538_v3, 0.0  ;;  %v1318_v57 = vmul.f32 0.020408163, %v6224_v41  ;;  %v6579_v54 = vmul.f32 %v4162_v42, %v1976_v10  ;;  %4175 = vrsqrt.f32 %v1749_v5  ;;  %v1978_v3 = vld [vmem:[%s5683_s21 + $0x278] sm:$0xff] }
 0x26d   : > { %v6553_v33 = vmul.f32 0.020408163, %v8604_v0  ;;  %8609 = vst [vmem:[#allocation137_spill] sm:$0xff] %v6567_v35  ;;  %v1540_v0 = vsub.f32 %v1316_v60, %v1428_v36  ;;  %v1751_v1 = vadd.f32 1e-05, %v1639_v63  ;;  %v1641_v7 = vmax.f32 %v1529_v16, 0.0 }
 0x26e   : > { %8612 = vst [vmem:[#allocation182_spill] sm:$0xff] %v6579_v54  ;;  %v1531_v17 = vsub.f32 %v1307_v22, %v1419_v11  ;;  %v1309_v39 = vmul.f32 0.020408163, %v6131_v62  ;;  %v8614_v60 = vld [vmem:[#allocation139_spill] sm:$0xff]  ;;  %v1320_v42 = vmul.f32 0.020408163, %v6248_v51  ;;  %v6595_v5 = vmul.f32 %v4164_v47, %v1967_v24 }
 0x26f   : > { %8605 = vst [vmem:[#allocation144_spill] sm:$0xff] %v6553_v33  ;;  %v6558_v49 = vpop.permute.xlu1 %2481  ;;  %2781 = vperm.xlu1 %4016, %v6546_v43   ;;  %v6561_v14 = vpop.permute.xlu0 %2516  ;;  %v1430_v26 = vmul.f32 %v6553_v33, %v6553_v33  ;;  %v6591_v63 = vmul.f32 0.020408163, %v8614_v60  ;;  %4177 = vrsqrt.f32 %v1760_v20  ;;  %v1762_v16 = vadd.f32 1e-05, %v1650_v6  ;;  %v1969_v11 = vld [vmem:[%s5683_s21 + $0x230] sm:$0xff] }
 0x270   : > { %8606 = vst [vmem:[#allocation180_spill] sm:$0xff] %v6558_v49  ;;  %8607 = vst [vmem:[#allocation181_spill] sm:$0xff] %v6561_v14  ;;  %2836 = vperm.xlu0 %4015, %v6555_v31   ;;  %v6577_v49 = vmul.f32 0.020408163, %v8610_v4  ;;  %v4166_v14 = vpop.eup %4165  ;;  %v1421_v4 = vmul.f32 %v6567_v35, %v6567_v35  ;;  %v1652_v22 = vmax.f32 %v1540_v0, 0.0  ;;  %v8616_v35 = vld [vmem:[#allocation3_spill] sm:$0xff]  ;;  %4179 = vrsqrt.f32 %v1751_v1 }
 0x271   : > { %8615 = vst [vmem:[#allocation139_spill] sm:$0xff] %v6591_v63  ;;  %v4168_v62 = vpop.eup %4167  ;;  %v1542_v10 = vsub.f32 %v1318_v57, %v1430_v26  ;;  %v6603_v60 = vmul.f32 %v4166_v14, %v1978_v3  ;;  %v1643_v47 = vmax.f32 %v1531_v17, 0.0  ;;  %v1311_v20 = vmul.f32 0.020408163, %v6155_v15  ;;  %v1980_v0 = vld [vmem:[%s5683_s21 + $0x288] sm:$0xff]  ;;  %v8620_v57 = vld [vmem:[#allocation141_spill] sm:$0xff] }
 0x272   : > { %8611 = vst [vmem:[#allocation2_spill] sm:$0xff] %v6577_v49  ;;  %v1432_v33 = vmul.f32 %v6577_v49, %v6577_v49  ;;  %v4170_v51 = vpop.eup %4169  ;;  %v1533_v24 = vsub.f32 %v1309_v39, %v1421_v4  ;;  %v6615_v14 = vmul.f32 0.020408163, %v8620_v57  ;;  %4181 = vrsqrt.f32 %v1762_v16  ;;  %v1971_v4 = vld [vmem:[%s5683_s21 + $0x240] sm:$0xff] }
 0x273   : > { %v6582_v36 = vpop.permute.xlu1 %2486  ;;  %2791 = vperm.xlu1 %4016, %v6570_v19   ;;  %v6585_v41 = vpop.permute.xlu0 %2526  ;;  %v1764_v15 = vadd.f32 1e-05, %v1652_v22  ;;  %v1654_v39 = vmax.f32 %v1542_v10, 0.0  ;;  %v1322_v3 = vmul.f32 0.020408163, %v6272_v48 }
 0x274   : > { %8613 = vst [vmem:[#allocation183_spill] sm:$0xff] %v6585_v41  ;;  %2846 = vperm.xlu0 %4015, %v6579_v54   ;;  %v6601_v41 = vmul.f32 0.020408163, %v8616_v35  ;;  %v1753_v54 = vadd.f32 1e-05, %v1641_v7  ;;  %v1423_v35 = vmul.f32 %v6591_v63, %v6591_v63  ;;  %8621 = vst [vmem:[#allocation141_spill] sm:$0xff] %v6615_v14  ;;  %v1544_v1 = vsub.f32 %v1320_v42, %v1432_v33  ;;  %v4172_v17 = vpop.eup %4171 }
 0x275   : > { %v6618_v7 = vmul.f32 %v4168_v62, %v1969_v11  ;;  %v4174_v49 = vpop.eup %4173  ;;  %v1313_v33 = vmul.f32 0.020408163, %v6179_v23  ;;  %v6628_v42 = vmul.f32 %v4170_v51, %v1980_v0  ;;  %v1755_v62 = vadd.f32 1e-05, %v1643_v47  ;;  %v1982_v11 = vld [vmem:[%s5683_s21 + $0x298] sm:$0xff]  ;;  %v1973_v0 = vld [vmem:[%s5683_s21 + $0x250] sm:$0xff] }
 0x276   : > { %8617 = vst [vmem:[#allocation3_spill] sm:$0xff] %v6601_v41  ;;  %v1434_v63 = vmul.f32 %v6601_v41, %v6601_v41  ;;  %4183 = vrsqrt.f32 %v1753_v54  ;;  %v1645_v16 = vmax.f32 %v1533_v24, 0.0  ;;  %v1535_v22 = vsub.f32 %v1311_v20, %v1423_v35  ;;  %v8626_v41 = vld [vmem:[#allocation143_spill] sm:$0xff]  ;;  %v4176_v51 = vpop.eup %4175 }
 0x277   : > { %v6606_v6 = vpop.permute.xlu1 %2491  ;;  %2801 = vperm.xlu1 %4016, %v6595_v5   ;;  %v6609_v26 = vpop.permute.xlu0 %2536  ;;  %8624 = vst [vmem:[#allocation186_spill] sm:$0xff] %v6628_v42  ;;  %v1656_v23 = vmax.f32 %v1544_v1, 0.0  ;;  %v6642_v54 = vmul.f32 %v4172_v17, %v1971_v4  ;;  %4185 = vrsqrt.f32 %v1764_v15  ;;  %v1766_v47 = vadd.f32 1e-05, %v1654_v39  ;;  %v1984_v39 = vld [vmem:[%s5683_s21 + $0x2a8] sm:$0xff] }
 0x278   : > { %8618 = vst [vmem:[#allocation184_spill] sm:$0xff] %v6606_v6  ;;  %8619 = vst [vmem:[#allocation185_spill] sm:$0xff] %v6609_v26  ;;  %2856 = vperm.xlu0 %4015, %v6603_v60   ;;  %v8622_v6 = vld [vmem:[#allocation5_spill] sm:$0xff]  ;;  %v6639_v26 = vmul.f32 0.020408163, %v8626_v41  ;;  %v1546_v24 = vsub.f32 %v1322_v3, %v1434_v63  ;;  %v6651_v1 = vmul.f32 %v4174_v49, %v1982_v11  ;;  %4187 = vrsqrt.f32 %v1755_v62 }
 0x279   : > { %v6625_v57 = vmul.f32 0.020408163, %v8622_v6  ;;  %v1425_v6 = vmul.f32 %v6615_v14, %v6615_v14  ;;  %v1324_v20 = vmul.f32 0.020408163, %v6296_v55  ;;  %v8628_v14 = vld [vmem:[#allocation7_spill] sm:$0xff]  ;;  %v1647_v4 = vmax.f32 %v1535_v22, 0.0 }
 0x27a   : > { %8627 = vst [vmem:[#allocation143_spill] sm:$0xff] %v6639_v26  ;;  %v1757_v17 = vadd.f32 1e-05, %v1645_v16  ;;  %v1315_v15 = vmul.f32 0.020408163, %v6203_v38  ;;  %v8632_v49 = vld [vmem:[#allocation145_spill] sm:$0xff]  ;;  %v6666_v16 = vmul.f32 %v4176_v51, %v1973_v0  ;;  %4189 = vrsqrt.f32 %v1766_v47 }
 0x27b   : > { %8623 = vst [vmem:[#allocation5_spill] sm:$0xff] %v6625_v57  ;;  %v6630_v10 = vpop.permute.xlu1 %2496  ;;  %2811 = vperm.xlu1 %4016, %v6618_v7   ;;  %v6633_v48 = vpop.permute.xlu0 %2546  ;;  %v1436_v35 = vmul.f32 %v6625_v57, %v6625_v57  ;;  %v1537_v41 = vsub.f32 %v1313_v33, %v1425_v6  ;;  %v6663_v33 = vmul.f32 0.020408163, %v8632_v49  ;;  %v1768_v62 = vadd.f32 1e-05, %v1656_v23  ;;  %v1975_v6 = vld [vmem:[%s5683_s21 + $0x260] sm:$0xff] }
 0x27c   : > { %8625 = vst [vmem:[#allocation187_spill] sm:$0xff] %v6633_v48  ;;  %2866 = vperm.xlu0 %4015, %v6628_v42   ;;  %v6649_v48 = vmul.f32 0.020408163, %v8628_v14  ;;  %v4178_v42 = vpop.eup %4177  ;;  %v1427_v14 = vmul.f32 %v6639_v26, %v6639_v26  ;;  %v1658_v38 = vmax.f32 %v1546_v24, 0.0  ;;  %v1326_v11 = vmul.f32 0.020408163, %v6320_v18 }
 0x27d   : > { %v4180_v3 = vpop.eup %4179  ;;  %8633 = vst [vmem:[#allocation145_spill] sm:$0xff] %v6663_v33  ;;  %v1548_v22 = vsub.f32 %v1324_v20, %v1436_v35  ;;  %v1649_v49 = vmax.f32 %v1537_v41, 0.0  ;;  %4191 = vrsqrt.f32 %v1757_v17  ;;  %v1759_v51 = vadd.f32 1e-05, %v1647_v4  ;;  %v1986_v20 = vld [vmem:[%s5683_s21 + $0x2b8] sm:$0xff]  ;;  %v8638_v41 = vld [vmem:[#allocation146_spill] sm:$0xff] }
 0x27e   : > { %8629 = vst [vmem:[#allocation7_spill] sm:$0xff] %v6649_v48  ;;  %v1438_v57 = vmul.f32 %v6649_v48, %v6649_v48  ;;  %v4182_v23 = vpop.eup %4181  ;;  %v1539_v0 = vsub.f32 %v1315_v15, %v1427_v14  ;;  %v1317_v47 = vmul.f32 0.020408163, %v6227_v37  ;;  %v1429_v35 = vmul.f32 %v6663_v33, %v6663_v33  ;;  %v1977_v14 = vld [vmem:[%s5683_s21 + $0x270] sm:$0xff]  ;;  %v8640_v33 = vld [vmem:[#allocation11_spill] sm:$0xff] }
 0x27f   : > { %v6654_v63 = vpop.permute.xlu1 %2501  ;;  %2821 = vperm.xlu1 %4016, %v6642_v54   ;;  %v6657_v55 = vpop.permute.xlu0 %2556  ;;  %4193 = vrsqrt.f32 %v1768_v62  ;;  %v6690_v17 = vmul.f32 %v4180_v3, %v1975_v6  ;;  %v1770_v37 = vadd.f32 1e-05, %v1658_v38  ;;  %v1660_v15 = vmax.f32 %v1548_v22, 0.0  ;;  %v1988_v22 = vld [vmem:[%s5683_s21 + $0x2c8] sm:$0xff] }
 0x280   : > { %8630 = vst [vmem:[#allocation188_spill] sm:$0xff] %v6654_v63  ;;  %8631 = vst [vmem:[#allocation189_spill] sm:$0xff] %v6657_v55  ;;  %2876 = vperm.xlu0 %4015, %v6651_v1   ;;  %v8634_v55 = vld [vmem:[#allocation9_spill] sm:$0xff]  ;;  %v6675_v63 = vmul.f32 %v4178_v42, %v1984_v39  ;;  %v6687_v42 = vmul.f32 0.020408163, %v8638_v41  ;;  %v4184_v4 = vpop.eup %4183  ;;  %v6699_v62 = vmul.f32 %v4182_v23, %v1986_v20  ;;  %4195 = vrsqrt.f32 %v1759_v51 }
 0x281   : > { %v6673_v26 = vmul.f32 0.020408163, %v8634_v55  ;;  %v1550_v55 = vsub.f32 %v1326_v11, %v1438_v57  ;;  %v1328_v39 = vmul.f32 0.020408163, %v6344_v8  ;;  %v1761_v41 = vadd.f32 1e-05, %v1649_v49 }
 0x282   : > { %8639 = vst [vmem:[#allocation146_spill] sm:$0xff] %v6687_v42  ;;  %v1651_v3 = vmax.f32 %v1539_v0, 0.0  ;;  %v1541_v6 = vsub.f32 %v1317_v47, %v1429_v35  ;;  %v1319_v38 = vmul.f32 0.020408163, %v6251_v40  ;;  %v8644_v11 = vld [vmem:[#allocation4_spill] sm:$0xff]  ;;  %v6715_v51 = vmul.f32 %v4184_v4, %v1977_v14  ;;  %v1979_v35 = vld [vmem:[%s5683_s21 + $0x280] sm:$0xff] }
 0x283   : > { %8635 = vst [vmem:[#allocation9_spill] sm:$0xff] %v6673_v26  ;;  %v6678_v24 = vpop.permute.xlu1 %2511  ;;  %2831 = vperm.xlu1 %4016, %v6666_v16   ;;  %v6681_v18 = vpop.permute.xlu0 %2566  ;;  %v1440_v48 = vmul.f32 %v6673_v26, %v6673_v26  ;;  %v6711_v49 = vmul.f32 0.020408163, %v8644_v11  ;;  %v1330_v23 = vmul.f32 0.020408163, %v6368_v50  ;;  %4197 = vrsqrt.f32 %v1770_v37 }
 0x284   : > { %8636 = vst [vmem:[#allocation190_spill] sm:$0xff] %v6678_v24  ;;  %8637 = vst [vmem:[#allocation191_spill] sm:$0xff] %v6681_v18  ;;  %2886 = vperm.xlu0 %4015, %v6675_v63   ;;  %v6697_v18 = vmul.f32 0.020408163, %v8640_v33  ;;  %v4186_v24 = vpop.eup %4185  ;;  %v1431_v33 = vmul.f32 %v6687_v42, %v6687_v42  ;;  %v1772_v0 = vadd.f32 1e-05, %v1660_v15  ;;  %4199 = vrsqrt.f32 %v1761_v41 }
 0x285   : > { %8645 = vst [vmem:[#allocation4_spill] sm:$0xff] %v6711_v49  ;;  %v4188_v40 = vpop.eup %4187  ;;  %v1662_v47 = vmax.f32 %v1550_v55, 0.0  ;;  %v1552_v20 = vsub.f32 %v1328_v39, %v1440_v48  ;;  %v8646_v42 = vld [vmem:[#allocation13_spill] sm:$0xff]  ;;  %v6723_v11 = vmul.f32 %v4186_v24, %v1988_v22  ;;  %v1653_v4 = vmax.f32 %v1541_v6, 0.0  ;;  %v8650_v39 = vld [vmem:[#allocation6_spill] sm:$0xff] }
 0x286   : > { %8641 = vst [vmem:[#allocation11_spill] sm:$0xff] %v6697_v18  ;;  %v1442_v26 = vmul.f32 %v6697_v18, %v6697_v18  ;;  %v4190_v50 = vpop.eup %4189  ;;  %v1543_v14 = vsub.f32 %v1319_v38, %v1431_v33  ;;  %v1321_v37 = vmul.f32 0.020408163, %v6275_v13  ;;  %v1990_v55 = vld [vmem:[%s5683_s21 + $0x2d8] sm:$0xff]  ;;  %v6735_v24 = vmul.f32 0.020408163, %v8650_v39 }
 0x287   : > { %v6702_v57 = vpop.permute.xlu1 %2521  ;;  %2841 = vperm.xlu1 %4016, %v6690_v17   ;;  %v6705_v8 = vpop.permute.xlu0 %2576  ;;  %4201 = vrsqrt.f32 %v1772_v0  ;;  %v1774_v13 = vadd.f32 1e-05, %v1662_v47  ;;  %v1664_v38 = vmax.f32 %v1552_v20, 0.0  ;;  %v1332_v22 = vmul.f32 0.020408163, %v6392_v59  ;;  %v1981_v33 = vld [vmem:[%s5683_s21 + $0x290] sm:$0xff] }
 0x288   : > { %8642 = vst [vmem:[#allocation192_spill] sm:$0xff] %v6702_v57  ;;  %8643 = vst [vmem:[#allocation193_spill] sm:$0xff] %v6705_v8  ;;  %2896 = vperm.xlu0 %4015, %v6699_v62   ;;  %v6721_v8 = vmul.f32 0.020408163, %v8646_v42  ;;  %v1763_v57 = vadd.f32 1e-05, %v1651_v3  ;;  %v1433_v42 = vmul.f32 %v6711_v49, %v6711_v49  ;;  %v1554_v41 = vsub.f32 %v1330_v23, %v1442_v26  ;;  %v4192_v6 = vpop.eup %4191 }
 0x289   : > { %8651 = vst [vmem:[#allocation6_spill] sm:$0xff] %v6735_v24  ;;  %v6738_v3 = vmul.f32 %v4188_v40, %v1979_v35  ;;  %v4194_v18 = vpop.eup %4193  ;;  %v8654_v26 = vld [vmem:[#allocation15_spill] sm:$0xff]  ;;  %v6750_v40 = vmul.f32 %v4190_v50, %v1990_v55  ;;  %v1765_v0 = vadd.f32 1e-05, %v1653_v4  ;;  %v1655_v47 = vmax.f32 %v1543_v14, 0.0 }
 0x28a   : > { %8647 = vst [vmem:[#allocation13_spill] sm:$0xff] %v6721_v8  ;;  %v1444_v39 = vmul.f32 %v6721_v8, %v6721_v8  ;;  %v6748_v23 = vmul.f32 0.020408163, %v8654_v26  ;;  %4203 = vrsqrt.f32 %v1763_v57  ;;  %v1545_v20 = vsub.f32 %v1321_v37, %v1433_v42  ;;  %v4196_v50 = vpop.eup %4195  ;;  %v1983_v37 = vld [vmem:[%s5683_s21 + $0x2a0] sm:$0xff] }
 0x28b   : > { %v6726_v15 = vpop.permute.xlu1 %2531  ;;  %2851 = vperm.xlu1 %4016, %v6715_v51   ;;  %v6729_v48 = vpop.permute.xlu0 %2586  ;;  %v1323_v49 = vmul.f32 0.020408163, %v6299_v45  ;;  %v1666_v8 = vmax.f32 %v1554_v41, 0.0  ;;  %v6760_v26 = vmul.f32 %v4192_v6, %v1981_v33  ;;  %4205 = vrsqrt.f32 %v1774_v13  ;;  %v8659_v45 = vld [vmem:[#allocation17_spill] sm:$0xff] }
 0x28c   : > { %8648 = vst [vmem:[#allocation194_spill] sm:$0xff] %v6726_v15  ;;  %8649 = vst [vmem:[#allocation195_spill] sm:$0xff] %v6729_v48  ;;  %2906 = vperm.xlu0 %4015, %v6723_v11   ;;  %v8652_v48 = vld [vmem:[#allocation8_spill] sm:$0xff]  ;;  %v1776_v57 = vadd.f32 1e-05, %v1664_v38  ;;  %v1556_v4 = vsub.f32 %v1332_v22, %v1444_v39  ;;  %v1435_v55 = vmul.f32 %v6735_v24, %v6735_v24  ;;  %4207 = vrsqrt.f32 %v1765_v0  ;;  %v1994_v39 = vld [vmem:[%s5683_s21 + $0x2f8] sm:$0xff] }
 0x28d   : > { %v6743_v15 = vmul.f32 0.020408163, %v8652_v48  ;;  %8655 = vst [vmem:[#allocation15_spill] sm:$0xff] %v6748_v23  ;;  %v1992_v48 = vld [vmem:[%s5683_s21 + $0x2e8] sm:$0xff]  ;;  %8658 = vst [vmem:[#allocation198_spill] sm:$0xff] %v6760_v26  ;;  %v4198_v6 = vpop.eup %4197  ;;  %v1446_v13 = vmul.f32 %v6748_v23, %v6748_v23  ;;  %v6783_v24 = vmul.f32 %v4196_v50, %v1983_v37  ;;  %v1985_v23 = vld [vmem:[%s5683_s21 + $0x2b0] sm:$0xff] }
 0x28e   : > { %v1334_v14 = vmul.f32 0.020408163, %v6416_v58  ;;  %v6769_v41 = vmul.f32 0.020408163, %v8659_v45  ;;  %v1767_v38 = vadd.f32 1e-05, %v1655_v47  ;;  %v1547_v45 = vsub.f32 %v1323_v49, %v1435_v55 }
 0x28f   : > { %8653 = vst [vmem:[#allocation8_spill] sm:$0xff] %v6743_v15  ;;  %v6752_v35 = vpop.permute.xlu1 %2541  ;;  %2861 = vperm.xlu1 %4016, %v6738_v3   ;;  %v6755_v59 = vpop.permute.xlu0 %2596  ;;  %v1437_v42 = vmul.f32 %v6743_v15, %v6743_v15  ;;  %v1657_v58 = vmax.f32 %v1545_v20, 0.0  ;;  %4209 = vrsqrt.f32 %v1776_v57  ;;  %v1668_v0 = vmax.f32 %v1556_v4, 0.0  ;;  %v8667_v50 = vld [vmem:[#allocation19_spill] sm:$0xff] }
 0x290   : > { %8656 = vst [vmem:[#allocation196_spill] sm:$0xff] %v6752_v35  ;;  %8657 = vst [vmem:[#allocation197_spill] sm:$0xff] %v6755_v59  ;;  %2916 = vperm.xlu0 %4015, %v6750_v40   ;;  %v6771_v59 = vmul.f32 %v4194_v18, %v1992_v48  ;;  %v4200_v15 = vpop.eup %4199  ;;  %v1325_v18 = vmul.f32 0.020408163, %v6323_v34  ;;  %v1778_v48 = vadd.f32 1e-05, %v1666_v8  ;;  %v1558_v47 = vsub.f32 %v1334_v14, %v1446_v13 }
 0x291   : > { %8660 = vst [vmem:[#allocation17_spill] sm:$0xff] %v6769_v41  ;;  %v1336_v20 = vmul.f32 0.020408163, %v6440_v46  ;;  %v1448_v34 = vmul.f32 %v6769_v41, %v6769_v41  ;;  %v6795_v8 = vmul.f32 %v4198_v6, %v1994_v39  ;;  %v4202_v49 = vpop.eup %4201  ;;  %v6798_v37 = vmul.f32 0.020408163, %v8667_v50  ;;  %v1996_v55 = vld [vmem:[%s5683_s21 + $0x308] sm:$0xff] }
 0x292   : > { %4211 = vrsqrt.f32 %v1767_v38  ;;  %v1769_v57 = vadd.f32 1e-05, %v1657_v58  ;;  %v6805_v14 = vmul.f32 %v4200_v15, %v1985_v23  ;;  %v1659_v13 = vmax.f32 %v1547_v45, 0.0  ;;  %v1987_v41 = vld [vmem:[%s5683_s21 + $0x2c0] sm:$0xff] }
 0x293   : > { %v6775_v22 = vpop.permute.xlu1 %2551  ;;  %2871 = vperm.xlu1 %4016, %v6760_v26   ;;  %v6778_v33 = vpop.permute.xlu0 %2606  ;;  %8668 = vst [vmem:[#allocation19_spill] sm:$0xff] %v6798_v37  ;;  %v1327_v6 = vmul.f32 0.020408163, %v6347_v32  ;;  %4213 = vrsqrt.f32 %v1778_v48  ;;  %v1780_v38 = vadd.f32 1e-05, %v1668_v0  ;;  %v1670_v58 = vmax.f32 %v1558_v47, 0.0 }
 0x294   : > { %8661 = vst [vmem:[#allocation199_spill] sm:$0xff] %v6775_v22  ;;  %8662 = vst [vmem:[#allocation200_spill] sm:$0xff] %v6778_v33  ;;  %2926 = vperm.xlu0 %4015, %v6771_v59   ;;  %v8663_v22 = vld [vmem:[#allocation10_spill] sm:$0xff]  ;;  %v8665_v33 = vld [vmem:[#allocation12_spill] sm:$0xff]  ;;  %v1560_v39 = vsub.f32 %v1336_v20, %v1448_v34  ;;  %v1338_v50 = vmul.f32 0.020408163, %v6464_v28  ;;  %v6814_v23 = vmul.f32 %v4202_v49, %v1996_v55  ;;  %4215 = vrsqrt.f32 %v1769_v57 }
 0x295   : > { %v6788_v35 = vmul.f32 0.020408163, %v8663_v22  ;;  %v6791_v26 = vmul.f32 0.020408163, %v8665_v33  ;;  %v1549_v22 = vsub.f32 %v1325_v18, %v1437_v42  ;;  %v4204_v33 = vpop.eup %4203  ;;  %v1450_v42 = vmul.f32 %v6798_v37, %v6798_v37  ;;  %v1998_v0 = vld [vmem:[%s5683_s21 + $0x318] sm:$0xff]  ;;  %v8672_v37 = vld [vmem:[#allocation14_spill] sm:$0xff] }
 0x296   : > { %v4206_v45 = vpop.eup %4205  ;;  %v1329_v18 = vmul.f32 0.020408163, %v6371_v61  ;;  %v1771_v47 = vadd.f32 1e-05, %v1659_v13  ;;  %v6828_v49 = vmul.f32 %v4204_v33, %v1987_v41  ;;  %4217 = vrsqrt.f32 %v1780_v38  ;;  %v2000_v41 = vld [vmem:[%s5683_s21 + $0x328] sm:$0xff] }
 0x297   : > { %8664 = vst [vmem:[#allocation10_spill] sm:$0xff] %v6788_v35  ;;  %8666 = vst [vmem:[#allocation12_spill] sm:$0xff] %v6791_v26  ;;  %v6800_v4 = vpop.permute.xlu1 %2561  ;;  %2881 = vperm.xlu1 %4016, %v6783_v24   ;;  %v6803_v46 = vpop.permute.xlu0 %2616  ;;  %v1439_v15 = vmul.f32 %v6788_v35, %v6788_v35  ;;  %v1441_v32 = vmul.f32 %v6791_v26, %v6791_v26  ;;  %v1661_v20 = vmax.f32 %v1549_v22, 0.0  ;;  %v1782_v57 = vadd.f32 1e-05, %v1670_v58 }
 0x298   : > { %8669 = vst [vmem:[#allocation201_spill] sm:$0xff] %v6803_v46  ;;  %2936 = vperm.xlu0 %4015, %v6795_v8   ;;  %v4208_v55 = vpop.eup %4207  ;;  %v1672_v61 = vmax.f32 %v1560_v39, 0.0  ;;  %v1562_v26 = vsub.f32 %v1338_v50, %v1450_v42  ;;  %v6831_v35 = vmul.f32 0.020408163, %v8672_v37  ;;  %4219 = vrsqrt.f32 %v1771_v47  ;;  %v8674_v42 = vld [vmem:[#allocation16_spill] sm:$0xff]  ;;  %v1991_v47 = vld [vmem:[%s5683_s21 + $0x2e0] sm:$0xff] }
 0x299   : > { %v1551_v34 = vsub.f32 %v1327_v6, %v1439_v15  ;;  %v4210_v46 = vpop.eup %4209  ;;  %v1553_v13 = vsub.f32 %v1329_v18, %v1441_v32  ;;  %v1773_v33 = vadd.f32 1e-05, %v1661_v20  ;;  %v1331_v58 = vmul.f32 0.020408163, %v6395_v27 }
 0x29a   : > { %8673 = vst [vmem:[#allocation14_spill] sm:$0xff] %v6831_v35  ;;  %4221 = vrsqrt.f32 %v1782_v57  ;;  %v1784_v39 = vadd.f32 1e-05, %v1672_v61  ;;  %v1674_v50 = vmax.f32 %v1562_v26, 0.0  ;;  %v1443_v32 = vmul.f32 %v6831_v35, %v6831_v35  ;;  %v2002_v26 = vld [vmem:[%s5683_s21 + $0x338] sm:$0xff] }
 0x29b   : > { %v6821_v48 = vpop.permute.xlu1 %2571  ;;  %2891 = vperm.xlu1 %4016, %v6805_v14   ;;  %v6824_v28 = vpop.permute.xlu0 %2626  ;;  %v1663_v38 = vmax.f32 %v1551_v34, 0.0  ;;  %v6849_v18 = vmul.f32 0.020408163, %v8674_v42  ;;  %v1665_v27 = vmax.f32 %v1553_v13, 0.0  ;;  %4223 = vrsqrt.f32 %v1773_v33  ;;  %v8677_v42 = vld [vmem:[#allocation18_spill] sm:$0xff]  ;;  %v1993_v33 = vld [vmem:[%s5683_s21 + $0x2f0] sm:$0xff] }
 0x29c   : > { %8670 = vst [vmem:[#allocation202_spill] sm:$0xff] %v6821_v48  ;;  %8671 = vst [vmem:[#allocation203_spill] sm:$0xff] %v6824_v28  ;;  %2946 = vperm.xlu0 %4015, %v6814_v23   ;;  %v6833_v48 = vmul.f32 %v4206_v45, %v1998_v0  ;;  %v1989_v28 = vld [vmem:[%s5683_s21 + $0x2d0] sm:$0xff]  ;;  %v4212_v37 = vpop.eup %4211  ;;  %v6851_v0 = vmul.f32 %v4210_v46, %v2000_v41  ;;  %v1333_v57 = vmul.f32 0.020408163, %v6419_v29  ;;  %4225 = vrsqrt.f32 %v1784_v39 }
 0x29d   : > { %v6844_v15 = vmul.f32 %v4208_v55, %v1989_v28  ;;  %v4214_v45 = vpop.eup %4213  ;;  %8675 = vst [vmem:[#allocation16_spill] sm:$0xff] %v6849_v18  ;;  %v1775_v28 = vadd.f32 1e-05, %v1663_v38  ;;  %v1555_v55 = vsub.f32 %v1331_v58, %v1443_v32  ;;  %v1786_v61 = vadd.f32 1e-05, %v1674_v50 }
 0x29e   : > { %v4216_v46 = vpop.eup %4215  ;;  %v6862_v13 = vmul.f32 %v4212_v37, %v1991_v47  ;;  %v1445_v41 = vmul.f32 %v6849_v18, %v6849_v18  ;;  %v6867_v35 = vmul.f32 0.020408163, %v8677_v42  ;;  %v1777_v58 = vadd.f32 1e-05, %v1665_v27  ;;  %v2004_v37 = vld [vmem:[%s5683_s21 + $0x348] sm:$0xff]  ;;  %v8681_v42 = vld [vmem:[#allocation20_spill] sm:$0xff] }
 0x29f   : > { %v6836_v22 = vpop.permute.xlu1 %2581  ;;  %2901 = vperm.xlu1 %4016, %v6828_v49   ;;  %v6839_v6 = vpop.permute.xlu0 %2636  ;;  %4227 = vrsqrt.f32 %v1775_v28  ;;  %v1667_v50 = vmax.f32 %v1555_v55, 0.0  ;;  %v1335_v47 = vmul.f32 0.020408163, %v6453_v56  ;;  %v6885_v18 = vmul.f32 0.020408163, %v8681_v42  ;;  %v1995_v28 = vld [vmem:[%s5683_s21 + $0x300] sm:$0xff] }
 0x2a0   : > { %2956 = vperm.xlu0 %4015, %v6833_v48   ;;  %8678 = vst [vmem:[#allocation18_spill] sm:$0xff] %v6867_v35  ;;  %v4218_v38 = vpop.eup %4217  ;;  %v1557_v32 = vsub.f32 %v1333_v57, %v1445_v41  ;;  %4229 = vrsqrt.f32 %v1786_v61  ;;  %v1337_v42 = vmul.f32 0.020408163, %v6486_v9  ;;  %v2008_v9 = vld [vmem:[%s5683_s21 + $0x368] sm:$0xff] }
 0x2a1   : > { %8682 = vst [vmem:[#allocation20_spill] sm:$0xff] %v6885_v18  ;;  %4231 = vrsqrt.f32 %v1777_v58  ;;  %v1779_v61 = vadd.f32 1e-05, %v1667_v50  ;;  %v1449_v58 = vmul.f32 %v6885_v18, %v6885_v18 }
 0x2a2   : > { %v4220_v27 = vpop.eup %4219  ;;  %v1669_v41 = vmax.f32 %v1557_v32, 0.0 }
 0x2a3   : > { %v6854_v20 = vpop.permute.xlu1 %2591  ;;  %2911 = vperm.xlu1 %4016, %v6844_v15   ;;  %v6857_v34 = vpop.permute.xlu0 %2646  ;;  %4233 = vrsqrt.f32 %v1779_v61  ;;  %v2010_v61 = vld [vmem:[%s5683_s21 + $0x378] sm:$0xff] }
 0x2a4   : > { %8676 = vst [vmem:[#allocation204_spill] sm:$0xff] %v6857_v34  ;;  %2966 = vperm.xlu0 %4015, %v6851_v0   ;;  %v6869_v34 = vmul.f32 %v4214_v45, %v2002_v26  ;;  %v6880_v45 = vmul.f32 %v4216_v46, %v1993_v33  ;;  %v1447_v26 = vmul.f32 %v6867_v35, %v6867_v35  ;;  %v4222_v55 = vpop.eup %4221  ;;  %v2006_v46 = vld [vmem:[%s5683_s21 + $0x358] sm:$0xff]  ;;  %v1781_v32 = vadd.f32 1e-05, %v1669_v41 }
 0x2a5   : > { %v6902_v35 = vmul.f32 %v4222_v55, %v2006_v46  ;;  %v1999_v46 = vld [vmem:[%s5683_s21 + $0x320] sm:$0xff] }
 0x2a6   : > { %v1559_v33 = vsub.f32 %v1335_v47, %v1447_v26  ;;  %4235 = vrsqrt.f32 %v1781_v32 }
 0x2a7   : > { %v6872_v29 = vpop.permute.xlu1 %2601  ;;  %2921 = vperm.xlu1 %4016, %v6862_v13   ;;  %v6875_v39 = vpop.permute.xlu0 %2656 }
 0x2a8   : > { %8679 = vst [vmem:[#allocation205_spill] sm:$0xff] %v6872_v29  ;;  %8680 = vst [vmem:[#allocation206_spill] sm:$0xff] %v6875_v39  ;;  %2976 = vperm.xlu0 %4015, %v6869_v34   ;;  %v6887_v39 = vmul.f32 %v4218_v38, %v2004_v37  ;;  %v6898_v38 = vmul.f32 %v4220_v27, %v1995_v28  ;;  %v4224_v37 = vpop.eup %4223  ;;  %v1671_v47 = vmax.f32 %v1559_v33, 0.0 }
 0x2a9   : > { %v1561_v27 = vsub.f32 %v1337_v42, %v1449_v58  ;;  %v8693_v58 = vld [vmem:[#allocation21_spill] sm:$0xff] }
 0x2aa   : > { %v1783_v41 = vadd.f32 1e-05, %v1671_v47 }
 0x2ab   : > { %v6890_v57 = vpop.permute.xlu1 %2611  ;;  %2931 = vperm.xlu1 %4016, %v6880_v45   ;;  %v6893_v56 = vpop.permute.xlu0 %2666  ;;  %v1673_v33 = vmax.f32 %v1561_v27, 0.0 }
 0x2ac   : > { %8683 = vst [vmem:[#allocation207_spill] sm:$0xff] %v6890_v57  ;;  %8684 = vst [vmem:[#allocation208_spill] sm:$0xff] %v6893_v56  ;;  %2986 = vperm.xlu0 %4015, %v6887_v39   ;;  %v1997_v57 = vld [vmem:[%s5683_s21 + $0x310] sm:$0xff]  ;;  %v4226_v56 = vpop.eup %4225  ;;  %4237 = vrsqrt.f32 %v1783_v41  ;;  %v2126_v41 = vld [vmem:[%s6928_s24 + $0x18] sm:$0xff] }
 0x2ad   : > { %v6912_v26 = vmul.f32 %v4224_v37, %v1997_v57  ;;  %v4228_v28 = vpop.eup %4227  ;;  %v6914_v55 = vmul.f32 %v4226_v56, %v2008_v9  ;;  %v2001_v37 = vld [vmem:[%s5683_s21 + $0x330] sm:$0xff]  ;;  %v8694_v9 = vld [vmem:[#allocation58_spill] sm:$0xff] }
 0x2ae   : > { %v4230_v18 = vpop.eup %4229  ;;  %v6930_v56 = vmul.f32 %v4228_v28, %v1999_v46  ;;  %v2236_v32 = vmul.f32 %v8694_v9, %v8693_v58  ;;  %v8699_v58 = vld [vmem:[#allocation74_spill] sm:$0xff] }
 0x2af   : > { %v6905_v29 = vpop.permute.xlu1 %2621  ;;  %2941 = vperm.xlu1 %4016, %v6898_v38   ;;  %v6908_v50 = vpop.permute.xlu0 %2676  ;;  %8687 = vst [vmem:[#allocation211_spill] sm:$0xff] %v6912_v26  ;;  %8688 = vst [vmem:[#allocation212_spill] sm:$0xff] %v6914_v55  ;;  %v6932_v42 = vmul.f32 %v4230_v18, %v2010_v61  ;;  %v2003_v61 = vld [vmem:[%s5683_s21 + $0x340] sm:$0xff] }
 0x2b0   : > { %8685 = vst [vmem:[#allocation209_spill] sm:$0xff] %v6905_v29  ;;  %8686 = vst [vmem:[#allocation210_spill] sm:$0xff] %v6908_v50  ;;  %2996 = vperm.xlu0 %4015, %v6902_v35   ;;  %v4232_v57 = vpop.eup %4231 }
 0x2b1   : > { %8691 = vst [vmem:[#allocation215_spill] sm:$0xff] %v6930_v56  ;;  %8692 = vst [vmem:[#allocation216_spill] sm:$0xff] %v6932_v42  ;;  %v6944_v28 = vmul.f32 %v4232_v57, %v2001_v37  ;;  %v4234_v18 = vpop.eup %4233 }
 0x2b2   : > { %v4236_v57 = vpop.eup %4235 }
 0x2b3   : > { %v6917_v29 = vpop.permute.xlu1 %2631  ;;  %2951 = vperm.xlu1 %4016, %v6912_v26   ;;  %v6920_v50 = vpop.permute.xlu0 %2686  ;;  %8697 = vst [vmem:[#allocation217_spill] sm:$0xff] %v6944_v28 }
 0x2b4   : > { %8689 = vst [vmem:[#allocation213_spill] sm:$0xff] %v6917_v29  ;;  %8690 = vst [vmem:[#allocation214_spill] sm:$0xff] %v6920_v50  ;;  %3006 = vperm.xlu0 %4015, %v6914_v55   ;;  %v2124_v50 = vld [vmem:[%s6928_s24 + $0x8] sm:$0xff]  ;;  %v1785_v29 = vadd.f32 1e-05, %v1673_v33  ;;  %v8698_v55 = vld [vmem:[#allocation26_spill] sm:$0xff]  ;;  %v6955_v33 = vmul.f32 %v4234_v18, %v2003_v61 }
 0x2b5   : > { %v2348_v46 = vsub.f32 %v2124_v50, %v2236_v32  ;;  %v2238_v9 = vmul.f32 %v8699_v58, %v8698_v55  ;;  %v2005_v50 = vld [vmem:[%s5683_s21 + $0x350] sm:$0xff]  ;;  %v8703_v32 = vld [vmem:[#allocation34_spill] sm:$0xff] }
 0x2b6   : > { %4239 = vrsqrt.f32 %v1785_v29  ;;  %8702 = vst [vmem:[#allocation218_spill] sm:$0xff] %v6955_v33  ;;  %v6966_v29 = vmul.f32 %v4236_v57, %v2005_v50  ;;  %v4238_v18 = vpop.eup %4237  ;;  %v2007_v61 = vld [vmem:[%s5683_s21 + $0x360] sm:$0xff] }
 0x2b7   : > { %v6937_v47 = vpop.permute.xlu1 %2641  ;;  %2961 = vperm.xlu1 %4016, %v6930_v56   ;;  %v6940_v27 = vpop.permute.xlu0 %2696  ;;  %v2350_v37 = vsub.f32 %v2126_v41, %v2238_v9  ;;  %v8708_v9 = vld [vmem:[#allocation45_spill] sm:$0xff]  ;;  %v8713_v50 = vld [vmem:[#allocation78_spill] sm:$0xff] }
 0x2b8   : > { %8695 = vst [vmem:[#allocation21_spill] sm:$0xff] %v6937_v47  ;;  %8696 = vst [vmem:[#allocation58_spill] sm:$0xff] %v6940_v27  ;;  %3016 = vperm.xlu0 %4015, %v6932_v42   ;;  %v8704_v42 = vld [vmem:[#allocation89_spill] sm:$0xff]  ;;  %v2242_v41 = vmul.f32 %v5852_v44, %v8708_v9  ;;  %v2132_v9 = vld [vmem:[%s6928_s24 + $0x48] sm:$0xff] }
 0x2b9   : > { %v2240_v56 = vmul.f32 %v8704_v42, %v8703_v32  ;;  %8707 = vst [vmem:[#allocation219_spill] sm:$0xff] %v6966_v29  ;;  %v2130_v32 = vld [vmem:[%s6928_s24 + $0x38] sm:$0xff] }
 0x2bb   : > { %v6949_v47 = vpop.permute.xlu1 %2651  ;;  %2971 = vperm.xlu1 %4016, %v6944_v28   ;;  %v6952_v27 = vpop.permute.xlu0 %2706 }
 0x2bc   : > { %8700 = vst [vmem:[#allocation26_spill] sm:$0xff] %v6949_v47  ;;  %8701 = vst [vmem:[#allocation74_spill] sm:$0xff] %v6952_v27  ;;  %3138 = vperm.xlu0 %4015, %v2348_v46   ;;  %v2128_v27 = vld [vmem:[%s6928_s24 + $0x28] sm:$0xff] }
 0x2bd   : > { %v2352_v46 = vsub.f32 %v2128_v27, %v2240_v56  ;;  %v2009_v56 = vld [vmem:[%s5683_s21 + $0x370] sm:$0xff]  ;;  %v8712_v27 = vld [vmem:[#allocation29_spill] sm:$0xff] }
 0x2bf   : > { %v6960_v55 = vpop.permute.xlu1 %2661  ;;  %2981 = vperm.xlu1 %4016, %v6955_v33   ;;  %v6963_v58 = vpop.permute.xlu0 %2716 }
 0x2c0   : > { %8705 = vst [vmem:[#allocation34_spill] sm:$0xff] %v6960_v55  ;;  %8706 = vst [vmem:[#allocation89_spill] sm:$0xff] %v6963_v58  ;;  %3148 = vperm.xlu0 %4015, %v2350_v37   ;;  %v6977_v58 = vmul.f32 %v4238_v18, %v2007_v61  ;;  %v4240_v57 = vpop.eup %4239  ;;  %v2354_v37 = vsub.f32 %v2130_v32, %v2242_v41  ;;  %v2244_v55 = vmul.f32 %v8713_v50, %v8712_v27  ;;  %v8717_v18 = vld [vmem:[#allocation25_spill] sm:$0xff]  ;;  %v2123_v32 = vld [vmem:[%s6928_s24] sm:$0xff] }
 0x2c2   : > { %8711 = vst [vmem:[#allocation221_spill] sm:$0xff] %v6977_v58  ;;  %v2356_v41 = vsub.f32 %v2132_v9, %v2244_v55  ;;  %v2125_v55 = vld [vmem:[%s6928_s24 + $0x10] sm:$0xff]  ;;  %v8725_v9 = vld [vmem:[#allocation37_spill] sm:$0xff] }
 0x2c3   : > { %v6971_v47 = vpop.permute.xlu1 %2671  ;;  %2991 = vperm.xlu1 %4016, %v6966_v29   ;;  %v6974_v42 = vpop.permute.xlu0 %2726  ;;  %v8720_v29 = vld [vmem:[#allocation86_spill] sm:$0xff] }
 0x2c4   : > { %8709 = vst [vmem:[#allocation45_spill] sm:$0xff] %v6971_v47  ;;  %8710 = vst [vmem:[#allocation220_spill] sm:$0xff] %v6974_v42  ;;  %3158 = vperm.xlu0 %4015, %v2352_v46   ;;  %v6988_v42 = vmul.f32 %v4240_v57, %v2009_v56  ;;  %v8718_v46 = vld [vmem:[#allocation70_spill] sm:$0xff]  ;;  %v8719_v47 = vld [vmem:[#allocation33_spill] sm:$0xff] }
 0x2c5   : > { %v2235_v61 = vmul.f32 %v8718_v46, %v8717_v18  ;;  %v2246_v27 = vmul.f32 %v8720_v29, %v8719_v47  ;;  %v8724_v56 = vld [vmem:[#allocation66_spill] sm:$0xff]  ;;  %v8726_v46 = vld [vmem:[#allocation23_spill] sm:$0xff] }
 0x2c6   : > { %8716 = vst [vmem:[#allocation222_spill] sm:$0xff] %v6988_v42  ;;  %v2248_v28 = vmul.f32 %v8726_v46, %v8725_v9 }
 0x2c7   : > { %v6982_v33 = vpop.permute.xlu1 %2681  ;;  %3001 = vperm.xlu1 %4016, %v6977_v58   ;;  %v6985_v44 = vpop.permute.xlu0 %2736  ;;  %v2347_v57 = vsub.f32 %v2123_v32, %v2235_v61  ;;  %v8730_v61 = vld [vmem:[#allocation82_spill] sm:$0xff] }
 0x2c8   : > { %8714 = vst [vmem:[#allocation29_spill] sm:$0xff] %v6982_v33  ;;  %8715 = vst [vmem:[#allocation78_spill] sm:$0xff] %v6985_v44  ;;  %3168 = vperm.xlu0 %4015, %v2354_v37   ;;  %v2134_v44 = vld [vmem:[%s6928_s24 + $0x58] sm:$0xff]  ;;  %v8723_v37 = vld [vmem:[#allocation22_spill] sm:$0xff] }
 0x2c9   : > { %v2237_v58 = vmul.f32 %v8724_v56, %v8723_v37  ;;  %v2358_v18 = vsub.f32 %v2134_v44, %v2246_v27  ;;  %v2127_v44 = vld [vmem:[%s6928_s24 + $0x20] sm:$0xff]  ;;  %v8731_v27 = vld [vmem:[#allocation41_spill] sm:$0xff]  ;;  %v8732_v37 = vld [vmem:[#allocation96_spill] sm:$0xff] }
 0x2ca   : > { %v2250_v56 = vmul.f32 %v8732_v37, %v8731_v27 }
 0x2cb   : > { %v6995_v50 = vpop.permute.xlu1 %2691  ;;  %3011 = vperm.xlu1 %4016, %v6988_v42   ;;  %v6998_v33 = vpop.permute.xlu0 %2746 }
 0x2cc   : > { %8721 = vst [vmem:[#allocation25_spill] sm:$0xff] %v6995_v50  ;;  %8722 = vst [vmem:[#allocation70_spill] sm:$0xff] %v6998_v33  ;;  %3178 = vperm.xlu0 %4015, %v2356_v41   ;;  %v2136_v33 = vld [vmem:[%s6928_s24 + $0x68] sm:$0xff]  ;;  %v2349_v50 = vsub.f32 %v2125_v55, %v2237_v58  ;;  %v8729_v41 = vld [vmem:[#allocation30_spill] sm:$0xff] }
 0x2cd   : > { %v2239_v32 = vmul.f32 %v8730_v61, %v8729_v41  ;;  %v2360_v42 = vsub.f32 %v2136_v33, %v2248_v28  ;;  %v8736_v58 = vld [vmem:[#allocation27_spill] sm:$0xff]  ;;  %v2129_v28 = vld [vmem:[%s6928_s24 + $0x30] sm:$0xff]  ;;  %v8737_v33 = vld [vmem:[#allocation46_spill] sm:$0xff] }
 0x2ce   : > { %v8738_v41 = vld [vmem:[#allocation43_spill] sm:$0xff] }
 0x2cf   : > { %v7006_v47 = vpop.permute.xlu1 %2701  ;;  %3133 = vperm.xlu1 %4016, %v2347_v57   ;;  %v7008_v29 = vpop.permute.xlu0 %2756  ;;  %v2138_v57 = vld [vmem:[%s6928_s24 + $0x78] sm:$0xff]  ;;  %v2351_v46 = vsub.f32 %v2127_v44, %v2239_v32  ;;  %v2252_v61 = vmul.f32 %v8738_v41, %v8737_v33  ;;  %v8742_v32 = vld [vmem:[#allocation47_spill] sm:$0xff] }
 0x2d0   : > { %8727 = vst [vmem:[#allocation33_spill] sm:$0xff] %v7006_v47  ;;  %8728 = vst [vmem:[#allocation86_spill] sm:$0xff] %v7008_v29  ;;  %3188 = vperm.xlu0 %4015, %v2358_v18   ;;  %v8735_v18 = vld [vmem:[#allocation38_spill] sm:$0xff]  ;;  %v2362_v29 = vsub.f32 %v2138_v57, %v2250_v56  ;;  %v8743_v57 = vld [vmem:[#allocation53_spill] sm:$0xff] }
 0x2d1   : > { %v2241_v55 = vmul.f32 %v8736_v58, %v8735_v18  ;;  %v2131_v56 = vld [vmem:[%s6928_s24 + $0x40] sm:$0xff]  ;;  %v8744_v18 = vld [vmem:[#allocation51_spill] sm:$0xff] }
 0x2d2   : > { %v2254_v58 = vmul.f32 %v8744_v18, %v8743_v57 }
 0x2d3   : > { %v7016_v26 = vpop.permute.xlu1 %2711  ;;  %3143 = vperm.xlu1 %4016, %v2349_v50   ;;  %v7018_v9 = vpop.permute.xlu0 %2766  ;;  %v2140_v50 = vld [vmem:[%s6928_s24 + $0x88] sm:$0xff]  ;;  %v2353_v37 = vsub.f32 %v2129_v28, %v2241_v55 }
 0x2d4   : > { %8733 = vst [vmem:[#allocation22_spill] sm:$0xff] %v7016_v26  ;;  %8734 = vst [vmem:[#allocation66_spill] sm:$0xff] %v7018_v9  ;;  %3198 = vperm.xlu0 %4015, %v2360_v42   ;;  %v8741_v42 = vld [vmem:[#allocation50_spill] sm:$0xff]  ;;  %v2364_v9 = vsub.f32 %v2140_v50, %v2252_v61  ;;  %v8748_v55 = vld [vmem:[#allocation55_spill] sm:$0xff] }
 0x2d5   : > { %v2243_v44 = vmul.f32 %v8742_v32, %v8741_v42  ;;  %v2133_v61 = vld [vmem:[%s6928_s24 + $0x50] sm:$0xff]  ;;  %v8749_v50 = vld [vmem:[#allocation61_spill] sm:$0xff]  ;;  %v8750_v42 = vld [vmem:[#allocation59_spill] sm:$0xff] }
 0x2d6   : > { %v2256_v32 = vmul.f32 %v8750_v42, %v8749_v50 }
 0x2d7   : > { %v7026_v47 = vpop.permute.xlu1 %2721  ;;  %3153 = vperm.xlu1 %4016, %v2351_v46   ;;  %v7028_v27 = vpop.permute.xlu0 %2776  ;;  %v2142_v46 = vld [vmem:[%s6928_s24 + $0x98] sm:$0xff]  ;;  %v2355_v41 = vsub.f32 %v2131_v56, %v2243_v44  ;;  %v8754_v44 = vld [vmem:[#allocation63_spill] sm:$0xff] }
 0x2d8   : > { %8739 = vst [vmem:[#allocation37_spill] sm:$0xff] %v7026_v47  ;;  %8740 = vst [vmem:[#allocation23_spill] sm:$0xff] %v7028_v27  ;;  %3208 = vperm.xlu0 %4015, %v2362_v29   ;;  %v8747_v29 = vld [vmem:[#allocation57_spill] sm:$0xff]  ;;  %v2366_v27 = vsub.f32 %v2142_v46, %v2254_v58  ;;  %v2135_v58 = vld [vmem:[%s6928_s24 + $0x60] sm:$0xff] }
 0x2d9   : > { %v2245_v28 = vmul.f32 %v8748_v55, %v8747_v29  ;;  %v8755_v46 = vld [vmem:[#allocation69_spill] sm:$0xff]  ;;  %v8756_v29 = vld [vmem:[#allocation67_spill] sm:$0xff] }
 0x2da   : > { %v2258_v55 = vmul.f32 %v8756_v29, %v8755_v46 }
 0x2db   : > { %v7036_v26 = vpop.permute.xlu1 %2731  ;;  %3163 = vperm.xlu1 %4016, %v2353_v37   ;;  %v7038_v33 = vpop.permute.xlu0 %2786  ;;  %v2144_v37 = vld [vmem:[%s6928_s24 + $0xa8] sm:$0xff]  ;;  %v2357_v18 = vsub.f32 %v2133_v61, %v2245_v28 }
 0x2dc   : > { %8745 = vst [vmem:[#allocation30_spill] sm:$0xff] %v7036_v26  ;;  %8746 = vst [vmem:[#allocation82_spill] sm:$0xff] %v7038_v33  ;;  %3218 = vperm.xlu0 %4015, %v2364_v9   ;;  %v8753_v9 = vld [vmem:[#allocation65_spill] sm:$0xff]  ;;  %v2368_v33 = vsub.f32 %v2144_v37, %v2256_v32  ;;  %v8760_v28 = vld [vmem:[#allocation71_spill] sm:$0xff] }
 0x2dd   : > { %v2247_v56 = vmul.f32 %v8754_v44, %v8753_v9  ;;  %v2137_v32 = vld [vmem:[%s6928_s24 + $0x70] sm:$0xff]  ;;  %v8761_v37 = vld [vmem:[#allocation77_spill] sm:$0xff]  ;;  %v8762_v9 = vld [vmem:[#allocation75_spill] sm:$0xff] }
 0x2de   : > { %v2260_v44 = vmul.f32 %v8762_v9, %v8761_v37 }
 0x2df   : > { %v7046_v47 = vpop.permute.xlu1 %2741  ;;  %3173 = vperm.xlu1 %4016, %v2355_v41   ;;  %v7048_v57 = vpop.permute.xlu0 %2796  ;;  %v2146_v41 = vld [vmem:[%s6928_s24 + $0xb8] sm:$0xff]  ;;  %v2359_v42 = vsub.f32 %v2135_v58, %v2247_v56  ;;  %v8766_v56 = vld [vmem:[#allocation79_spill] sm:$0xff] }
 0x2e0   : > { %8751 = vst [vmem:[#allocation41_spill] sm:$0xff] %v7046_v47  ;;  %8752 = vst [vmem:[#allocation96_spill] sm:$0xff] %v7048_v57  ;;  %3228 = vperm.xlu0 %4015, %v2366_v27   ;;  %v8759_v27 = vld [vmem:[#allocation73_spill] sm:$0xff]  ;;  %v2370_v57 = vsub.f32 %v2146_v41, %v2258_v55  ;;  %v2139_v55 = vld [vmem:[%s6928_s24 + $0x80] sm:$0xff] }
 0x2e1   : > { %v2249_v61 = vmul.f32 %v8760_v28, %v8759_v27  ;;  %v8767_v41 = vld [vmem:[#allocation85_spill] sm:$0xff]  ;;  %v8768_v27 = vld [vmem:[#allocation83_spill] sm:$0xff] }
 0x2e2   : > { %v2262_v28 = vmul.f32 %v8768_v27, %v8767_v41 }
 0x2e3   : > { %v7056_v26 = vpop.permute.xlu1 %2751  ;;  %3183 = vperm.xlu1 %4016, %v2357_v18   ;;  %v7058_v50 = vpop.permute.xlu0 %2806  ;;  %v2148_v18 = vld [vmem:[%s6928_s24 + $0xc8] sm:$0xff]  ;;  %v2361_v29 = vsub.f32 %v2137_v32, %v2249_v61 }
 0x2e4   : > { %8757 = vst [vmem:[#allocation38_spill] sm:$0xff] %v7056_v26  ;;  %8758 = vst [vmem:[#allocation27_spill] sm:$0xff] %v7058_v50  ;;  %3238 = vperm.xlu0 %4015, %v2368_v33   ;;  %v8765_v33 = vld [vmem:[#allocation81_spill] sm:$0xff]  ;;  %v2372_v50 = vsub.f32 %v2148_v18, %v2260_v44  ;;  %v8772_v61 = vld [vmem:[#allocation87_spill] sm:$0xff] }
 0x2e5   : > { %v2251_v58 = vmul.f32 %v8766_v56, %v8765_v33  ;;  %v2141_v44 = vld [vmem:[%s6928_s24 + $0x90] sm:$0xff]  ;;  %v8773_v18 = vld [vmem:[#allocation90_spill] sm:$0xff]  ;;  %v8774_v33 = vld [vmem:[#allocation91_spill] sm:$0xff] }
 0x2e6   : > { %v2264_v56 = vmul.f32 %v8774_v33, %v8773_v18 }
 0x2e7   : > { %v7066_v47 = vpop.permute.xlu1 %2761  ;;  %3193 = vperm.xlu1 %4016, %v2359_v42   ;;  %v7068_v46 = vpop.permute.xlu0 %2816  ;;  %v2150_v42 = vld [vmem:[%s6928_s24 + $0xd8] sm:$0xff]  ;;  %v2363_v9 = vsub.f32 %v2139_v55, %v2251_v58  ;;  %v8778_v58 = vld [vmem:[#allocation94_spill] sm:$0xff] }
 0x2e8   : > { %8763 = vst [vmem:[#allocation46_spill] sm:$0xff] %v7066_v47  ;;  %8764 = vst [vmem:[#allocation43_spill] sm:$0xff] %v7068_v46  ;;  %3248 = vperm.xlu0 %4015, %v2370_v57   ;;  %v8771_v57 = vld [vmem:[#allocation28_spill] sm:$0xff]  ;;  %v2374_v46 = vsub.f32 %v2150_v42, %v2262_v28  ;;  %v2143_v28 = vld [vmem:[%s6928_s24 + $0xa0] sm:$0xff] }
 0x2e9   : > { %v2253_v32 = vmul.f32 %v8772_v61, %v8771_v57  ;;  %v8779_v42 = vld [vmem:[#allocation39_spill] sm:$0xff]  ;;  %v8780_v57 = vld [vmem:[#allocation98_spill] sm:$0xff] }
 0x2ea   : > { %v2266_v61 = vmul.f32 %v8780_v57, %v8779_v42 }
 0x2eb   : > { %v7076_v26 = vpop.permute.xlu1 %2771  ;;  %3203 = vperm.xlu1 %4016, %v2361_v29   ;;  %v7078_v37 = vpop.permute.xlu0 %2826  ;;  %v2152_v29 = vld [vmem:[%s6928_s24 + $0xe8] sm:$0xff]  ;;  %v2365_v27 = vsub.f32 %v2141_v44, %v2253_v32  ;;  %v8784_v32 = vld [vmem:[#allocation88_spill] sm:$0xff] }
 0x2ec   : > { %8769 = vst [vmem:[#allocation50_spill] sm:$0xff] %v7076_v26  ;;  %8770 = vst [vmem:[#allocation47_spill] sm:$0xff] %v7078_v37  ;;  %3258 = vperm.xlu0 %4015, %v2372_v50   ;;  %v8777_v50 = vld [vmem:[#allocation93_spill] sm:$0xff]  ;;  %v2376_v37 = vsub.f32 %v2152_v29, %v2264_v56  ;;  %v2145_v56 = vld [vmem:[%s6928_s24 + $0xb0] sm:$0xff] }
 0x2ed   : > { %v2255_v55 = vmul.f32 %v8778_v58, %v8777_v50  ;;  %v8785_v29 = vld [vmem:[#allocation32_spill] sm:$0xff]  ;;  %v8786_v50 = vld [vmem:[#allocation95_spill] sm:$0xff] }
 0x2ee   : > { %v2268_v58 = vmul.f32 %v8786_v50, %v8785_v29 }
 0x2ef   : > { %v7086_v47 = vpop.permute.xlu1 %2781  ;;  %3213 = vperm.xlu1 %4016, %v2363_v9   ;;  %v7088_v41 = vpop.permute.xlu0 %2836  ;;  %v2154_v9 = vld [vmem:[%s6928_s24 + $0xf8] sm:$0xff]  ;;  %v2367_v33 = vsub.f32 %v2143_v28, %v2255_v55  ;;  %v8790_v55 = vld [vmem:[#allocation147_spill] sm:$0xff] }
 0x2f0   : > { %8775 = vst [vmem:[#allocation53_spill] sm:$0xff] %v7086_v47  ;;  %8776 = vst [vmem:[#allocation51_spill] sm:$0xff] %v7088_v41  ;;  %3268 = vperm.xlu0 %4015, %v2374_v46   ;;  %v8783_v46 = vld [vmem:[#allocation97_spill] sm:$0xff]  ;;  %v2378_v41 = vsub.f32 %v2154_v9, %v2266_v61  ;;  %v2147_v61 = vld [vmem:[%s6928_s24 + $0xc0] sm:$0xff] }
 0x2f1   : > { %v2257_v44 = vmul.f32 %v8784_v32, %v8783_v46  ;;  %v8791_v9 = vld [vmem:[#allocation36_spill] sm:$0xff] }
 0x2f2   : > { %v8792_v46 = vld [vmem:[#allocation148_spill] sm:$0xff] }
 0x2f3   : > { %v7096_v26 = vpop.permute.xlu1 %2791  ;;  %3223 = vperm.xlu1 %4016, %v2365_v27   ;;  %v7098_v18 = vpop.permute.xlu0 %2846  ;;  %v2156_v27 = vld [vmem:[%s6928_s24 + $0x108] sm:$0xff]  ;;  %v2369_v57 = vsub.f32 %v2145_v56, %v2257_v44  ;;  %v2270_v32 = vmul.f32 %v8792_v46, %v8791_v9  ;;  %v8796_v44 = vld [vmem:[#allocation149_spill] sm:$0xff] }
 0x2f4   : > { %8781 = vst [vmem:[#allocation57_spill] sm:$0xff] %v7096_v26  ;;  %8782 = vst [vmem:[#allocation55_spill] sm:$0xff] %v7098_v18  ;;  %3278 = vperm.xlu0 %4015, %v2376_v37   ;;  %v8789_v37 = vld [vmem:[#allocation31_spill] sm:$0xff]  ;;  %v2380_v18 = vsub.f32 %v2156_v27, %v2268_v58  ;;  %v2149_v58 = vld [vmem:[%s6928_s24 + $0xd0] sm:$0xff] }
 0x2f5   : > { %v2259_v28 = vmul.f32 %v8790_v55, %v8789_v37  ;;  %v8797_v27 = vld [vmem:[#allocation40_spill] sm:$0xff]  ;;  %v8798_v37 = vld [vmem:[#allocation150_spill] sm:$0xff] }
 0x2f6   : > { %v2272_v55 = vmul.f32 %v8798_v37, %v8797_v27 }
 0x2f7   : > { %v7106_v47 = vpop.permute.xlu1 %2801  ;;  %3233 = vperm.xlu1 %4016, %v2367_v33   ;;  %v7108_v42 = vpop.permute.xlu0 %2856  ;;  %v2158_v33 = vld [vmem:[%s6928_s24 + $0x118] sm:$0xff]  ;;  %v2371_v50 = vsub.f32 %v2147_v61, %v2259_v28 }
 0x2f8   : > { %8787 = vst [vmem:[#allocation61_spill] sm:$0xff] %v7106_v47  ;;  %8788 = vst [vmem:[#allocation59_spill] sm:$0xff] %v7108_v42  ;;  %3288 = vperm.xlu0 %4015, %v2378_v41   ;;  %v8795_v41 = vld [vmem:[#allocation35_spill] sm:$0xff]  ;;  %v2382_v42 = vsub.f32 %v2158_v33, %v2270_v32  ;;  %v8802_v28 = vld [vmem:[#allocation101_spill] sm:$0xff] }
 0x2f9   : > { %v2261_v56 = vmul.f32 %v8796_v44, %v8795_v41  ;;  %v2151_v32 = vld [vmem:[%s6928_s24 + $0xe0] sm:$0xff]  ;;  %v8803_v33 = vld [vmem:[#allocation48_spill] sm:$0xff]  ;;  %v8804_v41 = vld [vmem:[#allocation151_spill] sm:$0xff] }
 0x2fa   : > { %v2274_v44 = vmul.f32 %v8804_v41, %v8803_v33 }
 0x2fb   : > { %v7116_v26 = vpop.permute.xlu1 %2811  ;;  %3243 = vperm.xlu1 %4016, %v2369_v57   ;;  %v7118_v29 = vpop.permute.xlu0 %2866  ;;  %v2160_v57 = vld [vmem:[%s6928_s24 + $0x128] sm:$0xff]  ;;  %v2373_v46 = vsub.f32 %v2149_v58, %v2261_v56  ;;  %v8808_v56 = vld [vmem:[#allocation102_spill] sm:$0xff] }
 0x2fc   : > { %8793 = vst [vmem:[#allocation65_spill] sm:$0xff] %v7116_v26  ;;  %8794 = vst [vmem:[#allocation63_spill] sm:$0xff] %v7118_v29  ;;  %3298 = vperm.xlu0 %4015, %v2380_v18   ;;  %v8801_v18 = vld [vmem:[#allocation44_spill] sm:$0xff]  ;;  %v2384_v29 = vsub.f32 %v2160_v57, %v2272_v55 }
 0x2fd   : > { %v2263_v61 = vmul.f32 %v8802_v28, %v8801_v18  ;;  %v2153_v55 = vld [vmem:[%s6928_s24 + $0xf0] sm:$0xff]  ;;  %v8810_v18 = vld [vmem:[#allocation54_spill] sm:$0xff] }
 0x2fe   : > { %v8809_v57 = vld [vmem:[#allocation56_spill] sm:$0xff] }
 0x2ff   : > { %v7126_v47 = vpop.permute.xlu1 %2821  ;;  %3253 = vperm.xlu1 %4016, %v2371_v50   ;;  %v7128_v9 = vpop.permute.xlu0 %2876  ;;  %v2162_v50 = vld [vmem:[%s6928_s24 + $0x138] sm:$0xff]  ;;  %v2375_v37 = vsub.f32 %v2151_v32, %v2263_v61  ;;  %v2276_v28 = vmul.f32 %v8810_v18, %v8809_v57  ;;  %v8814_v61 = vld [vmem:[#allocation152_spill] sm:$0xff] }
 0x300   : > { %8799 = vst [vmem:[#allocation69_spill] sm:$0xff] %v7126_v47  ;;  %8800 = vst [vmem:[#allocation67_spill] sm:$0xff] %v7128_v9  ;;  %3308 = vperm.xlu0 %4015, %v2382_v42   ;;  %v8807_v42 = vld [vmem:[#allocation52_spill] sm:$0xff]  ;;  %v2386_v9 = vsub.f32 %v2162_v50, %v2274_v44  ;;  %v2155_v44 = vld [vmem:[%s6928_s24 + $0x100] sm:$0xff] }
 0x301   : > { %v2265_v58 = vmul.f32 %v8808_v56, %v8807_v42  ;;  %v8815_v50 = vld [vmem:[#allocation64_spill] sm:$0xff]  ;;  %v8816_v42 = vld [vmem:[#allocation153_spill] sm:$0xff] }
 0x302   : > { %v2278_v56 = vmul.f32 %v8816_v42, %v8815_v50 }
 0x303   : > { %v7136_v26 = vpop.permute.xlu1 %2831  ;;  %3263 = vperm.xlu1 %4016, %v2373_v46   ;;  %v7138_v27 = vpop.permute.xlu0 %2886  ;;  %v2164_v46 = vld [vmem:[%s6928_s24 + $0x148] sm:$0xff]  ;;  %v2377_v41 = vsub.f32 %v2153_v55, %v2265_v58  ;;  %v8820_v58 = vld [vmem:[#allocation105_spill] sm:$0xff] }
 0x304   : > { %8805 = vst [vmem:[#allocation73_spill] sm:$0xff] %v7136_v26  ;;  %8806 = vst [vmem:[#allocation71_spill] sm:$0xff] %v7138_v27  ;;  %3318 = vperm.xlu0 %4015, %v2384_v29   ;;  %v8813_v29 = vld [vmem:[#allocation60_spill] sm:$0xff]  ;;  %v2388_v27 = vsub.f32 %v2164_v46, %v2276_v28 }
 0x305   : > { %v2267_v32 = vmul.f32 %v8814_v61, %v8813_v29  ;;  %v2157_v28 = vld [vmem:[%s6928_s24 + $0x110] sm:$0xff]  ;;  %v8822_v29 = vld [vmem:[#allocation154_spill] sm:$0xff] }
 0x306   : > { %v8821_v46 = vld [vmem:[#allocation72_spill] sm:$0xff] }
 0x307   : > { %v7146_v47 = vpop.permute.xlu1 %2841  ;;  %3273 = vperm.xlu1 %4016, %v2375_v37   ;;  %v7148_v33 = vpop.permute.xlu0 %2896  ;;  %v2166_v37 = vld [vmem:[%s6928_s24 + $0x158] sm:$0xff]  ;;  %v2379_v18 = vsub.f32 %v2155_v44, %v2267_v32  ;;  %v2280_v61 = vmul.f32 %v8822_v29, %v8821_v46  ;;  %v8826_v32 = vld [vmem:[#allocation155_spill] sm:$0xff] }
 0x308   : > { %8811 = vst [vmem:[#allocation77_spill] sm:$0xff] %v7146_v47  ;;  %8812 = vst [vmem:[#allocation75_spill] sm:$0xff] %v7148_v33  ;;  %3328 = vperm.xlu0 %4015, %v2386_v9   ;;  %v8819_v9 = vld [vmem:[#allocation68_spill] sm:$0xff]  ;;  %v2390_v33 = vsub.f32 %v2166_v37, %v2278_v56  ;;  %v2159_v56 = vld [vmem:[%s6928_s24 + $0x120] sm:$0xff] }
 0x309   : > { %v2269_v55 = vmul.f32 %v8820_v58, %v8819_v9  ;;  %v8827_v37 = vld [vmem:[#allocation80_spill] sm:$0xff] }
 0x30a   : > { %v8828_v9 = vld [vmem:[#allocation156_spill] sm:$0xff] }
 0x30b   : > { %v7156_v26 = vpop.permute.xlu1 %2851  ;;  %3283 = vperm.xlu1 %4016, %v2377_v41   ;;  %v7158_v57 = vpop.permute.xlu0 %2906  ;;  %v2168_v41 = vld [vmem:[%s6928_s24 + $0x168] sm:$0xff]  ;;  %v2381_v42 = vsub.f32 %v2157_v28, %v2269_v55  ;;  %v2282_v58 = vmul.f32 %v8828_v9, %v8827_v37  ;;  %v8832_v55 = vld [vmem:[#allocation157_spill] sm:$0xff] }
 0x30c   : > { %8817 = vst [vmem:[#allocation81_spill] sm:$0xff] %v7156_v26  ;;  %8818 = vst [vmem:[#allocation79_spill] sm:$0xff] %v7158_v57  ;;  %3338 = vperm.xlu0 %4015, %v2388_v27   ;;  %v8825_v27 = vld [vmem:[#allocation76_spill] sm:$0xff]  ;;  %v2392_v57 = vsub.f32 %v2168_v41, %v2280_v61 }
 0x30d   : > { %v2271_v44 = vmul.f32 %v8826_v32, %v8825_v27  ;;  %v2161_v61 = vld [vmem:[%s6928_s24 + $0x130] sm:$0xff]  ;;  %v8834_v27 = vld [vmem:[#allocation158_spill] sm:$0xff] }
 0x30e   : > { %v8833_v41 = vld [vmem:[#allocation92_spill] sm:$0xff] }
 0x30f   : > { %v7166_v47 = vpop.permute.xlu1 %2861  ;;  %3293 = vperm.xlu1 %4016, %v2379_v18   ;;  %v7168_v50 = vpop.permute.xlu0 %2916  ;;  %v2170_v18 = vld [vmem:[%s6928_s24 + $0x178] sm:$0xff]  ;;  %v2383_v29 = vsub.f32 %v2159_v56, %v2271_v44  ;;  %v2284_v32 = vmul.f32 %v8834_v27, %v8833_v41  ;;  %v8838_v44 = vld [vmem:[#allocation159_spill] sm:$0xff] }
 0x310   : > { %8823 = vst [vmem:[#allocation85_spill] sm:$0xff] %v7166_v47  ;;  %8824 = vst [vmem:[#allocation83_spill] sm:$0xff] %v7168_v50  ;;  %3348 = vperm.xlu0 %4015, %v2390_v33   ;;  %v8831_v33 = vld [vmem:[#allocation84_spill] sm:$0xff]  ;;  %v2394_v50 = vsub.f32 %v2170_v18, %v2282_v58  ;;  %v2163_v58 = vld [vmem:[%s6928_s24 + $0x140] sm:$0xff] }
 0x311   : > { %v2273_v28 = vmul.f32 %v8832_v55, %v8831_v33  ;;  %v8839_v18 = vld [vmem:[#allocation104_spill] sm:$0xff] }
 0x312   : > { %v8840_v33 = vld [vmem:[#allocation24_spill] sm:$0xff] }
 0x313   : > { %v7176_v26 = vpop.permute.xlu1 %2871  ;;  %3303 = vperm.xlu1 %4016, %v2381_v42   ;;  %v7178_v46 = vpop.permute.xlu0 %2926  ;;  %v2172_v42 = vld [vmem:[%s6928_s24 + $0x188] sm:$0xff]  ;;  %v2385_v9 = vsub.f32 %v2161_v61, %v2273_v28  ;;  %v2286_v55 = vmul.f32 %v8840_v33, %v8839_v18  ;;  %v8844_v28 = vld [vmem:[#allocation160_spill] sm:$0xff] }
 0x314   : > { %8829 = vst [vmem:[#allocation28_spill] sm:$0xff] %v7176_v26  ;;  %8830 = vst [vmem:[#allocation87_spill] sm:$0xff] %v7178_v46  ;;  %3358 = vperm.xlu0 %4015, %v2392_v57   ;;  %v8837_v57 = vld [vmem:[#allocation99_spill] sm:$0xff]  ;;  %v2396_v46 = vsub.f32 %v2172_v42, %v2284_v32  ;;  %v2165_v32 = vld [vmem:[%s6928_s24 + $0x150] sm:$0xff] }
 0x315   : > { %v2275_v56 = vmul.f32 %v8838_v44, %v8837_v57  ;;  %v8845_v42 = vld [vmem:[#allocation106_spill] sm:$0xff]  ;;  %v8846_v57 = vld [vmem:[#allocation161_spill] sm:$0xff] }
 0x316   : > { %v2288_v44 = vmul.f32 %v8846_v57, %v8845_v42 }
 0x317   : > { %v7186_v47 = vpop.permute.xlu1 %2881  ;;  %3313 = vperm.xlu1 %4016, %v2383_v29   ;;  %v7188_v37 = vpop.permute.xlu0 %2936  ;;  %v2174_v29 = vld [vmem:[%s6928_s24 + $0x198] sm:$0xff]  ;;  %v2387_v27 = vsub.f32 %v2163_v58, %v2275_v56  ;;  %v8850_v56 = vld [vmem:[#allocation162_spill] sm:$0xff] }
 0x318   : > { %8835 = vst [vmem:[#allocation90_spill] sm:$0xff] %v7186_v47  ;;  %8836 = vst [vmem:[#allocation91_spill] sm:$0xff] %v7188_v37  ;;  %3368 = vperm.xlu0 %4015, %v2394_v50   ;;  %v8843_v50 = vld [vmem:[#allocation100_spill] sm:$0xff]  ;;  %v2398_v37 = vsub.f32 %v2174_v29, %v2286_v55  ;;  %v2167_v55 = vld [vmem:[%s6928_s24 + $0x160] sm:$0xff] }
 0x319   : > { %v2277_v61 = vmul.f32 %v8844_v28, %v8843_v50  ;;  %v8851_v29 = vld [vmem:[#allocation108_spill] sm:$0xff]  ;;  %v8852_v50 = vld [vmem:[#allocation163_spill] sm:$0xff] }
 0x31a   : > { %v2290_v28 = vmul.f32 %v8852_v50, %v8851_v29 }
 0x31b   : > { %v7196_v26 = vpop.permute.xlu1 %2891  ;;  %3323 = vperm.xlu1 %4016, %v2385_v9   ;;  %v7198_v41 = vpop.permute.xlu0 %2946  ;;  %v2176_v9 = vld [vmem:[%s6928_s24 + $0x1a8] sm:$0xff]  ;;  %v2389_v33 = vsub.f32 %v2165_v32, %v2277_v61  ;;  %v8856_v61 = vld [vmem:[#allocation164_spill] sm:$0xff] }
 0x31c   : > { %8841 = vst [vmem:[#allocation93_spill] sm:$0xff] %v7196_v26  ;;  %8842 = vst [vmem:[#allocation94_spill] sm:$0xff] %v7198_v41  ;;  %3378 = vperm.xlu0 %4015, %v2396_v46   ;;  %v8849_v46 = vld [vmem:[#allocation42_spill] sm:$0xff]  ;;  %v2400_v41 = vsub.f32 %v2176_v9, %v2288_v44  ;;  %v2169_v44 = vld [vmem:[%s6928_s24 + $0x170] sm:$0xff] }
 0x31d   : > { %v2279_v58 = vmul.f32 %v8850_v56, %v8849_v46  ;;  %v8857_v9 = vld [vmem:[#allocation110_spill] sm:$0xff]  ;;  %v8858_v46 = vld [vmem:[#allocation165_spill] sm:$0xff] }
 0x31e   : > { %v2292_v56 = vmul.f32 %v8858_v46, %v8857_v9 }
 0x31f   : > { %v7206_v47 = vpop.permute.xlu1 %2901  ;;  %3333 = vperm.xlu1 %4016, %v2387_v27   ;;  %v7208_v18 = vpop.permute.xlu0 %2956  ;;  %v2178_v27 = vld [vmem:[%s6928_s24 + $0x1b8] sm:$0xff]  ;;  %v2391_v57 = vsub.f32 %v2167_v55, %v2279_v58  ;;  %v8862_v58 = vld [vmem:[#allocation166_spill] sm:$0xff] }
 0x320   : > { %8847 = vst [vmem:[#allocation39_spill] sm:$0xff] %v7206_v47  ;;  %8848 = vst [vmem:[#allocation98_spill] sm:$0xff] %v7208_v18  ;;  %3388 = vperm.xlu0 %4015, %v2398_v37   ;;  %v8855_v37 = vld [vmem:[#allocation49_spill] sm:$0xff]  ;;  %v2402_v18 = vsub.f32 %v2178_v27, %v2290_v28  ;;  %v2171_v28 = vld [vmem:[%s6928_s24 + $0x180] sm:$0xff] }
 0x321   : > { %v2281_v32 = vmul.f32 %v8856_v61, %v8855_v37  ;;  %v8863_v27 = vld [vmem:[#allocation112_spill] sm:$0xff]  ;;  %v8864_v37 = vld [vmem:[#allocation167_spill] sm:$0xff] }
 0x322   : > { %v2294_v61 = vmul.f32 %v8864_v37, %v8863_v27 }
 0x323   : > { %v7216_v26 = vpop.permute.xlu1 %2911  ;;  %3343 = vperm.xlu1 %4016, %v2389_v33   ;;  %v7218_v42 = vpop.permute.xlu0 %2966  ;;  %v2180_v33 = vld [vmem:[%s6928_s24 + $0x1c8] sm:$0xff]  ;;  %v2393_v50 = vsub.f32 %v2169_v44, %v2281_v32  ;;  %v8867_v32 = vld [vmem:[#allocation168_spill] sm:$0xff] }
 0x324   : > { %8853 = vst [vmem:[#allocation97_spill] sm:$0xff] %v7216_v26  ;;  %8854 = vst [vmem:[#allocation88_spill] sm:$0xff] %v7218_v42  ;;  %3398 = vperm.xlu0 %4015, %v2400_v41   ;;  %v8861_v41 = vld [vmem:[#allocation103_spill] sm:$0xff]  ;;  %v2404_v42 = vsub.f32 %v2180_v33, %v2292_v56  ;;  %v2173_v56 = vld [vmem:[%s6928_s24 + $0x190] sm:$0xff] }
 0x325   : > { %v2283_v55 = vmul.f32 %v8862_v58, %v8861_v41  ;;  %v8868_v33 = vld [vmem:[#allocation114_spill] sm:$0xff]  ;;  %v8869_v41 = vld [vmem:[#allocation169_spill] sm:$0xff] }
 0x326   : > { %v2296_v58 = vmul.f32 %v8869_v41, %v8868_v33  ;;  %v2186_v33 = vld [vmem:[%s6928_s24 + $0x1f8] sm:$0xff] }
 0x327   : > { %v7226_v47 = vpop.permute.xlu1 %2921  ;;  %3353 = vperm.xlu1 %4016, %v2391_v57   ;;  %v7228_v29 = vpop.permute.xlu0 %2976  ;;  %v2182_v57 = vld [vmem:[%s6928_s24 + $0x1d8] sm:$0xff]  ;;  %v2395_v46 = vsub.f32 %v2171_v28, %v2283_v55  ;;  %v8871_v55 = vld [vmem:[#allocation170_spill] sm:$0xff] }
 0x328   : > { %8859 = vst [vmem:[#allocation32_spill] sm:$0xff] %v7226_v47  ;;  %8860 = vst [vmem:[#allocation95_spill] sm:$0xff] %v7228_v29  ;;  %3408 = vperm.xlu0 %4015, %v2402_v18   ;;  %v8866_v18 = vld [vmem:[#allocation62_spill] sm:$0xff]  ;;  %v2406_v29 = vsub.f32 %v2182_v57, %v2294_v61  ;;  %v8872_v57 = vld [vmem:[#allocation116_spill] sm:$0xff] }
 0x329   : > { %v2285_v44 = vmul.f32 %v8867_v32, %v8866_v18  ;;  %v2175_v61 = vld [vmem:[%s6928_s24 + $0x1a0] sm:$0xff]  ;;  %v2298_v18 = vmul.f32 %v6413_v21, %v8872_v57  ;;  %v2188_v57 = vld [vmem:[%s6928_s24 + $0x208] sm:$0xff] }
 0x32b   : > { %v7236_v26 = vpop.permute.xlu1 %2931  ;;  %3363 = vperm.xlu1 %4016, %v2393_v50   ;;  %v7238_v9 = vpop.permute.xlu0 %2986  ;;  %v2184_v50 = vld [vmem:[%s6928_s24 + $0x1e8] sm:$0xff]  ;;  %v2397_v37 = vsub.f32 %v2173_v56, %v2285_v44  ;;  %v8875_v44 = vld [vmem:[#allocation109_spill] sm:$0xff]  ;;  %v2410_v41 = vsub.f32 %v2186_v33, %v2298_v18 }
 0x32c   : > { %8865 = vst [vmem:[#allocation31_spill] sm:$0xff] %v7238_v9  ;;  %3418 = vperm.xlu0 %4015, %v2404_v42   ;;  %v8870_v42 = vld [vmem:[#allocation107_spill] sm:$0xff]  ;;  %v2408_v9 = vsub.f32 %v2184_v50, %v2296_v58  ;;  %v2289_v56 = vmul.f32 %v6428_v30, %v8875_v44  ;;  %v2177_v58 = vld [vmem:[%s6928_s24 + $0x1b0] sm:$0xff]  ;;  %v8876_v50 = vld [vmem:[#allocation118_spill] sm:$0xff] }
 0x32d   : > { %v2287_v28 = vmul.f32 %v8871_v55, %v8870_v42  ;;  %v8877_v42 = vld [vmem:[#allocation171_spill] sm:$0xff]  ;;  %v2179_v44 = vld [vmem:[%s6928_s24 + $0x1c0] sm:$0xff] }
 0x32e   : > { %v2300_v55 = vmul.f32 %v8877_v42, %v8876_v50  ;;  %v4241_v30 = vld [vmem:[%s4396_s18 + $0x8] sm:$0xff]  ;;  %v8882_v50 = vld [vmem:[#allocation120_spill] sm:$0xff]  ;;  %v8883_v42 = vld [vmem:[#allocation173_spill] sm:$0xff] }
 0x32f   : > { %v7246_v47 = vpop.permute.xlu1 %2941  ;;  %3373 = vperm.xlu1 %4016, %v2395_v46   ;;  %v7248_v27 = vpop.permute.xlu0 %2996  ;;  %v3020_v18 = vmul.f32 %v4241_v30, %v6488_v2  ;;  %v2181_v30 = vld [vmem:[%s6928_s24 + $0x1d0] sm:$0xff] }
 0x330   : > { %3428 = vperm.xlu0 %4015, %v2406_v29   ;;  %v2399_v29 = vsub.f32 %v2175_v61, %v2287_v28  ;;  %v8881_v28 = vld [vmem:[#allocation172_spill] sm:$0xff]  ;;  %v2412_v33 = vsub.f32 %v2188_v57, %v2300_v55  ;;  %v4242_v57 = vld [vmem:[%s4396_s18 + $0x18] sm:$0xff] }
 0x333   : > { %v7256_v32 = vpop.permute.xlu1 %2951  ;;  %3383 = vperm.xlu1 %4016, %v2397_v37   ;;  %v7258_v46 = vpop.permute.xlu0 %3006 }
 0x334   : > { %8873 = vst [vmem:[#allocation147_spill] sm:$0xff] %v7256_v32  ;;  %8874 = vst [vmem:[#allocation36_spill] sm:$0xff] %v7258_v46  ;;  %3438 = vperm.xlu0 %4015, %v2408_v9   ;;  %v2401_v9 = vsub.f32 %v2177_v58, %v2289_v56  ;;  %v8880_v46 = vld [vmem:[#allocation111_spill] sm:$0xff]  ;;  %v8886_v58 = vld [vmem:[#allocation174_spill] sm:$0xff] }
 0x335   : > { %v2291_v61 = vmul.f32 %v8881_v28, %v8880_v46 }
 0x337   : > { %v7266_v21 = vpop.permute.xlu1 %2961  ;;  %3393 = vperm.xlu1 %4016, %v2399_v29   ;;  %v7268_v37 = vpop.permute.xlu0 %3016  ;;  %v2190_v29 = vld [vmem:[%s6928_s24 + $0x218] sm:$0xff]  ;;  %v2403_v2 = vsub.f32 %v2179_v44, %v2291_v61 }
 0x338   : > { %8878 = vst [vmem:[#allocation148_spill] sm:$0xff] %v7266_v21  ;;  %8879 = vst [vmem:[#allocation35_spill] sm:$0xff] %v7268_v37  ;;  %3448 = vperm.xlu0 %4015, %v2410_v41   ;;  %v2302_v21 = vmul.f32 %v8883_v42, %v8882_v50  ;;  %v8885_v41 = vld [vmem:[#allocation113_spill] sm:$0xff]  ;;  %v8887_v50 = vld [vmem:[#allocation122_spill] sm:$0xff] }
 0x339   : > { %v2293_v55 = vmul.f32 %v8886_v58, %v8885_v41  ;;  %v8888_v42 = vld [vmem:[#allocation175_spill] sm:$0xff]  ;;  %v2183_v41 = vld [vmem:[%s6928_s24 + $0x1e0] sm:$0xff] }
 0x33a   : > { %v2414_v28 = vsub.f32 %v2190_v29, %v2302_v21 }
 0x33b   : > { %v7278_v32 = vpop.permute.xlu1 %2971  ;;  %3403 = vperm.xlu1 %4016, %v2401_v9   ;;  %v3139_v46 = vpop.permute.xlu0 %3138  ;;  %v3022_v9 = vmul.f32 %v4242_v57, %v6534_v25  ;;  %v2405_v44 = vsub.f32 %v2181_v30, %v2293_v55  ;;  %v8891_v30 = vld [vmem:[#allocation117_spill] sm:$0xff] }
 0x33c   : > { %8884 = vst [vmem:[#allocation149_spill] sm:$0xff] %v7278_v32  ;;  %v3692_v56 = vadd.f32 %v3139_v46, %v3020_v18  ;;  %3458 = vperm.xlu0 %4015, %v2412_v33   ;;  %v2304_v32 = vmul.f32 %v8888_v42, %v8887_v50  ;;  %v2192_v18 = vld [vmem:[%s6928_s24 + $0x228] sm:$0xff]  ;;  %v8892_v50 = vld [vmem:[#allocation178_spill] sm:$0xff]  ;;  %v4244_v42 = vld [vmem:[%s4396_s18 + $0x38] sm:$0xff] }
 0x33d   : > { %v8889_v46 = vld [vmem:[#allocation115_spill] sm:$0xff] }
 0x33e   : > { %3804 = vst.msk [vmem:[%s7284_s27 + $0x8] sm:$0xff] %vm330_vm0, %v3692_v56  ;;  %v2295_v25 = vmul.f32 %v6498_v53, %v8889_v46  ;;  %v4243_v56 = vld [vmem:[%s4396_s18 + $0x28] sm:$0xff]  ;;  %v2416_v29 = vsub.f32 %v2192_v18, %v2304_v32  ;;  %v3026_v32 = vmul.f32 %v4244_v42, %v6630_v10  ;;  %v8893_v18 = vld [vmem:[#allocation126_spill] sm:$0xff]  ;;  %v8897_v42 = vld [vmem:[#allocation121_spill] sm:$0xff] }
 0x33f   : > { %v7296_v37 = vpop.permute.xlu1 %2981  ;;  %3413 = vperm.xlu1 %4016, %v2403_v2   ;;  %v3149_v61 = vpop.permute.xlu0 %3148  ;;  %v3024_v21 = vmul.f32 %v4243_v56, %v6582_v36  ;;  %v8890_v2 = vld [vmem:[#allocation124_spill] sm:$0xff]  ;;  %v2297_v36 = vmul.f32 %v8892_v50, %v8891_v30  ;;  %v2198_v50 = vld [vmem:[%s6928_s24 + $0x258] sm:$0xff] }
 0x340   : > { %v3694_v33 = vadd.f32 %v3149_v61, %v3022_v9  ;;  %3468 = vperm.xlu0 %4015, %v2414_v28   ;;  %v2306_v58 = vmul.f32 %v6508_v52, %v8890_v2  ;;  %v2194_v9 = vld [vmem:[%s6928_s24 + $0x238] sm:$0xff]  ;;  %v2407_v53 = vsub.f32 %v2183_v41, %v2295_v25  ;;  %v2185_v61 = vld [vmem:[%s6928_s24 + $0x1f0] sm:$0xff]  ;;  %v2196_v25 = vld [vmem:[%s6928_s24 + $0x248] sm:$0xff] }
 0x341   : > { %v4245_v41 = vld [vmem:[%s4396_s18 + $0x48] sm:$0xff] }
 0x342   : > { %3806 = vst.msk [vmem:[%s7284_s27 + $0x18] sm:$0xff] %vm330_vm0, %v3694_v33  ;;  %v2418_v52 = vsub.f32 %v2194_v9, %v2306_v58  ;;  %v2308_v33 = vmul.f32 %v6531_v12, %v8893_v18  ;;  %v8895_v2 = vld [vmem:[#allocation179_spill] sm:$0xff]  ;;  %v8896_v9 = vld [vmem:[#allocation128_spill] sm:$0xff] }
 0x343   : > { %v7308_v57 = vpop.permute.xlu1 %2991  ;;  %3423 = vperm.xlu1 %4016, %v2405_v44   ;;  %v3159_v55 = vpop.permute.xlu0 %3158  ;;  %v3028_v58 = vmul.f32 %v4245_v41, %v8895_v2  ;;  %v2200_v2 = vld [vmem:[%s6928_s24 + $0x268] sm:$0xff] }
 0x344   : > { %v3696_v28 = vadd.f32 %v3159_v55, %v3024_v21  ;;  %3478 = vperm.xlu0 %4015, %v2416_v29   ;;  %v2409_v21 = vsub.f32 %v2185_v61, %v2297_v36  ;;  %v8894_v29 = vld [vmem:[#allocation119_spill] sm:$0xff]  ;;  %v2420_v12 = vsub.f32 %v2196_v25, %v2308_v33  ;;  %v2187_v55 = vld [vmem:[%s6928_s24 + $0x200] sm:$0xff]  ;;  %v8898_v61 = vld [vmem:[#allocation177_spill] sm:$0xff] }
 0x345   : > { %v2299_v10 = vmul.f32 %v6546_v43, %v8894_v29  ;;  %v4247_v33 = vld [vmem:[%s4396_s18 + $0x58] sm:$0xff]  ;;  %v8901_v29 = vld [vmem:[#allocation182_spill] sm:$0xff] }
 0x346   : > { %3808 = vst.msk [vmem:[%s7284_s27 + $0x28] sm:$0xff] %vm330_vm0, %v3696_v28  ;;  %v2310_v28 = vmul.f32 %v6555_v31, %v8896_v9  ;;  %v8902_v9 = vld [vmem:[#allocation123_spill] sm:$0xff] }
 0x347   : > { %v7320_v44 = vpop.permute.xlu1 %3001  ;;  %3433 = vperm.xlu1 %4016, %v2407_v53   ;;  %v3169_v46 = vpop.permute.xlu0 %3168  ;;  %v2411_v36 = vsub.f32 %v2187_v55, %v2299_v10 }
 0x348   : > { %v3698_v56 = vadd.f32 %v3169_v46, %v3026_v32  ;;  %3488 = vperm.xlu0 %4015, %v2418_v52   ;;  %v2301_v32 = vmul.f32 %v6570_v19, %v8897_v42  ;;  %v4246_v52 = vld [vmem:[%s4396_s18] sm:$0xff]  ;;  %v8899_v46 = vld [vmem:[#allocation181_spill] sm:$0xff]  ;;  %v2422_v31 = vsub.f32 %v2198_v50, %v2310_v28  ;;  %v4248_v28 = vld [vmem:[%s4396_s18 + $0x10] sm:$0xff] }
 0x349   : > { %v3019_v18 = vmul.f32 %v4246_v52, %v8898_v61  ;;  %v3030_v25 = vmul.f32 %v4247_v33, %v8899_v46  ;;  %v8903_v50 = vld [vmem:[#allocation176_spill] sm:$0xff]  ;;  %v4249_v42 = vld [vmem:[%s4396_s18 + $0x68] sm:$0xff] }
 0x34a   : > { %3810 = vst.msk [vmem:[%s7284_s27 + $0x38] sm:$0xff] %vm330_vm0, %v3698_v56  ;;  %v2189_v56 = vld [vmem:[%s6928_s24 + $0x210] sm:$0xff]  ;;  %v8904_v52 = vld [vmem:[#allocation183_spill] sm:$0xff] }
 0x34b   : > { %3443 = vperm.xlu1 %4016, %v2409_v21   ;;  %v7332_v53 = vpop.permute.xlu1 %3011  ;;  %v3179_v30 = vpop.permute.xlu0 %3178  ;;  %v8900_v21 = vld [vmem:[#allocation130_spill] sm:$0xff]  ;;  %v2413_v55 = vsub.f32 %v2189_v56, %v2301_v32  ;;  %v3032_v61 = vmul.f32 %v4249_v42, %v8904_v52  ;;  %v8905_v33 = vld [vmem:[#allocation132_spill] sm:$0xff]  ;;  %v2204_v42 = vld [vmem:[%s6928_s24 + $0x288] sm:$0xff] }
 0x34c   : > { %v3700_v43 = vadd.f32 %v3179_v30, %v3028_v58  ;;  %3498 = vperm.xlu0 %4015, %v2420_v12   ;;  %v2312_v10 = vmul.f32 %v8901_v29, %v8900_v21  ;;  %v2303_v30 = vmul.f32 %v6595_v5, %v8902_v9  ;;  %v2314_v32 = vmul.f32 %v6603_v60, %v8905_v33  ;;  %v8906_v29 = vld [vmem:[#allocation125_spill] sm:$0xff]  ;;  %v2193_v9 = vld [vmem:[%s6928_s24 + $0x230] sm:$0xff] }
 0x34e   : > { %3812 = vst.msk [vmem:[%s7284_s27 + $0x48] sm:$0xff] %vm330_vm0, %v3700_v43  ;;  %v3021_v43 = vmul.f32 %v4248_v28, %v8903_v50  ;;  %v8909_v28 = vld [vmem:[#allocation134_spill] sm:$0xff] }
 0x34f   : > { %3453 = vperm.xlu1 %4016, %v2411_v36   ;;  %v3134_v19 = vpop.permute.xlu1 %3133  ;;  %v3189_v41 = vpop.permute.xlu0 %3188  ;;  %v2424_v36 = vsub.f32 %v2200_v2, %v2312_v10  ;;  %v4250_v10 = vld [vmem:[%s4396_s18 + $0x20] sm:$0xff] }
 0x350   : > { %v3691_v58 = vadd.f32 %v3134_v19, %v3019_v18  ;;  %v3702_v12 = vadd.f32 %v3189_v41, %v3030_v25  ;;  %3508 = vperm.xlu0 %4015, %v2422_v31   ;;  %v2191_v18 = vld [vmem:[%s6928_s24 + $0x220] sm:$0xff]  ;;  %v2202_v25 = vld [vmem:[%s6928_s24 + $0x278] sm:$0xff]  ;;  %v2305_v19 = vmul.f32 %v6618_v7, %v8906_v29  ;;  %v8907_v41 = vld [vmem:[#allocation180_spill] sm:$0xff] }
 0x351   : > { %v2415_v21 = vsub.f32 %v2191_v18, %v2303_v30  ;;  %v3023_v2 = vmul.f32 %v4250_v10, %v8907_v41  ;;  %v8910_v30 = vld [vmem:[#allocation186_spill] sm:$0xff]  ;;  %v8911_v18 = vld [vmem:[#allocation127_spill] sm:$0xff]  ;;  %v8914_v10 = vld [vmem:[#allocation136_spill] sm:$0xff] }
 0x352   : > { %3803 = vst.msk [vmem:[%s7284_s27] sm:$0xff] %vm330_vm0, %v3691_v58  ;;  %3814 = vst.msk [vmem:[%s7284_s27 + $0x58] sm:$0xff] %vm330_vm0, %v3702_v12  ;;  %v4251_v58 = vld [vmem:[%s4396_s18 + $0x78] sm:$0xff]  ;;  %v2316_v50 = vmul.f32 %v8910_v30, %v8909_v28  ;;  %v2307_v33 = vmul.f32 %v6642_v54, %v8911_v18  ;;  %v2195_v29 = vld [vmem:[%s6928_s24 + $0x240] sm:$0xff] }
 0x353   : > { %3463 = vperm.xlu1 %4016, %v2413_v55   ;;  %v3144_v5 = vpop.permute.xlu1 %3143  ;;  %v3199_v46 = vpop.permute.xlu0 %3198  ;;  %v8908_v12 = vld [vmem:[#allocation185_spill] sm:$0xff]  ;;  %v2426_v55 = vsub.f32 %v2202_v25, %v2314_v32  ;;  %v4252_v32 = vld [vmem:[%s4396_s18 + $0x30] sm:$0xff]  ;;  %v4253_v25 = vld [vmem:[%s4396_s18 + $0x88] sm:$0xff] }
 0x354   : > { %v3693_v31 = vadd.f32 %v3144_v5, %v3021_v43  ;;  %v3704_v56 = vadd.f32 %v3199_v46, %v3032_v61  ;;  %3518 = vperm.xlu0 %4015, %v2424_v36   ;;  %v3034_v60 = vmul.f32 %v4251_v58, %v8908_v12  ;;  %v2417_v36 = vsub.f32 %v2193_v9, %v2305_v19  ;;  %v8912_v5 = vld [vmem:[#allocation184_spill] sm:$0xff]  ;;  %v4254_v28 = vld [vmem:[%s4396_s18 + $0x40] sm:$0xff] }
 0x355   : > { %v3025_v46 = vmul.f32 %v4252_v32, %v8912_v5  ;;  %v2318_v19 = vmul.f32 %v6651_v1, %v8914_v10  ;;  %v8916_v30 = vld [vmem:[#allocation188_spill] sm:$0xff]  ;;  %v4257_v10 = vld [vmem:[%s4396_s18 + $0xa8] sm:$0xff] }
 0x356   : > { %3805 = vst.msk [vmem:[%s7284_s27 + $0x10] sm:$0xff] %vm330_vm0, %v3693_v31  ;;  %3816 = vst.msk [vmem:[%s7284_s27 + $0x68] sm:$0xff] %vm330_vm0, %v3704_v56  ;;  %v8913_v31 = vld [vmem:[#allocation187_spill] sm:$0xff] }
 0x357   : > { %3473 = vperm.xlu1 %4016, %v2415_v21   ;;  %v3154_v7 = vpop.permute.xlu1 %3153  ;;  %v3209_v43 = vpop.permute.xlu0 %3208  ;;  %v3036_v56 = vmul.f32 %v4253_v25, %v8913_v31  ;;  %v2428_v21 = vsub.f32 %v2204_v42, %v2316_v50  ;;  %v3027_v50 = vmul.f32 %v4254_v28, %v8916_v30  ;;  %v8919_v25 = vld [vmem:[#allocation131_spill] sm:$0xff]  ;;  %v8923_v30 = vld [vmem:[#allocation133_spill] sm:$0xff] }
 0x358   : > { %v3695_v52 = vadd.f32 %v3154_v7, %v3023_v2  ;;  %v3706_v61 = vadd.f32 %v3209_v43, %v3034_v60  ;;  %3528 = vperm.xlu0 %4015, %v2426_v55   ;;  %v2206_v2 = vld [vmem:[%s6928_s24 + $0x298] sm:$0xff]  ;;  %v2419_v60 = vsub.f32 %v2195_v29, %v2307_v33  ;;  %v2208_v33 = vld [vmem:[%s6928_s24 + $0x2a8] sm:$0xff]  ;;  %v2311_v31 = vmul.f32 %v6690_v17, %v8919_v25 }
 0x359   : > { %v8915_v55 = vld [vmem:[#allocation129_spill] sm:$0xff]  ;;  %v2430_v42 = vsub.f32 %v2206_v2, %v2318_v19  ;;  %v8921_v19 = vld [vmem:[#allocation191_spill] sm:$0xff]  ;;  %v8922_v2 = vld [vmem:[#allocation140_spill] sm:$0xff] }
 0x35a   : > { %3807 = vst.msk [vmem:[%s7284_s27 + $0x20] sm:$0xff] %vm330_vm0, %v3695_v52  ;;  %3818 = vst.msk [vmem:[%s7284_s27 + $0x78] sm:$0xff] %vm330_vm0, %v3706_v61  ;;  %v2309_v9 = vmul.f32 %v6666_v16, %v8915_v55  ;;  %v4255_v7 = vld [vmem:[%s4396_s18 + $0x98] sm:$0xff]  ;;  %v2197_v52 = vld [vmem:[%s6928_s24 + $0x250] sm:$0xff] }
 0x35b   : > { %3483 = vperm.xlu1 %4016, %v2417_v36   ;;  %v3164_v54 = vpop.permute.xlu1 %3163  ;;  %v3219_v41 = vpop.permute.xlu0 %3218  ;;  %v8917_v43 = vld [vmem:[#allocation189_spill] sm:$0xff]  ;;  %v8918_v61 = vld [vmem:[#allocation138_spill] sm:$0xff] }
 0x35c   : > { %v3697_v58 = vadd.f32 %v3164_v54, %v3025_v46  ;;  %v3708_v12 = vadd.f32 %v3219_v41, %v3036_v56  ;;  %3538 = vperm.xlu0 %4015, %v2428_v21   ;;  %v3038_v1 = vmul.f32 %v4255_v7, %v8917_v43  ;;  %v2320_v36 = vmul.f32 %v6675_v63, %v8918_v61  ;;  %v4256_v56 = vld [vmem:[%s4396_s18 + $0x50] sm:$0xff]  ;;  %v8920_v21 = vld [vmem:[#allocation190_spill] sm:$0xff] }
 0x35d   : > { %v2421_v46 = vsub.f32 %v2197_v52, %v2309_v9  ;;  %v3029_v29 = vmul.f32 %v4256_v56, %v8920_v21  ;;  %v3040_v63 = vmul.f32 %v4257_v10, %v8921_v19  ;;  %v2199_v41 = vld [vmem:[%s6928_s24 + $0x260] sm:$0xff]  ;;  %v8924_v43 = vld [vmem:[#allocation192_spill] sm:$0xff]  ;;  %v8925_v52 = vld [vmem:[#allocation193_spill] sm:$0xff] }
 0x35e   : > { %3809 = vst.msk [vmem:[%s7284_s27 + $0x30] sm:$0xff] %vm330_vm0, %v3697_v58  ;;  %3820 = vst.msk [vmem:[%s7284_s27 + $0x88] sm:$0xff] %vm330_vm0, %v3708_v12  ;;  %v2432_v54 = vsub.f32 %v2208_v33, %v2320_v36  ;;  %v2322_v58 = vmul.f32 %v6699_v62, %v8922_v2  ;;  %v2423_v28 = vsub.f32 %v2199_v41, %v2311_v31  ;;  %v4258_v7 = vld [vmem:[%s4396_s18 + $0x60] sm:$0xff]  ;;  %v2201_v36 = vld [vmem:[%s6928_s24 + $0x270] sm:$0xff] }
 0x35f   : > { %3493 = vperm.xlu1 %4016, %v2419_v60   ;;  %v3174_v16 = vpop.permute.xlu1 %3173  ;;  %v3229_v18 = vpop.permute.xlu0 %3228  ;;  %v2210_v60 = vld [vmem:[%s6928_s24 + $0x2b8] sm:$0xff]  ;;  %v8927_v31 = vld [vmem:[#allocation135_spill] sm:$0xff]  ;;  %v4260_v21 = vld [vmem:[%s4396_s18 + $0x70] sm:$0xff] }
 0x360   : > { %v3699_v32 = vadd.f32 %v3174_v16, %v3027_v50  ;;  %v3710_v5 = vadd.f32 %v3229_v18, %v3038_v1  ;;  %3548 = vperm.xlu0 %4015, %v2430_v42   ;;  %v2313_v50 = vmul.f32 %v6715_v51, %v8923_v30  ;;  %v3031_v1 = vmul.f32 %v4258_v7, %v8924_v43  ;;  %v4259_v42 = vld [vmem:[%s4396_s18 + $0xb8] sm:$0xff]  ;;  %v8926_v16 = vld [vmem:[#allocation142_spill] sm:$0xff]  ;;  %v4261_v19 = vld [vmem:[%s4396_s18 + $0xc8] sm:$0xff] }
 0x361   : > { %v3042_v62 = vmul.f32 %v4259_v42, %v8925_v52  ;;  %v2434_v61 = vsub.f32 %v2210_v60, %v2322_v58  ;;  %v2324_v18 = vmul.f32 %v6723_v11, %v8926_v16  ;;  %v2315_v56 = vmul.f32 %v6738_v3, %v8927_v31  ;;  %v2203_v41 = vld [vmem:[%s6928_s24 + $0x280] sm:$0xff]  ;;  %v8930_v2 = vld [vmem:[#allocation144_spill] sm:$0xff]  ;;  %v4263_v42 = vld [vmem:[%s4396_s18 + $0xd8] sm:$0xff] }
 0x362   : > { %3811 = vst.msk [vmem:[%s7284_s27 + $0x40] sm:$0xff] %vm330_vm0, %v3699_v32  ;;  %3822 = vst.msk [vmem:[%s7284_s27 + $0x98] sm:$0xff] %vm330_vm0, %v3710_v5  ;;  %v2212_v32 = vld [vmem:[%s6928_s24 + $0x2c8] sm:$0xff]  ;;  %v2425_v25 = vsub.f32 %v2201_v36, %v2313_v50  ;;  %v2326_v58 = vmul.f32 %v6750_v40, %v8930_v2  ;;  %v8932_v30 = vld [vmem:[#allocation198_spill] sm:$0xff] }
 0x363   : > { %3503 = vperm.xlu1 %4016, %v2421_v46   ;;  %v3184_v17 = vpop.permute.xlu1 %3183  ;;  %v3239_v12 = vpop.permute.xlu0 %3238  ;;  %v4262_v7 = vld [vmem:[%s4396_s18 + $0x80] sm:$0xff]  ;;  %v8933_v43 = vld [vmem:[#allocation196_spill] sm:$0xff]  ;;  %v8934_v52 = vld [vmem:[#allocation197_spill] sm:$0xff] }
 0x364   : > { %v3701_v55 = vadd.f32 %v3184_v17, %v3029_v29  ;;  %v3712_v9 = vadd.f32 %v3239_v12, %v3040_v63  ;;  %3558 = vperm.xlu0 %4015, %v2432_v54   ;;  %v8928_v29 = vld [vmem:[#allocation194_spill] sm:$0xff]  ;;  %v8929_v63 = vld [vmem:[#allocation195_spill] sm:$0xff]  ;;  %v2436_v54 = vsub.f32 %v2212_v32, %v2324_v18  ;;  %v2214_v12 = vld [vmem:[%s6928_s24 + $0x2d8] sm:$0xff]  ;;  %v3046_v40 = vmul.f32 %v4263_v42, %v8934_v52 }
 0x365   : > { %v3033_v10 = vmul.f32 %v4260_v21, %v8928_v29  ;;  %v3044_v11 = vmul.f32 %v4261_v19, %v8929_v63  ;;  %v8935_v36 = vld [vmem:[#allocation2_spill] sm:$0xff]  ;;  %v8937_v21 = vld [vmem:[#allocation199_spill] sm:$0xff]  ;;  %v8938_v19 = vld [vmem:[#allocation200_spill] sm:$0xff] }
 0x366   : > { %3813 = vst.msk [vmem:[%s7284_s27 + $0x50] sm:$0xff] %vm330_vm0, %v3701_v55  ;;  %3824 = vst.msk [vmem:[%s7284_s27 + $0xa8] sm:$0xff] %vm330_vm0, %v3712_v9  ;;  %v2427_v9 = vsub.f32 %v2203_v41, %v2315_v56  ;;  %v2328_v16 = vmul.f32 %v6771_v59, %v8935_v36  ;;  %v4264_v56 = vld [vmem:[%s4396_s18 + $0x90] sm:$0xff]  ;;  %v2220_v52 = vld [vmem:[%s6928_s24 + $0x308] sm:$0xff] }
 0x367   : > { %3513 = vperm.xlu1 %4016, %v2423_v28   ;;  %v3194_v51 = vpop.permute.xlu1 %3193  ;;  %v3249_v33 = vpop.permute.xlu0 %3248  ;;  %v8931_v28 = vld [vmem:[#allocation137_spill] sm:$0xff]  ;;  %v3037_v29 = vmul.f32 %v4264_v56, %v8937_v21  ;;  %v8943_v36 = vld [vmem:[#allocation143_spill] sm:$0xff] }
 0x368   : > { %v3703_v5 = vadd.f32 %v3194_v51, %v3031_v1  ;;  %v3714_v46 = vadd.f32 %v3249_v33, %v3042_v62  ;;  %3568 = vperm.xlu0 %4015, %v2434_v61   ;;  %v2317_v50 = vmul.f32 %v8932_v30, %v8931_v28  ;;  %v3035_v1 = vmul.f32 %v4262_v7, %v8933_v43  ;;  %v2205_v61 = vld [vmem:[%s6928_s24 + $0x290] sm:$0xff]  ;;  %v2216_v33 = vld [vmem:[%s6928_s24 + $0x2e8] sm:$0xff]  ;;  %v4267_v30 = vld [vmem:[%s4396_s18 + $0xf8] sm:$0xff] }
 0x369   : > { %v2438_v62 = vsub.f32 %v2214_v12, %v2326_v58  ;;  %v2440_v63 = vsub.f32 %v2216_v33, %v2328_v16  ;;  %v2218_v58 = vld [vmem:[%s6928_s24 + $0x2f8] sm:$0xff]  ;;  %v2209_v43 = vld [vmem:[%s6928_s24 + $0x2b0] sm:$0xff]  ;;  %v2323_v16 = vmul.f32 %v6828_v49, %v8943_v36 }
 0x36a   : > { %3815 = vst.msk [vmem:[%s7284_s27 + $0x60] sm:$0xff] %vm330_vm0, %v3703_v5  ;;  %3826 = vst.msk [vmem:[%s7284_s27 + $0xb8] sm:$0xff] %vm330_vm0, %v3714_v46  ;;  %v2429_v46 = vsub.f32 %v2205_v61, %v2317_v50  ;;  %v8941_v50 = vld [vmem:[#allocation201_spill] sm:$0xff] }
 0x36b   : > { %3523 = vperm.xlu1 %4016, %v2425_v25   ;;  %v3204_v3 = vpop.permute.xlu1 %3203  ;;  %v3259_v17 = vpop.permute.xlu0 %3258  ;;  %v8936_v25 = vld [vmem:[#allocation139_spill] sm:$0xff] }
 0x36c   : > { %v3705_v60 = vadd.f32 %v3204_v3, %v3033_v10  ;;  %v3716_v55 = vadd.f32 %v3259_v17, %v3044_v11  ;;  %3578 = vperm.xlu0 %4015, %v2436_v54   ;;  %v2319_v31 = vmul.f32 %v6783_v24, %v8936_v25  ;;  %v4265_v10 = vld [vmem:[%s4396_s18 + $0xe8] sm:$0xff]  ;;  %v2207_v11 = vld [vmem:[%s6928_s24 + $0x2a0] sm:$0xff] }
 0x36d   : > { %v3048_v59 = vmul.f32 %v4265_v10, %v8938_v19  ;;  %v8939_v54 = vld [vmem:[#allocation3_spill] sm:$0xff]  ;;  %v2211_v25 = vld [vmem:[%s6928_s24 + $0x2c0] sm:$0xff] }
 0x36e   : > { %3817 = vst.msk [vmem:[%s7284_s27 + $0x70] sm:$0xff] %vm330_vm0, %v3705_v60  ;;  %3828 = vst.msk [vmem:[%s7284_s27 + $0xc8] sm:$0xff] %vm330_vm0, %v3716_v55  ;;  %v2330_v41 = vmul.f32 %v6795_v8, %v8939_v54  ;;  %v2431_v12 = vsub.f32 %v2207_v11, %v2319_v31  ;;  %v8940_v60 = vld [vmem:[#allocation141_spill] sm:$0xff]  ;;  %v3050_v8 = vmul.f32 %v4267_v30, %v8941_v50  ;;  %v8946_v31 = vld [vmem:[#allocation7_spill] sm:$0xff] }
 0x36f   : > { %3533 = vperm.xlu1 %4016, %v2427_v9   ;;  %v3214_v18 = vpop.permute.xlu1 %3213  ;;  %v3269_v51 = vpop.permute.xlu0 %3268  ;;  %v2321_v55 = vmul.f32 %v6805_v14, %v8940_v60  ;;  %v4266_v9 = vld [vmem:[%s4396_s18 + $0xa0] sm:$0xff]  ;;  %v2334_v56 = vmul.f32 %v6833_v48, %v8946_v31  ;;  %v4272_v30 = vld [vmem:[%s4396_s18 + $0xd0] sm:$0xff] }
 0x370   : > { %v3707_v32 = vadd.f32 %v3214_v18, %v3035_v1  ;;  %v3718_v5 = vadd.f32 %v3269_v51, %v3046_v40  ;;  %3588 = vperm.xlu0 %4015, %v2438_v62   ;;  %v3039_v28 = vmul.f32 %v4266_v9, %v6800_v4  ;;  %v2442_v7 = vsub.f32 %v2218_v58, %v2330_v41  ;;  %v8942_v1 = vld [vmem:[#allocation5_spill] sm:$0xff]  ;;  %v4268_v18 = vld [vmem:[%s4396_s18 + $0xb0] sm:$0xff]  ;;  %v8944_v51 = vld [vmem:[#allocation202_spill] sm:$0xff] }
 0x371   : > { %v2332_v42 = vmul.f32 %v6814_v23, %v8942_v1  ;;  %v2433_v61 = vsub.f32 %v2209_v43, %v2321_v55  ;;  %v3041_v33 = vmul.f32 %v4268_v18, %v8944_v51  ;;  %v4270_v54 = vld [vmem:[%s4396_s18 + $0xc0] sm:$0xff]  ;;  %v2213_v58 = vld [vmem:[%s6928_s24 + $0x2d0] sm:$0xff]  ;;  %v3045_v50 = vmul.f32 %v4272_v30, %v6854_v20  ;;  %v8953_v18 = vld [vmem:[#allocation205_spill] sm:$0xff] }
 0x372   : > { %3819 = vst.msk [vmem:[%s7284_s27 + $0x80] sm:$0xff] %vm330_vm0, %v3707_v32  ;;  %3830 = vst.msk [vmem:[%s7284_s27 + $0xd8] sm:$0xff] %vm330_vm0, %v3718_v5  ;;  %v4269_v32 = vld [vmem:[%s4396_s18 + $0x108] sm:$0xff]  ;;  %v3043_v41 = vmul.f32 %v4270_v54, %v6836_v22  ;;  %v8949_v9 = vld [vmem:[#allocation146_spill] sm:$0xff] }
 0x373   : > { %3543 = vperm.xlu1 %4016, %v2429_v46   ;;  %v3224_v24 = vpop.permute.xlu1 %3223  ;;  %v3279_v2 = vpop.permute.xlu0 %3278  ;;  %v8945_v5 = vld [vmem:[#allocation203_spill] sm:$0xff]  ;;  %v2444_v46 = vsub.f32 %v2220_v52, %v2332_v42  ;;  %v2215_v1 = vld [vmem:[%s6928_s24 + $0x2e0] sm:$0xff] }
 0x374   : > { %v3709_v3 = vadd.f32 %v3224_v24, %v3037_v29  ;;  %v3720_v17 = vadd.f32 %v3279_v2, %v3048_v59  ;;  %3598 = vperm.xlu0 %4015, %v2440_v63   ;;  %v3052_v23 = vmul.f32 %v4269_v32, %v8945_v5  ;;  %v2222_v29 = vld [vmem:[%s6928_s24 + $0x318] sm:$0xff]  ;;  %v2435_v59 = vsub.f32 %v2211_v25, %v2323_v16  ;;  %v8951_v42 = vld [vmem:[#allocation11_spill] sm:$0xff]  ;;  %v4274_v16 = vld [vmem:[%s4396_s18 + $0xe0] sm:$0xff] }
 0x375   : > { %v8947_v63 = vld [vmem:[#allocation145_spill] sm:$0xff]  ;;  %v2446_v2 = vsub.f32 %v2222_v29, %v2334_v56  ;;  %v3047_v51 = vmul.f32 %v4274_v16, %v8953_v18  ;;  %v8954_v32 = vld [vmem:[#allocation206_spill] sm:$0xff]  ;;  %v2228_v56 = vld [vmem:[%s6928_s24 + $0x348] sm:$0xff] }
 0x376   : > { %3821 = vst.msk [vmem:[%s7284_s27 + $0x90] sm:$0xff] %vm330_vm0, %v3709_v3  ;;  %3832 = vst.msk [vmem:[%s7284_s27 + $0xe8] sm:$0xff] %vm330_vm0, %v3720_v17  ;;  %v2325_v11 = vmul.f32 %v6844_v15, %v8947_v63  ;;  %v4271_v24 = vld [vmem:[%s4396_s18 + $0x118] sm:$0xff]  ;;  %v8957_v63 = vld [vmem:[#allocation207_spill] sm:$0xff] }
 0x377   : > { %3553 = vperm.xlu1 %4016, %v2431_v12   ;;  %v3234_v14 = vpop.permute.xlu1 %3233  ;;  %v3289_v4 = vpop.permute.xlu0 %3288  ;;  %v3054_v48 = vmul.f32 %v4271_v24, %v6839_v6  ;;  %v8948_v3 = vld [vmem:[#allocation9_spill] sm:$0xff]  ;;  %v2224_v12 = vld [vmem:[%s6928_s24 + $0x328] sm:$0xff]  ;;  %v4280_v16 = vld [vmem:[%s4396_s18 + $0x110] sm:$0xff] }
 0x378   : > { %v3711_v40 = vadd.f32 %v3234_v14, %v3039_v28  ;;  %v3722_v62 = vadd.f32 %v3289_v4, %v3050_v8  ;;  %3608 = vperm.xlu0 %4015, %v2442_v7   ;;  %v2336_v17 = vmul.f32 %v6851_v0, %v8948_v3  ;;  %v2437_v6 = vsub.f32 %v2213_v58, %v2325_v11  ;;  %v4273_v8 = vld [vmem:[%s4396_s18 + $0x128] sm:$0xff]  ;;  %v8950_v7 = vld [vmem:[#allocation204_spill] sm:$0xff]  ;;  %v2226_v4 = vld [vmem:[%s6928_s24 + $0x338] sm:$0xff] }
 0x379   : > { %v2327_v28 = vmul.f32 %v6862_v13, %v8949_v9  ;;  %v3056_v0 = vmul.f32 %v4273_v8, %v8950_v7  ;;  %v2338_v14 = vmul.f32 %v6869_v34, %v8951_v42  ;;  %v4277_v54 = vld [vmem:[%s4396_s18 + $0x148] sm:$0xff]  ;;  %v4278_v9 = vld [vmem:[%s4396_s18 + $0x100] sm:$0xff]  ;;  %v8968_v18 = vld [vmem:[#allocation213_spill] sm:$0xff] }
 0x37a   : > { %3823 = vst.msk [vmem:[%s7284_s27 + $0xa0] sm:$0xff] %vm330_vm0, %v3711_v40  ;;  %3834 = vst.msk [vmem:[%s7284_s27 + $0xf8] sm:$0xff] %vm330_vm0, %v3722_v62  ;;  %v2448_v43 = vsub.f32 %v2224_v12, %v2336_v17  ;;  %v2230_v17 = vld [vmem:[%s6928_s24 + $0x358] sm:$0xff]  ;;  %v8963_v8 = vld [vmem:[#allocation210_spill] sm:$0xff] }
 0x37b   : > { %3563 = vperm.xlu1 %4016, %v2433_v61   ;;  %v3244_v49 = vpop.permute.xlu1 %3243  ;;  %v3299_v21 = vpop.permute.xlu0 %3298  ;;  %v2439_v62 = vsub.f32 %v2215_v1, %v2327_v28  ;;  %v8952_v61 = vld [vmem:[#allocation4_spill] sm:$0xff]  ;;  %v2450_v5 = vsub.f32 %v2226_v4, %v2338_v14  ;;  %v8962_v28 = vld [vmem:[#allocation209_spill] sm:$0xff] }
 0x37c   : > { %v3713_v10 = vadd.f32 %v3244_v49, %v3041_v33  ;;  %v3724_v19 = vadd.f32 %v3299_v21, %v3052_v23  ;;  %3618 = vperm.xlu0 %4015, %v2444_v46   ;;  %v2329_v36 = vmul.f32 %v6880_v45, %v8952_v61  ;;  %v4275_v33 = vld [vmem:[%s4396_s18 + $0x138] sm:$0xff]  ;;  %v2217_v23 = vld [vmem:[%s6928_s24 + $0x2f0] sm:$0xff]  ;;  %v3051_v30 = vmul.f32 %v4278_v9, %v8962_v28  ;;  %v8967_v61 = vld [vmem:[#allocation215_spill] sm:$0xff] }
 0x37d   : > { %v3058_v34 = vmul.f32 %v4275_v33, %v8954_v32  ;;  %v8955_v46 = vld [vmem:[#allocation13_spill] sm:$0xff]  ;;  %v8965_v1 = vld [vmem:[#allocation212_spill] sm:$0xff]  ;;  %v4281_v33 = vld [vmem:[%s4396_s18 + $0x168] sm:$0xff] }
 0x37e   : > { %3825 = vst.msk [vmem:[%s7284_s27 + $0xb0] sm:$0xff] %vm330_vm0, %v3713_v10  ;;  %3836 = vst.msk [vmem:[%s7284_s27 + $0x108] sm:$0xff] %vm330_vm0, %v3724_v19  ;;  %v2340_v25 = vmul.f32 %v6887_v39, %v8955_v46  ;;  %v2441_v29 = vsub.f32 %v2217_v23, %v2329_v36  ;;  %v8956_v10 = vld [vmem:[#allocation6_spill] sm:$0xff]  ;;  %v8970_v46 = vld [vmem:[#allocation19_spill] sm:$0xff] }
 0x37f   : > { %3573 = vperm.xlu1 %4016, %v2435_v59   ;;  %v3254_v15 = vpop.permute.xlu1 %3253  ;;  %v3309_v22 = vpop.permute.xlu0 %3308  ;;  %v2331_v19 = vmul.f32 %v6898_v38, %v8956_v10  ;;  %v4276_v59 = vld [vmem:[%s4396_s18 + $0xf0] sm:$0xff]  ;;  %v8969_v32 = vld [vmem:[#allocation214_spill] sm:$0xff] }
 0x380   : > { %v3715_v60 = vadd.f32 %v3254_v15, %v3043_v41  ;;  %v3726_v55 = vadd.f32 %v3309_v22, %v3054_v48  ;;  %3628 = vperm.xlu0 %4015, %v2446_v2   ;;  %v3049_v11 = vmul.f32 %v4276_v59, %v8957_v63  ;;  %v8958_v41 = vld [vmem:[#allocation208_spill] sm:$0xff]  ;;  %v2452_v24 = vsub.f32 %v2228_v56, %v2340_v25  ;;  %v2219_v48 = vld [vmem:[%s6928_s24 + $0x300] sm:$0xff]  ;;  %v8959_v2 = vld [vmem:[#allocation15_spill] sm:$0xff] }
 0x381   : > { %v3060_v39 = vmul.f32 %v4277_v54, %v8958_v41  ;;  %v2342_v58 = vmul.f32 %v6902_v35, %v8959_v2  ;;  %v2443_v12 = vsub.f32 %v2219_v48, %v2331_v19  ;;  %v2223_v23 = vld [vmem:[%s6928_s24 + $0x320] sm:$0xff]  ;;  %v8971_v25 = vld [vmem:[#allocation216_spill] sm:$0xff]  ;;  %v8973_v59 = vld [vmem:[#allocation217_spill] sm:$0xff] }
 0x382   : > { %3827 = vst.msk [vmem:[%s7284_s27 + $0xc0] sm:$0xff] %vm330_vm0, %v3715_v60  ;;  %3838 = vst.msk [vmem:[%s7284_s27 + $0x118] sm:$0xff] %vm330_vm0, %v3726_v55  ;;  %v8960_v60 = vld [vmem:[#allocation8_spill] sm:$0xff]  ;;  %v8961_v55 = vld [vmem:[#allocation211_spill] sm:$0xff] }
 0x383   : > { %3583 = vperm.xlu1 %4016, %v2437_v6   ;;  %v3264_v13 = vpop.permute.xlu1 %3263  ;;  %v3319_v20 = vpop.permute.xlu0 %3318  ;;  %v2333_v6 = vmul.f32 %v8961_v55, %v8960_v60  ;;  %v2454_v7 = vsub.f32 %v2230_v17, %v2342_v58  ;;  %v8972_v19 = vld [vmem:[#allocation12_spill] sm:$0xff]  ;;  %v8974_v54 = vld [vmem:[#allocation21_spill] sm:$0xff]  ;;  %v8977_v60 = vld [vmem:[#allocation218_spill] sm:$0xff] }
 0x384   : > { %v3717_v52 = vadd.f32 %v3264_v13, %v3045_v50  ;;  %v3728_v40 = vadd.f32 %v3319_v20, %v3056_v0  ;;  %3638 = vperm.xlu0 %4015, %v2448_v43   ;;  %v4279_v50 = vld [vmem:[%s4396_s18 + $0x158] sm:$0xff]  ;;  %v2221_v0 = vld [vmem:[%s6928_s24 + $0x310] sm:$0xff]  ;;  %v2232_v20 = vld [vmem:[%s6928_s24 + $0x368] sm:$0xff]  ;;  %v2337_v63 = vmul.f32 %v8973_v59, %v8972_v19 }
 0x385   : > { %v3062_v35 = vmul.f32 %v4279_v50, %v8963_v8  ;;  %v8964_v43 = vld [vmem:[#allocation17_spill] sm:$0xff]  ;;  %v2225_v58 = vld [vmem:[%s6928_s24 + $0x330] sm:$0xff]  ;;  %v8978_v9 = vld [vmem:[#allocation26_spill] sm:$0xff] }
 0x386   : > { %3829 = vst.msk [vmem:[%s7284_s27 + $0xd0] sm:$0xff] %vm330_vm0, %v3717_v52  ;;  %3840 = vst.msk [vmem:[%s7284_s27 + $0x128] sm:$0xff] %vm330_vm0, %v3728_v40  ;;  %v2344_v42 = vmul.f32 %v8965_v1, %v8964_v43  ;;  %v2445_v40 = vsub.f32 %v2221_v0, %v2333_v6  ;;  %v4284_v6 = vld [vmem:[%s4396_s18 + $0x130] sm:$0xff]  ;;  %v8979_v50 = vld [vmem:[#allocation74_spill] sm:$0xff] }
 0x387   : > { %3593 = vperm.xlu1 %4016, %v2439_v62   ;;  %v3274_v45 = vpop.permute.xlu1 %3273  ;;  %v3329_v31 = vpop.permute.xlu0 %3328  ;;  %v8966_v62 = vld [vmem:[#allocation10_spill] sm:$0xff]  ;;  %v3057_v28 = vmul.f32 %v4284_v6, %v8978_v9  ;;  %v4292_v6 = vld [vmem:[%s4396_s18 + $0x170] sm:$0xff]  ;;  %v8992_v9 = vld [vmem:[#allocation25_spill] sm:$0xff] }
 0x388   : > { %v3719_v49 = vadd.f32 %v3274_v45, %v3047_v51  ;;  %v3730_v21 = vadd.f32 %v3329_v31, %v3058_v34  ;;  %3648 = vperm.xlu0 %4015, %v2450_v5   ;;  %v2335_v36 = vmul.f32 %v8967_v61, %v8966_v62  ;;  %v3053_v51 = vmul.f32 %v4280_v16, %v8968_v18  ;;  %v4287_v62 = vld [vmem:[%s4396_s18 + $0x198] sm:$0xff]  ;;  %v2229_v16 = vld [vmem:[%s6928_s24 + $0x350] sm:$0xff] }
 0x389   : > { %v3064_v34 = vmul.f32 %v4281_v33, %v8969_v32  ;;  %v2456_v5 = vsub.f32 %v2232_v20, %v2344_v42  ;;  %v2346_v45 = vmul.f32 %v8971_v25, %v8970_v46  ;;  %v8983_v61 = vld [vmem:[#allocation89_spill] sm:$0xff]  ;;  %v4288_v25 = vld [vmem:[%s4396_s18 + $0x150] sm:$0xff] }
 0x38a   : > { %3831 = vst.msk [vmem:[%s7284_s27 + $0xe0] sm:$0xff] %vm330_vm0, %v3719_v49  ;;  %3842 = vst.msk [vmem:[%s7284_s27 + $0x138] sm:$0xff] %vm330_vm0, %v3730_v21  ;;  %v2234_v49 = vld [vmem:[%s6928_s24 + $0x378] sm:$0xff]  ;;  %v2447_v10 = vsub.f32 %v2223_v23, %v2335_v36  ;;  %v3070_v36 = vmul.f32 %v4287_v62, %v8983_v61 }
 0x38b   : > { %3603 = vperm.xlu1 %4016, %v2441_v29   ;;  %v3284_v38 = vpop.permute.xlu1 %3283  ;;  %v3339_v3 = vpop.permute.xlu0 %3338  ;;  %v2458_v2 = vsub.f32 %v2234_v49, %v2346_v45  ;;  %v8985_v23 = vld [vmem:[#allocation221_spill] sm:$0xff]  ;;  %v8987_v49 = vld [vmem:[#allocation220_spill] sm:$0xff] }
 0x38c   : > { %v3721_v15 = vadd.f32 %v3284_v38, %v3049_v11  ;;  %v3732_v22 = vadd.f32 %v3339_v3, %v3060_v39  ;;  %3658 = vperm.xlu0 %4015, %v2452_v24   ;;  %v4282_v11 = vld [vmem:[%s4396_s18 + $0x120] sm:$0xff]  ;;  %v4283_v39 = vld [vmem:[%s4396_s18 + $0x178] sm:$0xff] }
 0x38d   : > { %v3055_v41 = vmul.f32 %v4282_v11, %v8974_v54  ;;  %v8975_v24 = vld [vmem:[#allocation58_spill] sm:$0xff]  ;;  %v8986_v45 = vld [vmem:[#allocation45_spill] sm:$0xff]  ;;  %v8988_v54 = vld [vmem:[#allocation20_spill] sm:$0xff] }
 0x38e   : > { %3833 = vst.msk [vmem:[%s7284_s27 + $0xf0] sm:$0xff] %vm330_vm0, %v3721_v15  ;;  %3844 = vst.msk [vmem:[%s7284_s27 + $0x148] sm:$0xff] %vm330_vm0, %v3732_v22  ;;  %v3066_v48 = vmul.f32 %v4283_v39, %v8975_v24  ;;  %v2449_v22 = vsub.f32 %v2225_v58, %v2337_v63  ;;  %v4290_v24 = vld [vmem:[%s4396_s18 + $0x160] sm:$0xff]  ;;  %v4291_v58 = vld [vmem:[%s4396_s18 + $0x1b8] sm:$0xff] }
 0x38f   : > { %3613 = vperm.xlu1 %4016, %v2443_v12   ;;  %v3294_v14 = vpop.permute.xlu1 %3293  ;;  %v3349_v13 = vpop.permute.xlu0 %3348  ;;  %v8976_v12 = vld [vmem:[#allocation14_spill] sm:$0xff] }
 0x390   : > { %v3723_v4 = vadd.f32 %v3294_v14, %v3051_v30  ;;  %v3734_v52 = vadd.f32 %v3349_v13, %v3062_v35  ;;  %3668 = vperm.xlu0 %4015, %v2454_v7   ;;  %v2339_v55 = vmul.f32 %v8977_v60, %v8976_v12  ;;  %v4285_v30 = vld [vmem:[%s4396_s18 + $0x188] sm:$0xff]  ;;  %v2227_v35 = vld [vmem:[%s6928_s24 + $0x340] sm:$0xff]  ;;  %v8980_v14 = vld [vmem:[#allocation16_spill] sm:$0xff] }
 0x391   : > { %v3068_v8 = vmul.f32 %v4285_v30, %v8979_v50  ;;  %v8981_v13 = vld [vmem:[#allocation219_spill] sm:$0xff]  ;;  %v8993_v50 = vld [vmem:[#allocation70_spill] sm:$0xff] }
 0x392   : > { %3835 = vst.msk [vmem:[%s7284_s27 + $0x100] sm:$0xff] %vm330_vm0, %v3723_v4  ;;  %3846 = vst.msk [vmem:[%s7284_s27 + $0x158] sm:$0xff] %vm330_vm0, %v3734_v52  ;;  %v2451_v42 = vsub.f32 %v2227_v35, %v2339_v55  ;;  %v2341_v20 = vmul.f32 %v8981_v13, %v8980_v14  ;;  %v4286_v4 = vld [vmem:[%s4396_s18 + $0x140] sm:$0xff]  ;;  %v4293_v30 = vld [vmem:[%s4396_s18 + $0x1c8] sm:$0xff] }
 0x393   : > { %3623 = vperm.xlu1 %4016, %v2445_v40   ;;  %v3304_v31 = vpop.permute.xlu1 %3303  ;;  %v3359_v56 = vpop.permute.xlu0 %3358  ;;  %v8982_v52 = vld [vmem:[#allocation34_spill] sm:$0xff]  ;;  %v4295_v13 = vld [vmem:[%s4396_s18 + $0x1d8] sm:$0xff] }
 0x394   : > { %v3725_v21 = vadd.f32 %v3304_v31, %v3053_v51  ;;  %v3736_v29 = vadd.f32 %v3359_v56, %v3064_v34  ;;  %3678 = vperm.xlu0 %4015, %v2456_v5   ;;  %v3059_v40 = vmul.f32 %v4286_v4, %v8982_v52  ;;  %v2453_v34 = vsub.f32 %v2229_v16, %v2341_v20  ;;  %v8984_v5 = vld [vmem:[#allocation18_spill] sm:$0xff]  ;;  %v4289_v56 = vld [vmem:[%s4396_s18 + $0x1a8] sm:$0xff] }
 0x395   : > { %v2343_v46 = vmul.f32 %v8985_v23, %v8984_v5  ;;  %v3061_v31 = vmul.f32 %v4288_v25, %v8986_v45  ;;  %v8995_v20 = vld [vmem:[#allocation86_spill] sm:$0xff]  ;;  %v8998_v45 = vld [vmem:[#allocation37_spill] sm:$0xff] }
 0x396   : > { %3837 = vst.msk [vmem:[%s7284_s27 + $0x110] sm:$0xff] %vm330_vm0, %v3725_v21  ;;  %3848 = vst.msk [vmem:[%s7284_s27 + $0x168] sm:$0xff] %vm330_vm0, %v3736_v29  ;;  %v3072_v21 = vmul.f32 %v4289_v56, %v8987_v49  ;;  %v2231_v29 = vld [vmem:[%s6928_s24 + $0x360] sm:$0xff]  ;;  %v3078_v4 = vmul.f32 %v4295_v13, %v8995_v20  ;;  %v4299_v56 = vld [vmem:[%s4396_s18 + $0x1f8] sm:$0xff] }
 0x397   : > { %3633 = vperm.xlu1 %4016, %v2447_v10   ;;  %v3314_v38 = vpop.permute.xlu1 %3313  ;;  %v3369_v3 = vpop.permute.xlu0 %3368  ;;  %v2455_v11 = vsub.f32 %v2231_v29, %v2343_v46  ;;  %v8996_v16 = vld [vmem:[#allocation22_spill] sm:$0xff]  ;;  %v8999_v49 = vld [vmem:[#allocation23_spill] sm:$0xff] }
 0x398   : > { %v3727_v17 = vadd.f32 %v3314_v38, %v3055_v41  ;;  %v3738_v15 = vadd.f32 %v3369_v3, %v3066_v48  ;;  %3688 = vperm.xlu0 %4015, %v2458_v2   ;;  %v8989_v41 = vld [vmem:[#allocation222_spill] sm:$0xff]  ;;  %v8990_v48 = vld [vmem:[#allocation29_spill] sm:$0xff] }
 0x399   : > { %v2345_v39 = vmul.f32 %v8989_v41, %v8988_v54  ;;  %v3063_v2 = vmul.f32 %v4290_v24, %v8990_v48  ;;  %v8991_v38 = vld [vmem:[#allocation78_spill] sm:$0xff]  ;;  %v4301_v41 = vld [vmem:[%s4396_s18 + $0x208] sm:$0xff] }
 0x39a   : > { %3839 = vst.msk [vmem:[%s7284_s27 + $0x120] sm:$0xff] %vm330_vm0, %v3727_v17  ;;  %3850 = vst.msk [vmem:[%s7284_s27 + $0x178] sm:$0xff] %vm330_vm0, %v3738_v15  ;;  %v3074_v3 = vmul.f32 %v4291_v58, %v8991_v38  ;;  %v2233_v17 = vld [vmem:[%s6928_s24 + $0x370] sm:$0xff]  ;;  %v4298_v25 = vld [vmem:[%s4396_s18 + $0x1a0] sm:$0xff] }
 0x39b   : > { %3643 = vperm.xlu1 %4016, %v2449_v22   ;;  %v3324_v7 = vpop.permute.xlu1 %3323  ;;  %v3379_v0 = vpop.permute.xlu0 %3378  ;;  %v2457_v55 = vsub.f32 %v2233_v17, %v2345_v39  ;;  %v9001_v39 = vld [vmem:[#allocation82_spill] sm:$0xff]  ;;  %v9002_v17 = vld [vmem:[#allocation41_spill] sm:$0xff] }
 0x39c   : > { %v3729_v43 = vadd.f32 %v3324_v7, %v3057_v28  ;;  %v3740_v1 = vadd.f32 %v3379_v0, %v3068_v8  ;;  %v3065_v28 = vmul.f32 %v4292_v6, %v8992_v9  ;;  %v3076_v8 = vmul.f32 %v4293_v30, %v8993_v50  ;;  %v4304_v30 = vld [vmem:[%s4396_s18 + $0x1d0] sm:$0xff]  ;;  %v9004_v50 = vld [vmem:[#allocation38_spill] sm:$0xff] }
 0x39d   : > { %v3084_v24 = vmul.f32 %v4301_v41, %v9001_v39  ;;  %v4306_v13 = vld [vmem:[%s4396_s18 + $0x1e0] sm:$0xff]  ;;  %v4312_v41 = vld [vmem:[%s4396_s18 + $0x210] sm:$0xff]  ;;  %v9012_v39 = vld [vmem:[#allocation57_spill] sm:$0xff] }
 0x39e   : > { %3841 = vst.msk [vmem:[%s7284_s27 + $0x130] sm:$0xff] %vm330_vm0, %v3729_v43  ;;  %3852 = vst.msk [vmem:[%s7284_s27 + $0x188] sm:$0xff] %vm330_vm0, %v3740_v1  ;;  %v4294_v1 = vld [vmem:[%s4396_s18 + $0x180] sm:$0xff] }
 0x39f   : > { %3653 = vperm.xlu1 %4016, %v2451_v42   ;;  %v3334_v18 = vpop.permute.xlu1 %3333  ;;  %v3389_v51 = vpop.permute.xlu0 %3388  ;;  %v8994_v42 = vld [vmem:[#allocation33_spill] sm:$0xff]  ;;  %v9006_v20 = vld [vmem:[#allocation46_spill] sm:$0xff] }
 0x3a0   : > { %v3731_v33 = vadd.f32 %v3334_v18, %v3059_v40  ;;  %v3742_v32 = vadd.f32 %v3389_v51, %v3070_v36  ;;  %v3067_v14 = vmul.f32 %v4294_v1, %v8994_v42  ;;  %v4296_v36 = vld [vmem:[%s4396_s18 + $0x190] sm:$0xff]  ;;  %v4297_v51 = vld [vmem:[%s4396_s18 + $0x1e8] sm:$0xff] }
 0x3a1   : > { %v3069_v18 = vmul.f32 %v4296_v36, %v8996_v16 }
 0x3a2   : > { %3843 = vst.msk [vmem:[%s7284_s27 + $0x140] sm:$0xff] %vm330_vm0, %v3731_v33  ;;  %3854 = vst.msk [vmem:[%s7284_s27 + $0x198] sm:$0xff] %vm330_vm0, %v3742_v32  ;;  %v8997_v33 = vld [vmem:[#allocation66_spill] sm:$0xff] }
 0x3a3   : > { %3663 = vperm.xlu1 %4016, %v2453_v34   ;;  %v3344_v10 = vpop.permute.xlu1 %3343  ;;  %v3399_v19 = vpop.permute.xlu0 %3398  ;;  %v3080_v32 = vmul.f32 %v4297_v51, %v8997_v33  ;;  %v4308_v51 = vld [vmem:[%s4396_s18 + $0x1f0] sm:$0xff]  ;;  %v9008_v33 = vld [vmem:[#allocation50_spill] sm:$0xff] }
 0x3a4   : > { %v3733_v59 = vadd.f32 %v3344_v10, %v3061_v31  ;;  %v3744_v63 = vadd.f32 %v3399_v19, %v3072_v21  ;;  %v3071_v31 = vmul.f32 %v4298_v25, %v8998_v45  ;;  %v3082_v21 = vmul.f32 %v4299_v56, %v8999_v49  ;;  %v4310_v56 = vld [vmem:[%s4396_s18 + $0x200] sm:$0xff]  ;;  %v9010_v49 = vld [vmem:[#allocation53_spill] sm:$0xff] }
 0x3a6   : > { %3845 = vst.msk [vmem:[%s7284_s27 + $0x150] sm:$0xff] %vm330_vm0, %v3733_v59  ;;  %3856 = vst.msk [vmem:[%s7284_s27 + $0x1a8] sm:$0xff] %vm330_vm0, %v3744_v63  ;;  %v4300_v63 = vld [vmem:[%s4396_s18 + $0x1b0] sm:$0xff] }
 0x3a7   : > { %3673 = vperm.xlu1 %4016, %v2455_v11   ;;  %v3354_v15 = vpop.permute.xlu1 %3353  ;;  %v3409_v22 = vpop.permute.xlu0 %3408  ;;  %v9000_v11 = vld [vmem:[#allocation30_spill] sm:$0xff] }
 0x3a8   : > { %v3735_v12 = vadd.f32 %v3354_v15, %v3063_v2  ;;  %v3746_v60 = vadd.f32 %v3409_v22, %v3074_v3  ;;  %v3073_v54 = vmul.f32 %v4300_v63, %v9000_v11  ;;  %v4302_v3 = vld [vmem:[%s4396_s18 + $0x1c0] sm:$0xff]  ;;  %v4303_v22 = vld [vmem:[%s4396_s18 + $0x218] sm:$0xff] }
 0x3a9   : > { %v3075_v15 = vmul.f32 %v4302_v3, %v9002_v17 }
 0x3aa   : > { %3847 = vst.msk [vmem:[%s7284_s27 + $0x160] sm:$0xff] %vm330_vm0, %v3735_v12  ;;  %3858 = vst.msk [vmem:[%s7284_s27 + $0x1b8] sm:$0xff] %vm330_vm0, %v3746_v60  ;;  %v9003_v12 = vld [vmem:[#allocation96_spill] sm:$0xff] }
 0x3ab   : > { %v3364_v35 = vpop.permute.xlu1 %3363  ;;  %3683 = vperm.xlu1 %4016, %v2457_v55   ;;  %v3419_v7 = vpop.permute.xlu0 %3418  ;;  %v3086_v60 = vmul.f32 %v4303_v22, %v9003_v12  ;;  %v4314_v22 = vld [vmem:[%s4396_s18 + $0x220] sm:$0xff]  ;;  %v9014_v12 = vld [vmem:[#allocation61_spill] sm:$0xff] }
 0x3ac   : > { %v3737_v0 = vadd.f32 %v3364_v35, %v3065_v28  ;;  %v3748_v43 = vadd.f32 %v3419_v7, %v3076_v8  ;;  %v3077_v8 = vmul.f32 %v4304_v30, %v9004_v50  ;;  %v4305_v35 = vld [vmem:[%s4396_s18 + $0x228] sm:$0xff] }
 0x3ad   : > { %v9005_v7 = vld [vmem:[#allocation27_spill] sm:$0xff] }
 0x3ae   : > { %3849 = vst.msk [vmem:[%s7284_s27 + $0x170] sm:$0xff] %vm330_vm0, %v3737_v0  ;;  %3860 = vst.msk [vmem:[%s7284_s27 + $0x1c8] sm:$0xff] %vm330_vm0, %v3748_v43  ;;  %v3088_v0 = vmul.f32 %v4305_v35, %v9005_v7  ;;  %v4316_v35 = vld [vmem:[%s4396_s18 + $0x230] sm:$0xff]  ;;  %v9016_v7 = vld [vmem:[#allocation65_spill] sm:$0xff] }
 0x3af   : > { %v3374_v52 = vpop.permute.xlu1 %3373  ;;  %v3429_v40 = vpop.permute.xlu0 %3428 }
 0x3b0   : > { %v3739_v62 = vadd.f32 %v3374_v52, %v3067_v14  ;;  %v3750_v61 = vadd.f32 %v3429_v40, %v3078_v4  ;;  %v3079_v4 = vmul.f32 %v4306_v13, %v9006_v20  ;;  %v4307_v52 = vld [vmem:[%s4396_s18 + $0x238] sm:$0xff]  ;;  %v9007_v40 = vld [vmem:[#allocation43_spill] sm:$0xff] }
 0x3b2   : > { %3851 = vst.msk [vmem:[%s7284_s27 + $0x180] sm:$0xff] %vm330_vm0, %v3739_v62  ;;  %3862 = vst.msk [vmem:[%s7284_s27 + $0x1d8] sm:$0xff] %vm330_vm0, %v3750_v61  ;;  %v3090_v62 = vmul.f32 %v4307_v52, %v9007_v40  ;;  %v4318_v52 = vld [vmem:[%s4396_s18 + $0x240] sm:$0xff]  ;;  %v9018_v40 = vld [vmem:[#allocation69_spill] sm:$0xff] }
 0x3b3   : > { %v3384_v34 = vpop.permute.xlu1 %3383  ;;  %v3439_v5 = vpop.permute.xlu0 %3438 }
 0x3b4   : > { %v3741_v23 = vadd.f32 %v3384_v34, %v3069_v18  ;;  %v3752_v46 = vadd.f32 %v3439_v5, %v3080_v32  ;;  %v3081_v32 = vmul.f32 %v4308_v51, %v9008_v33  ;;  %v4309_v34 = vld [vmem:[%s4396_s18 + $0x248] sm:$0xff] }
 0x3b5   : > { %v9009_v5 = vld [vmem:[#allocation47_spill] sm:$0xff] }
 0x3b6   : > { %3853 = vst.msk [vmem:[%s7284_s27 + $0x190] sm:$0xff] %vm330_vm0, %v3741_v23  ;;  %3864 = vst.msk [vmem:[%s7284_s27 + $0x1e8] sm:$0xff] %vm330_vm0, %v3752_v46  ;;  %v3092_v23 = vmul.f32 %v4309_v34, %v9009_v5  ;;  %v4320_v34 = vld [vmem:[%s4396_s18 + $0x250] sm:$0xff]  ;;  %v9020_v5 = vld [vmem:[#allocation73_spill] sm:$0xff] }
 0x3b7   : > { %v3394_v29 = vpop.permute.xlu1 %3393  ;;  %v3449_v10 = vpop.permute.xlu0 %3448 }
 0x3b8   : > { %v3743_v19 = vadd.f32 %v3394_v29, %v3071_v31  ;;  %v3754_v59 = vadd.f32 %v3449_v10, %v3082_v21  ;;  %v3083_v21 = vmul.f32 %v4310_v56, %v9010_v49  ;;  %v4311_v29 = vld [vmem:[%s4396_s18 + $0x258] sm:$0xff]  ;;  %v9011_v10 = vld [vmem:[#allocation51_spill] sm:$0xff] }
 0x3ba   : > { %3855 = vst.msk [vmem:[%s7284_s27 + $0x1a0] sm:$0xff] %vm330_vm0, %v3743_v19  ;;  %3866 = vst.msk [vmem:[%s7284_s27 + $0x1f8] sm:$0xff] %vm330_vm0, %v3754_v59  ;;  %v3094_v19 = vmul.f32 %v4311_v29, %v9011_v10  ;;  %v4322_v29 = vld [vmem:[%s4396_s18 + $0x260] sm:$0xff]  ;;  %v9022_v10 = vld [vmem:[#allocation77_spill] sm:$0xff] }
 0x3bb   : > { %v3404_v48 = vpop.permute.xlu1 %3403  ;;  %v3459_v2 = vpop.permute.xlu0 %3458 }
 0x3bc   : > { %v3745_v58 = vadd.f32 %v3404_v48, %v3073_v54  ;;  %v3756_v38 = vadd.f32 %v3459_v2, %v3084_v24  ;;  %v3085_v24 = vmul.f32 %v4312_v41, %v9012_v39  ;;  %v4313_v48 = vld [vmem:[%s4396_s18 + $0x268] sm:$0xff] }
 0x3bd   : > { %v9013_v2 = vld [vmem:[#allocation55_spill] sm:$0xff] }
 0x3be   : > { %3857 = vst.msk [vmem:[%s7284_s27 + $0x1b0] sm:$0xff] %vm330_vm0, %v3745_v58  ;;  %3868 = vst.msk [vmem:[%s7284_s27 + $0x208] sm:$0xff] %vm330_vm0, %v3756_v38  ;;  %v3096_v58 = vmul.f32 %v4313_v48, %v9013_v2  ;;  %v4324_v48 = vld [vmem:[%s4396_s18 + $0x270] sm:$0xff]  ;;  %v9024_v2 = vld [vmem:[#allocation81_spill] sm:$0xff] }
 0x3bf   : > { %v3414_v55 = vpop.permute.xlu1 %3413  ;;  %v3469_v6 = vpop.permute.xlu0 %3468 }
 0x3c0   : > { %v3747_v9 = vadd.f32 %v3414_v55, %v3075_v15  ;;  %v3758_v28 = vadd.f32 %v3469_v6, %v3086_v60  ;;  %v3087_v60 = vmul.f32 %v4314_v22, %v9014_v12  ;;  %v4315_v55 = vld [vmem:[%s4396_s18 + $0x278] sm:$0xff]  ;;  %v9015_v6 = vld [vmem:[#allocation59_spill] sm:$0xff] }
 0x3c2   : > { %3859 = vst.msk [vmem:[%s7284_s27 + $0x1c0] sm:$0xff] %vm330_vm0, %v3747_v9  ;;  %3870 = vst.msk [vmem:[%s7284_s27 + $0x218] sm:$0xff] %vm330_vm0, %v3758_v28  ;;  %v3098_v9 = vmul.f32 %v4315_v55, %v9015_v6  ;;  %v4326_v55 = vld [vmem:[%s4396_s18 + $0x280] sm:$0xff]  ;;  %v9026_v6 = vld [vmem:[#allocation85_spill] sm:$0xff] }
 0x3c3   : > { %v3424_v43 = vpop.permute.xlu1 %3423  ;;  %v3479_v1 = vpop.permute.xlu0 %3478 }
 0x3c4   : > { %v3749_v42 = vadd.f32 %v3424_v43, %v3077_v8  ;;  %v3760_v14 = vadd.f32 %v3479_v1, %v3088_v0  ;;  %v3089_v0 = vmul.f32 %v4316_v35, %v9016_v7  ;;  %v4317_v43 = vld [vmem:[%s4396_s18 + $0x288] sm:$0xff] }
 0x3c5   : > { %v9017_v1 = vld [vmem:[#allocation63_spill] sm:$0xff] }
 0x3c6   : > { %3861 = vst.msk [vmem:[%s7284_s27 + $0x1d0] sm:$0xff] %vm330_vm0, %v3749_v42  ;;  %3872 = vst.msk [vmem:[%s7284_s27 + $0x228] sm:$0xff] %vm330_vm0, %v3760_v14  ;;  %v3100_v42 = vmul.f32 %v4317_v43, %v9017_v1  ;;  %v4328_v43 = vld [vmem:[%s4396_s18 + $0x290] sm:$0xff] }
 0x3c7   : > { %v3434_v61 = vpop.permute.xlu1 %3433  ;;  %v3489_v36 = vpop.permute.xlu0 %3488  ;;  %v9028_v1 = vld [vmem:[#allocation28_spill] sm:$0xff] }
 0x3c8   : > { %v3751_v16 = vadd.f32 %v3434_v61, %v3079_v4  ;;  %v3762_v18 = vadd.f32 %v3489_v36, %v3090_v62  ;;  %v3091_v62 = vmul.f32 %v4318_v52, %v9018_v40  ;;  %v4319_v61 = vld [vmem:[%s4396_s18 + $0x298] sm:$0xff]  ;;  %v9019_v36 = vld [vmem:[#allocation67_spill] sm:$0xff] }
 0x3ca   : > { %3863 = vst.msk [vmem:[%s7284_s27 + $0x1e0] sm:$0xff] %vm330_vm0, %v3751_v16  ;;  %3874 = vst.msk [vmem:[%s7284_s27 + $0x238] sm:$0xff] %vm330_vm0, %v3762_v18  ;;  %v3102_v16 = vmul.f32 %v4319_v61, %v9019_v36  ;;  %v4330_v61 = vld [vmem:[%s4396_s18 + $0x2a0] sm:$0xff] }
 0x3cb   : > { %v3444_v46 = vpop.permute.xlu1 %3443  ;;  %v3499_v25 = vpop.permute.xlu0 %3498  ;;  %v9030_v36 = vld [vmem:[#allocation90_spill] sm:$0xff] }
 0x3cc   : > { %v3753_v45 = vadd.f32 %v3444_v46, %v3081_v32  ;;  %v3764_v31 = vadd.f32 %v3499_v25, %v3092_v23  ;;  %v3093_v23 = vmul.f32 %v4320_v34, %v9020_v5  ;;  %v4321_v46 = vld [vmem:[%s4396_s18 + $0x2a8] sm:$0xff] }
 0x3cd   : > { %v9021_v25 = vld [vmem:[#allocation71_spill] sm:$0xff] }
 0x3ce   : > { %3865 = vst.msk [vmem:[%s7284_s27 + $0x1f0] sm:$0xff] %vm330_vm0, %v3753_v45  ;;  %3876 = vst.msk [vmem:[%s7284_s27 + $0x248] sm:$0xff] %vm330_vm0, %v3764_v31  ;;  %v3104_v45 = vmul.f32 %v4321_v46, %v9021_v25  ;;  %v4332_v46 = vld [vmem:[%s4396_s18 + $0x2b0] sm:$0xff]  ;;  %v9032_v25 = vld [vmem:[#allocation93_spill] sm:$0xff] }
 0x3cf   : > { %v3454_v59 = vpop.permute.xlu1 %3453  ;;  %v3509_v63 = vpop.permute.xlu0 %3508 }
 0x3d0   : > { %v3755_v11 = vadd.f32 %v3454_v59, %v3083_v21  ;;  %v3766_v54 = vadd.f32 %v3509_v63, %v3094_v19  ;;  %v3095_v19 = vmul.f32 %v4322_v29, %v9022_v10  ;;  %v4323_v59 = vld [vmem:[%s4396_s18 + $0x2b8] sm:$0xff]  ;;  %v9023_v63 = vld [vmem:[#allocation75_spill] sm:$0xff] }
 0x3d2   : > { %3867 = vst.msk [vmem:[%s7284_s27 + $0x200] sm:$0xff] %vm330_vm0, %v3755_v11  ;;  %3878 = vst.msk [vmem:[%s7284_s27 + $0x258] sm:$0xff] %vm330_vm0, %v3766_v54  ;;  %v3106_v11 = vmul.f32 %v4323_v59, %v9023_v63  ;;  %v4334_v59 = vld [vmem:[%s4396_s18 + $0x2c0] sm:$0xff]  ;;  %v9034_v63 = vld [vmem:[#allocation39_spill] sm:$0xff] }
 0x3d3   : > { %v3464_v38 = vpop.permute.xlu1 %3463  ;;  %v3519_v3 = vpop.permute.xlu0 %3518 }
 0x3d4   : > { %v3757_v17 = vadd.f32 %v3464_v38, %v3085_v24  ;;  %v3768_v15 = vadd.f32 %v3519_v3, %v3096_v58  ;;  %v3097_v58 = vmul.f32 %v4324_v48, %v9024_v2  ;;  %v4325_v38 = vld [vmem:[%s4396_s18 + $0x2c8] sm:$0xff] }
 0x3d5   : > { %v9025_v3 = vld [vmem:[#allocation79_spill] sm:$0xff] }
 0x3d6   : > { %3869 = vst.msk [vmem:[%s7284_s27 + $0x210] sm:$0xff] %vm330_vm0, %v3757_v17  ;;  %3880 = vst.msk [vmem:[%s7284_s27 + $0x268] sm:$0xff] %vm330_vm0, %v3768_v15  ;;  %v3108_v17 = vmul.f32 %v4325_v38, %v9025_v3  ;;  %v4336_v38 = vld [vmem:[%s4396_s18 + $0x2d0] sm:$0xff]  ;;  %v9036_v3 = vld [vmem:[#allocation97_spill] sm:$0xff] }
 0x3d7   : > { %v3474_v28 = vpop.permute.xlu1 %3473  ;;  %v3529_v30 = vpop.permute.xlu0 %3528 }
 0x3d8   : > { %v3759_v50 = vadd.f32 %v3474_v28, %v3087_v60  ;;  %v3770_v8 = vadd.f32 %v3529_v30, %v3098_v9  ;;  %v3099_v9 = vmul.f32 %v4326_v55, %v9026_v6  ;;  %v4327_v28 = vld [vmem:[%s4396_s18 + $0x2d8] sm:$0xff]  ;;  %v9027_v30 = vld [vmem:[#allocation83_spill] sm:$0xff] }
 0x3da   : > { %3871 = vst.msk [vmem:[%s7284_s27 + $0x220] sm:$0xff] %vm330_vm0, %v3759_v50  ;;  %3882 = vst.msk [vmem:[%s7284_s27 + $0x278] sm:$0xff] %vm330_vm0, %v3770_v8  ;;  %v3110_v50 = vmul.f32 %v4327_v28, %v9027_v30  ;;  %v4338_v28 = vld [vmem:[%s4396_s18 + $0x2e0] sm:$0xff]  ;;  %v9038_v30 = vld [vmem:[#allocation32_spill] sm:$0xff] }
 0x3db   : > { %v3484_v14 = vpop.permute.xlu1 %3483  ;;  %v3539_v13 = vpop.permute.xlu0 %3538 }
 0x3dc   : > { %v3761_v20 = vadd.f32 %v3484_v14, %v3089_v0  ;;  %v3772_v4 = vadd.f32 %v3539_v13, %v3100_v42  ;;  %v3101_v42 = vmul.f32 %v4328_v43, %v9028_v1  ;;  %v4329_v14 = vld [vmem:[%s4396_s18 + $0x2e8] sm:$0xff] }
 0x3dd   : > { %v9029_v13 = vld [vmem:[#allocation87_spill] sm:$0xff] }
 0x3de   : > { %3873 = vst.msk [vmem:[%s7284_s27 + $0x230] sm:$0xff] %vm330_vm0, %v3761_v20  ;;  %3884 = vst.msk [vmem:[%s7284_s27 + $0x288] sm:$0xff] %vm330_vm0, %v3772_v4  ;;  %v3112_v20 = vmul.f32 %v4329_v14, %v9029_v13  ;;  %v4340_v14 = vld [vmem:[%s4396_s18 + $0x2f0] sm:$0xff] }
 0x3df   : > { %v3494_v18 = vpop.permute.xlu1 %3493  ;;  %v3549_v51 = vpop.permute.xlu0 %3548  ;;  %v3113_v13 = vmul.f32 %v4340_v14, %v7236_v26 }
 0x3e0   : > { %v3763_v33 = vadd.f32 %v3494_v18, %v3091_v62  ;;  %v3774_v32 = vadd.f32 %v3549_v51, %v3102_v16  ;;  %v3103_v16 = vmul.f32 %v4330_v61, %v9030_v36  ;;  %v4331_v18 = vld [vmem:[%s4396_s18 + $0x2f8] sm:$0xff]  ;;  %v9031_v51 = vld [vmem:[#allocation91_spill] sm:$0xff] }
 0x3e2   : > { %3875 = vst.msk [vmem:[%s7284_s27 + $0x240] sm:$0xff] %vm330_vm0, %v3763_v33  ;;  %3886 = vst.msk [vmem:[%s7284_s27 + $0x298] sm:$0xff] %vm330_vm0, %v3774_v32  ;;  %v3114_v33 = vmul.f32 %v4331_v18, %v9031_v51  ;;  %v4343_v51 = vld [vmem:[%s4396_s18 + $0x358] sm:$0xff] }
 0x3e3   : > { %v3504_v31 = vpop.permute.xlu1 %3503  ;;  %v3559_v56 = vpop.permute.xlu0 %3558  ;;  %v3126_v26 = vmul.f32 %v4343_v51, %v7248_v27 }
 0x3e4   : > { %v3765_v49 = vadd.f32 %v3504_v31, %v3093_v23  ;;  %v3776_v21 = vadd.f32 %v3559_v56, %v3104_v45  ;;  %v3105_v45 = vmul.f32 %v4332_v46, %v9032_v25  ;;  %v4333_v31 = vld [vmem:[%s4396_s18 + $0x308] sm:$0xff]  ;;  %v9033_v56 = vld [vmem:[#allocation94_spill] sm:$0xff] }
 0x3e5   : > { %v9041_v46 = vld [vmem:[#allocation147_spill] sm:$0xff] }
 0x3e6   : > { %3877 = vst.msk [vmem:[%s7284_s27 + $0x250] sm:$0xff] %vm330_vm0, %v3765_v49  ;;  %3888 = vst.msk [vmem:[%s7284_s27 + $0x2a8] sm:$0xff] %vm330_vm0, %v3776_v21  ;;  %v3116_v49 = vmul.f32 %v4333_v31, %v9033_v56 }
 0x3e7   : > { %v3514_v54 = vpop.permute.xlu1 %3513  ;;  %v3569_v41 = vpop.permute.xlu0 %3568 }
 0x3e8   : > { %v3767_v39 = vadd.f32 %v3514_v54, %v3095_v19  ;;  %v3778_v24 = vadd.f32 %v3569_v41, %v3106_v11  ;;  %v3107_v11 = vmul.f32 %v4334_v59, %v9034_v63  ;;  %v4335_v54 = vld [vmem:[%s4396_s18 + $0x318] sm:$0xff]  ;;  %v9035_v41 = vld [vmem:[#allocation98_spill] sm:$0xff]  ;;  %v9044_v63 = vld [vmem:[#allocation35_spill] sm:$0xff] }
 0x3e9   : > { %v4347_v59 = vld [vmem:[%s4396_s18 + $0x378] sm:$0xff] }
 0x3ea   : > { %3879 = vst.msk [vmem:[%s7284_s27 + $0x260] sm:$0xff] %vm330_vm0, %v3767_v39  ;;  %3890 = vst.msk [vmem:[%s7284_s27 + $0x2b8] sm:$0xff] %vm330_vm0, %v3778_v24  ;;  %v3118_v39 = vmul.f32 %v4335_v54, %v9035_v41 }
 0x3eb   : > { %v3524_v15 = vpop.permute.xlu1 %3523  ;;  %v3579_v22 = vpop.permute.xlu0 %3578 }
 0x3ec   : > { %v3769_v12 = vadd.f32 %v3524_v15, %v3097_v58  ;;  %v3780_v60 = vadd.f32 %v3579_v22, %v3108_v17  ;;  %v3109_v17 = vmul.f32 %v4336_v38, %v9036_v3  ;;  %v4337_v15 = vld [vmem:[%s4396_s18 + $0x328] sm:$0xff]  ;;  %v9037_v22 = vld [vmem:[#allocation88_spill] sm:$0xff] }
 0x3ee   : > { %3881 = vst.msk [vmem:[%s7284_s27 + $0x270] sm:$0xff] %vm330_vm0, %v3769_v12  ;;  %3892 = vst.msk [vmem:[%s7284_s27 + $0x2c8] sm:$0xff] %vm330_vm0, %v3780_v60  ;;  %v3120_v12 = vmul.f32 %v4337_v15, %v9037_v22 }
 0x3ef   : > { %v3534_v8 = vpop.permute.xlu1 %3533  ;;  %v3589_v35 = vpop.permute.xlu0 %3588 }
 0x3f0   : > { %v3771_v7 = vadd.f32 %v3534_v8, %v3099_v9  ;;  %v3782_v0 = vadd.f32 %v3589_v35, %v3110_v50  ;;  %v3111_v50 = vmul.f32 %v4338_v28, %v9038_v30  ;;  %v4339_v8 = vld [vmem:[%s4396_s18 + $0x338] sm:$0xff]  ;;  %v9039_v35 = vld [vmem:[#allocation95_spill] sm:$0xff]  ;;  %v4351_v28 = vld [vmem:[%s4396_s18 + $0x360] sm:$0xff] }
 0x3f1   : > { %v3127_v30 = vmul.f32 %v4351_v28, %v7320_v44 }
 0x3f2   : > { %3883 = vst.msk [vmem:[%s7284_s27 + $0x280] sm:$0xff] %vm330_vm0, %v3771_v7  ;;  %3894 = vst.msk [vmem:[%s7284_s27 + $0x2d8] sm:$0xff] %vm330_vm0, %v3782_v0  ;;  %v3122_v7 = vmul.f32 %v4339_v8, %v9039_v35  ;;  %v4352_v8 = vld [vmem:[%s4396_s18 + $0x370] sm:$0xff] }
 0x3f3   : > { %v3544_v4 = vpop.permute.xlu1 %3543  ;;  %v3599_v52 = vpop.permute.xlu0 %3598  ;;  %v3129_v35 = vmul.f32 %v4352_v8, %v7332_v53 }
 0x3f4   : > { %v3773_v40 = vadd.f32 %v3544_v4, %v3101_v42  ;;  %v3784_v62 = vadd.f32 %v3599_v52, %v3112_v20  ;;  %v4341_v20 = vld [vmem:[%s4396_s18 + $0x348] sm:$0xff] }
 0x3f5   : > { %v9040_v4 = vld [vmem:[#allocation31_spill] sm:$0xff] }
 0x3f6   : > { %3885 = vst.msk [vmem:[%s7284_s27 + $0x290] sm:$0xff] %vm330_vm0, %v3773_v40  ;;  %3896 = vst.msk [vmem:[%s7284_s27 + $0x2e8] sm:$0xff] %vm330_vm0, %v3784_v62  ;;  %v3124_v52 = vmul.f32 %v4341_v20, %v9040_v4 }
 0x3f7   : > { %v3554_v32 = vpop.permute.xlu1 %3553  ;;  %v3609_v34 = vpop.permute.xlu0 %3608 }
 0x3f8   : > { %v3775_v5 = vadd.f32 %v3554_v32, %v3103_v16  ;;  %v3786_v23 = vadd.f32 %v3609_v34, %v3114_v33  ;;  %v4342_v16 = vld [vmem:[%s4396_s18 + $0x300] sm:$0xff] }
 0x3f9   : > { %v3115_v18 = vmul.f32 %v4342_v16, %v7246_v47  ;;  %v9042_v47 = vld [vmem:[#allocation36_spill] sm:$0xff] }
 0x3fa   : > { %3887 = vst.msk [vmem:[%s7284_s27 + $0x2a0] sm:$0xff] %vm330_vm0, %v3775_v5  ;;  %3898 = vst.msk [vmem:[%s7284_s27 + $0x2f8] sm:$0xff] %vm330_vm0, %v3786_v23  ;;  %v4344_v23 = vld [vmem:[%s4396_s18 + $0x310] sm:$0xff] }
 0x3fb   : > { %v3564_v21 = vpop.permute.xlu1 %3563  ;;  %v3619_v29 = vpop.permute.xlu0 %3618  ;;  %v3117_v25 = vmul.f32 %v4344_v23, %v9041_v46 }
 0x3fc   : > { %v3777_v10 = vadd.f32 %v3564_v21, %v3105_v45  ;;  %v3788_v19 = vadd.f32 %v3619_v29, %v3116_v49  ;;  %v4345_v45 = vld [vmem:[%s4396_s18 + $0x368] sm:$0xff]  ;;  %v4346_v29 = vld [vmem:[%s4396_s18 + $0x320] sm:$0xff] }
 0x3fd   : > { %v3128_v31 = vmul.f32 %v4345_v45, %v9042_v47 }
 0x3fe   : > { %3889 = vst.msk [vmem:[%s7284_s27 + $0x2b0] sm:$0xff] %vm330_vm0, %v3777_v10  ;;  %3900 = vst.msk [vmem:[%s7284_s27 + $0x308] sm:$0xff] %vm330_vm0, %v3788_v19  ;;  %v9043_v10 = vld [vmem:[#allocation148_spill] sm:$0xff] }
 0x3ff   : > { %v3574_v24 = vpop.permute.xlu1 %3573  ;;  %v3629_v48 = vpop.permute.xlu0 %3628  ;;  %v3119_v19 = vmul.f32 %v4346_v29, %v9043_v10 }
 0x400   : > { %v3779_v2 = vadd.f32 %v3574_v24, %v3107_v11  ;;  %v3790_v58 = vadd.f32 %v3629_v48, %v3118_v39  ;;  %v3130_v11 = vmul.f32 %v4347_v59, %v9044_v63  ;;  %v4348_v48 = vld [vmem:[%s4396_s18 + $0x330] sm:$0xff] }
 0x402   : > { %3891 = vst.msk [vmem:[%s7284_s27 + $0x2c0] sm:$0xff] %vm330_vm0, %v3779_v2  ;;  %3902 = vst.msk [vmem:[%s7284_s27 + $0x318] sm:$0xff] %vm330_vm0, %v3790_v58  ;;  %v9045_v2 = vld [vmem:[#allocation149_spill] sm:$0xff] }
 0x403   : > { %v3584_v60 = vpop.permute.xlu1 %3583  ;;  %v3639_v55 = vpop.permute.xlu0 %3638  ;;  %v3121_v58 = vmul.f32 %v4348_v48, %v9045_v2 }
 0x404   : > { %v3781_v6 = vadd.f32 %v3584_v60, %v3109_v17  ;;  %v3792_v9 = vadd.f32 %v3639_v55, %v3120_v12  ;;  %v4349_v17 = vld [vmem:[%s4396_s18 + $0x340] sm:$0xff]  ;;  %v4350_v60 = vld [vmem:[%s4396_s18 + $0x350] sm:$0xff] }
 0x405   : > { %v3123_v15 = vmul.f32 %v4349_v17, %v7296_v37  ;;  %v3125_v55 = vmul.f32 %v4350_v60, %v7308_v57 }
 0x406   : > { %3893 = vst.msk [vmem:[%s7284_s27 + $0x2d0] sm:$0xff] %vm330_vm0, %v3781_v6  ;;  %3904 = vst.msk [vmem:[%s7284_s27 + $0x328] sm:$0xff] %vm330_vm0, %v3792_v9 }
 0x407   : > { %v3594_v0 = vpop.permute.xlu1 %3593  ;;  %v3649_v43 = vpop.permute.xlu0 %3648 }
 0x408   : > { %v3783_v1 = vadd.f32 %v3594_v0, %v3111_v50  ;;  %v3794_v42 = vadd.f32 %v3649_v43, %v3122_v7 }
 0x40a   : > { %3895 = vst.msk [vmem:[%s7284_s27 + $0x2e0] sm:$0xff] %vm330_vm0, %v3783_v1  ;;  %3906 = vst.msk [vmem:[%s7284_s27 + $0x338] sm:$0xff] %vm330_vm0, %v3794_v42 }
 0x40b   : > { %v3604_v40 = vpop.permute.xlu1 %3603  ;;  %v3659_v62 = vpop.permute.xlu0 %3658 }
 0x40c   : > { %v3785_v61 = vadd.f32 %v3604_v40, %v3113_v13  ;;  %v3796_v36 = vadd.f32 %v3659_v62, %v3124_v52 }
 0x40e   : > { %3897 = vst.msk [vmem:[%s7284_s27 + $0x2f0] sm:$0xff] %vm330_vm0, %v3785_v61  ;;  %3908 = vst.msk [vmem:[%s7284_s27 + $0x348] sm:$0xff] %vm330_vm0, %v3796_v36 }
 0x40f   : > { %v3614_v33 = vpop.permute.xlu1 %3613  ;;  %v3669_v32 = vpop.permute.xlu0 %3668 }
 0x410   : > { %v3787_v34 = vadd.f32 %v3614_v33, %v3115_v18  ;;  %v3798_v5 = vadd.f32 %v3669_v32, %v3126_v26 }
 0x412   : > { %3899 = vst.msk [vmem:[%s7284_s27 + $0x300] sm:$0xff] %vm330_vm0, %v3787_v34  ;;  %3910 = vst.msk [vmem:[%s7284_s27 + $0x358] sm:$0xff] %vm330_vm0, %v3798_v5 }
 0x413   : > { %v3624_v27 = vpop.permute.xlu1 %3623  ;;  %v3679_v56 = vpop.permute.xlu0 %3678 }
 0x414   : > { %v3789_v49 = vadd.f32 %v3624_v27, %v3117_v25  ;;  %v3800_v21 = vadd.f32 %v3679_v56, %v3128_v31 }
 0x416   : > { %3901 = vst.msk [vmem:[%s7284_s27 + $0x310] sm:$0xff] %vm330_vm0, %v3789_v49  ;;  %3912 = vst.msk [vmem:[%s7284_s27 + $0x368] sm:$0xff] %vm330_vm0, %v3800_v21 }
 0x417   : > { %v3634_v54 = vpop.permute.xlu1 %3633  ;;  %v3689_v41 = vpop.permute.xlu0 %3688 }
 0x418   : > { %v3791_v39 = vadd.f32 %v3634_v54, %v3119_v19  ;;  %v3802_v24 = vadd.f32 %v3689_v41, %v3130_v11 }
 0x41a   : > { %3903 = vst.msk [vmem:[%s7284_s27 + $0x320] sm:$0xff] %vm330_vm0, %v3791_v39  ;;  %3914 = vst.msk [vmem:[%s7284_s27 + $0x378] sm:$0xff] %vm330_vm0, %v3802_v24 }
 0x41b   : > { %v3644_v38 = vpop.permute.xlu1 %3643 }
 0x41c   : > { %v3793_v3 = vadd.f32 %v3644_v38, %v3121_v58 }
 0x41e   : > { %3905 = vst.msk [vmem:[%s7284_s27 + $0x330] sm:$0xff] %vm330_vm0, %v3793_v3 }
 0x41f   : > { %v3654_v22 = vpop.permute.xlu1 %3653 }
 0x420   : > { %v3795_v12 = vadd.f32 %v3654_v22, %v3123_v15 }
 0x422   : > { %3907 = vst.msk [vmem:[%s7284_s27 + $0x340] sm:$0xff] %vm330_vm0, %v3795_v12 }
 0x423   : > { %v3664_v6 = vpop.permute.xlu1 %3663 }
 0x424   : > { %v3797_v9 = vadd.f32 %v3664_v6, %v3125_v55 }
 0x426   : > { %3909 = vst.msk [vmem:[%s7284_s27 + $0x350] sm:$0xff] %vm330_vm0, %v3797_v9 }
 0x427   : > { %v3674_v50 = vpop.permute.xlu1 %3673 }
 0x428   : > { %v3799_v37 = vadd.f32 %v3674_v50, %v3127_v30 }
 0x42a   : > { %3911 = vst.msk [vmem:[%s7284_s27 + $0x360] sm:$0xff] %vm330_vm0, %v3799_v37 }
 0x42b   : > { %v3684_v7 = vpop.permute.xlu1 %3683 }
 0x42c   : > { %v3801_v0 = vadd.f32 %v3684_v7, %v3129_v35 }
 0x42e   : > { %3913 = vst.msk [vmem:[%s7284_s27 + $0x370] sm:$0xff] %vm330_vm0, %v3801_v0 }
 0x42f PF: > { %s13_s12 = sadd.s32 1, %s4359_s12  }
 0x430   : > { %p10_p4 = scmp.ge.s32.totalorder %s13_s12, 5  }
 0x432   :  { %12 = sbr.rel (!%p10_p4) target bundleno = 1 (0x1), region = 68 }

</bundles_post_ra>
